<compile_context>
chip_gen: v7x
topology: tpu7x:2x2x1
jax: 0.10.0
libtpu: 0.0.40
codegen_flags: <defaults>
</compile_context>

<pallas_src>
import math
from functools import partial

import jax
import jax.numpy as jnp
from jax.experimental import pallas as pl
from jax.experimental.pallas import tpu as pltpu

BN_EPS = 1e-3  # ultralytics Conv uses BatchNorm2d(eps=0.001)

_VMEM = pl.BlockSpec(memory_space=pltpu.MemorySpace.VMEM)


# ----------------------------- the fused kernel -----------------------------

def _fused_regression_kernel(
    patches_ref,    # (M, k_stem)   f32  stem im2col patches (K zero-padded to x8)
    packA_ref,      # (Rp, WPACK)   f32  all small folded weights/biases, packed
    spat_ref,       # (M, 9*c_+B)   f32  [tap validity masks | one-hot batch expand]
    pool_ref,       # (B, M)        f32  per-batch spatial-mean matrix (1/(H*W))
    w_head_ref,     # (c2, n_head)  bf16 head 1x1 conv weight (BN folded)
    head_misc_ref,  # (2, n_head)   f32  row0 = head bias, row1 = final linear weight
    o_ref,          # (B, 1)        f32
    shift_ref,      # (M+2*margin, c_) f32 scratch for the 3x3 row shifts
    *, W, B, c_, c0, c2, margin, offs, n_head, head_chunk,
):
    (o_stem, o_cv12, o_cv3, o_band, o_m12,
     o_bstem, o_bcv12, o_bcv3, o_bm12, o_blin) = offs
    M = spat_ref.shape[0]
    k_stem = patches_ref.shape[1]

    def silu(y):
        return y * jax.nn.sigmoid(y)

    def bias_row(off, width):
        return packA_ref[off:off + 1, 0:width]

    # trace-time-precomputed boundary masks + batch one-hot (loaded once, value-sliced)
    spat = spat_ref[...]
    tap_ok = spat[:, 0:9 * c_] != 0.0              # (M, 9*c_) bool
    expand = spat[:, 9 * c_:9 * c_ + B]            # (M, B)
    pool = pool_ref[...]                           # (B, M)

    # ---- layer 0: Conv(ch, c0, k=3, s=2) + BN + SiLU (im2col'ed in the wrapper) ----
    x0 = silu(jnp.dot(patches_ref[...], packA_ref[o_stem:o_stem + k_stem, 0:c0],
                      preferred_element_type=jnp.float32) + bias_row(o_bstem, c0))   # (M, c0)

    # ---- layer 1: CARC(c0, c2, n=1, e=0.5); cv1 and cv2 merged into one matmul ----
    y12 = silu(jnp.dot(x0, packA_ref[o_cv12:o_cv12 + c0, 0:2 * c_],
                       preferred_element_type=jnp.float32) + bias_row(o_bcv12, 2 * c_))
    y1, y2 = y12[:, 0:c_], y12[:, c_:2 * c_]

    w_m12 = packA_ref[o_m12:o_m12 + 9 * c_, :]     # (9*c_, 2*c_)  [w_m1 | w_m2]
    b_m12 = packA_ref[o_bm12:o_bm12 + 1, :]        # (1, 2*c_)

    def conv3x3_silu(x, col):
        # 3x3 / stride-1 / pad-1 conv on the flattened (M, c_) activation as ONE
        # (M, 9*c_) x (9*c_, c_) matmul: 9 shifted reads of the VMEM scratch are
        # lane-concatenated; the precomputed masks kill out-of-image taps.
        # The scratch margin rows are never initialized: jnp.where is a select,
        # so their garbage can never propagate (do NOT turn the mask into a mul).
        shift_ref[pl.ds(margin, M), :] = x
        taps = jnp.concatenate(
            [shift_ref[pl.ds(margin + (t // 3 - 1) * W + (t % 3 - 1), M), :]
             for t in range(9)], axis=-1)                                  # (M, 9*c_)
        taps = jnp.where(tap_ok, taps, 0.0)
        y = jnp.dot(taps, w_m12[:, col:col + c_],
                    preferred_element_type=jnp.float32)
        return silu(y + b_m12[:, col:col + c_])

    a = conv3x3_silu(y1, 0)
    y1 = y1 + conv3x3_silu(a, c_)                  # ARCBlock residual (c1 == c2)

    # cv3 on cat([m-branch, cv2-branch], channel) as a single K = 2*c_ matmul
    ycat = jnp.concatenate([y1, y2], axis=-1)
    x2 = silu(jnp.dot(ycat, packA_ref[o_cv3:o_cv3 + 2 * c_, 0:c2],
                      preferred_element_type=jnp.float32) + bias_row(o_bcv3, c2))     # (M, c2)

    # ---- layer 2: AFGCAttention (avg-pool -> Conv1d over channels -> sigmoid gate) ----
    pooled = jnp.dot(pool, x2, preferred_element_type=jnp.float32)                    # (B, c2)
    gate = jax.nn.sigmoid(jnp.dot(pooled, packA_ref[o_band:o_band + c2, 0:c2],
                                  preferred_element_type=jnp.float32))                # (B, c2)
    gate_rows = expand[:, 0:1] * gate[0:1, :]      # broadcast gate back to rows (VPU)
    for b in range(1, B):
        gate_rows = gate_rows + expand[:, b:b + 1] * gate[b:b + 1, :]
    x3 = x2 * gate_rows                                                               # (M, c2)

    # ---- layer 3: RegressionHead, chunked over the n_head channels so the
    #      (M, n_head) activation never materializes (no vreg spill / VMEM slab) ----
    x3b = x3.astype(jnp.bfloat16)
    poolb = pool.astype(jnp.bfloat16)              # 0/1 and 1/(H*W) are bf16-exact
    acc = jnp.zeros((B, head_chunk), jnp.float32)
    for n0 in range(0, n_head, head_chunk):
        yh = jnp.dot(x3b, w_head_ref[:, n0:n0 + head_chunk],
                     preferred_element_type=jnp.float32)
        yh = (yh + head_misc_ref[0:1, n0:n0 + head_chunk]).astype(jnp.bfloat16)
        yh = silu(yh)                                                   # bf16 SiLU
        pooled_h = jnp.dot(poolb, yh, preferred_element_type=jnp.float32)   # (B, chunk)
        acc = acc + pooled_h * head_misc_ref[1:2, n0:n0 + head_chunk]
    # TODO(synk): Dropout(p=0.1) train-mode masking not modeled; identity (eval mode).
    b_lin = packA_ref[o_blin:o_blin + 1, :][:, 0:1]
    out = jnp.sum(acc, axis=1, keepdims=True) + b_lin
    o_ref[...] = out.astype(o_ref.dtype)


# ----------------------------- wrapper --------------------------------------

def regression_model_forward(x_nchw, params):
    x = jnp.transpose(x_nchw, (0, 2, 3, 1)).astype(jnp.float32)   # NCHW -> NHWC
    B, Hi, Wi, ch = x.shape
    H = (Hi + 2 * 1 - 3) // 2 + 1                                 # stem k=3, s=2, pad=1
    W = (Wi + 2 * 1 - 3) // 2 + 1
    M = B * H * W

    ps, pc, pa, ph = params["stem"], params["carc"], params["afgc"], params["head"]
    c0 = ps["w"].shape[-1]
    c_ = pc["cv1"]["w"].shape[-1]
    c2 = pc["cv3"]["w"].shape[-1]
    n_head = ph["conv"]["w"].shape[-1]

    # ---- stem im2col (stride-2 3x3), column order (kh, kw, cin), K padded to x8 ----
    xp = jnp.pad(x, ((0, 0), (1, 1), (1, 1), (0, 0)))
    cols = [xp[:, i:i + 2 * H:2, j:j + 2 * W:2, :] for i in range(3) for j in range(3)]
    patches = jnp.concatenate(cols, axis=-1).reshape(M, 9 * ch)
    k_stem = ((9 * ch + 7) // 8) * 8
    patches = jnp.pad(patches, ((0, 0), (0, k_stem - 9 * ch)))

    def fold(p, kdim):
        # fold BN scale into the (kdim, cout) weight; return (w, bias_row)
        cout = p["w"].shape[-1]
        w = p["w"].reshape(kdim, cout) * p["scale"][None, :]
        return w.astype(jnp.float32), p["bias"].reshape(1, cout).astype(jnp.float32)

    w_stem, b_stem = fold(ps, 9 * ch)
    w_stem = jnp.pad(w_stem, ((0, k_stem - 9 * ch), (0, 0)))
    w_cv1, b_cv1 = fold(pc["cv1"], c0)
    w_cv2, b_cv2 = fold(pc["cv2"], c0)
    w_m1, b_m1 = fold(pc["m0_cv1"], 9 * c_)
    w_m2, b_m2 = fold(pc["m0_cv2"], 9 * c_)
    w_cv3, b_cv3 = fold(pc["cv3"], 2 * c_)
    w_head_f32, b_head = fold(ph["conv"], c2)
    w_head = w_head_f32.astype(jnp.bfloat16)       # bf16 x bf16 -> f32 acc on the MXU

    # merged cv1|cv2 and m_cv1|m_cv2 (lane-concatenated)
    w_cv12 = jnp.concatenate([w_cv1, w_cv2], axis=1)            # (c0, 2*c_)
    b_cv12 = jnp.concatenate([b_cv1, b_cv2], axis=1)
    w_m12 = jnp.concatenate([w_m1, w_m2], axis=1)               # (9*c_, 2*c_)
    b_m12 = jnp.concatenate([b_m1, b_m2], axis=1)

    # AFGC Conv1d(1,1,k, pad=(k-1)//2, bias=False) over channels as a (c2,c2) band matrix
    wk = pa["conv1d_w"]
    k = wk.shape[0]
    pad = (k - 1) // 2
    idx = jnp.arange(c2)
    diff = idx[:, None] - idx[None, :] + pad                    # band[src, dst]
    band = jnp.where((diff >= 0) & (diff < k),
                     wk[jnp.clip(diff, 0, k - 1)], 0.0).astype(jnp.float32)

    w_lin = ph["lin_w"].reshape(1, n_head).astype(jnp.float32)
    b_lin = ph["lin_b"].reshape(1, 1).astype(jnp.float32)

    # ---- pack every small f32 operand into one (rows, WPACK) matrix -------------
    WPACK = max(c0, 2 * c_, c2)

    def pack(blocks):
        parts, offs, r = [], [], 0
        for blk in blocks:
            br, bc = blk.shape
            offs.append(r)
            pr = (-br) % 8                                      # 8-row (sublane) aligned
            parts.append(jnp.pad(blk, ((0, pr), (0, WPACK - bc))))
            r += br + pr
        return jnp.concatenate(parts, axis=0), tuple(offs)

    packA, offs = pack([w_stem, w_cv12, w_cv3, band, w_m12,
                        b_stem, b_cv12, b_cv3, b_m12, b_lin])

    # ---- spatial constants: 3x3 tap validity masks + batch one-hot + pool matrix ----
    m_idx = jnp.arange(M)
    h_idx = (m_idx // W) % H
    w_idx = m_idx % W
    tap_masks = []
    for t in range(9):
        di, dj = t // 3 - 1, t % 3 - 1
        valid = ((h_idx + di >= 0) & (h_idx + di < H)
                 & (w_idx + dj >= 0) & (w_idx + dj < W))
        tap_masks.append(jnp.repeat(valid[:, None], c_, axis=1))
    mask_full = jnp.concatenate(tap_masks, axis=1).astype(jnp.float32)        # (M, 9*c_)

    row_b = m_idx // (H * W)
    expand = (row_b[:, None] == jnp.arange(B)[None, :]).astype(jnp.float32)   # (M, B)
    pool = expand.T / float(H * W)                                            # (B, M)
    spat = jnp.concatenate([mask_full, expand], axis=1)                       # (M, 9*c_+B)

    head_misc = jnp.concatenate([b_head, w_lin], axis=0)                      # (2, n_head)

    margin = ((W + 1 + 7) // 8) * 8        # covers |di*W + dj| <= W+1, sublane aligned
    head_chunk = 256 if n_head % 256 == 0 else (128 if n_head % 128 == 0 else n_head)

    kernel = partial(_fused_regression_kernel,
                     W=W, B=B, c_=c_, c0=c0, c2=c2, margin=margin, offs=offs,
                     n_head=n_head, head_chunk=head_chunk)
    return pl.pallas_call(
        kernel,
        out_shape=jax.ShapeDtypeStruct((B, 1), jnp.float32),
        in_specs=[_VMEM] * 6,
        out_specs=_VMEM,
        scratch_shapes=[pltpu.VMEM((M + 2 * margin, c_), jnp.float32)],
    )(patches, packA, spat, pool, w_head, head_misc)


# ----------------------------- pure-JAX reference ----------------------------

def _reference_forward(x_nchw, params):
    hi = jax.lax.Precision.HIGHEST
    x = jnp.transpose(x_nchw, (0, 2, 3, 1)).astype(jnp.float32)

    def conv_bn_silu(x, p, stride, padding):
        y = jax.lax.conv_general_dilated(
            x, p["w"], window_strides=(stride, stride),
            padding=((padding, padding), (padding, padding)),
            dimension_numbers=("NHWC", "HWIO", "NHWC"), precision=hi)
        y = y * p["scale"] + p["bias"]
        return y * jax.nn.sigmoid(y)

    ps, pc, pa, ph = params["stem"], params["carc"], params["afgc"], params["head"]
    x0 = conv_bn_silu(x, ps, 2, 1)
    y1 = conv_bn_silu(x0, pc["cv1"], 1, 0)
    y2 = conv_bn_silu(x0, pc["cv2"], 1, 0)
    a = conv_bn_silu(y1, pc["m0_cv1"], 1, 1)
    y1 = y1 + conv_bn_silu(a, pc["m0_cv2"], 1, 1)
    x2 = conv_bn_silu(jnp.concatenate([y1, y2], axis=-1), pc["cv3"], 1, 0)

    c2 = x2.shape[-1]
    pooled = jnp.mean(x2, axis=(1, 2))
    wk = pa["conv1d_w"]
    k = wk.shape[0]
    pad = (k - 1) // 2
    pooled_pad = jnp.pad(pooled, ((0, 0), (pad, pad)))
    gate = jnp.stack([jnp.sum(pooled_pad[:, c:c + k] * wk, axis=-1)
                      for c in range(c2)], axis=-1)
    x3 = x2 * jax.nn.sigmoid(gate)[:, None, None, :]

    yh = conv_bn_silu(x3, ph["conv"], 1, 0)
    pooled_h = jnp.mean(yh, axis=(1, 2))
    return jnp.dot(pooled_h, ph["lin_w"], precision=hi) + ph["lin_b"]


# ----------------------------- parameters -----------------------------------

def afgc_kernel_size(channel, b=1, gamma=2):
    t = int(abs((math.log(channel, 2) + b) / gamma))
    return t if t % 2 else t + 1


def init_conv_params(key, cin, cout, k):
    w = jax.random.normal(key, (k, k, cin, cout), jnp.float32) / math.sqrt(k * k * cin)
    # BatchNorm2d default init (gamma=1, beta=0, running_mean=0, running_var=1)
    # folded into a per-channel affine; initialize_biases() is a no-op on these.
    gamma = jnp.ones((cout,), jnp.float32)
    beta = jnp.zeros((cout,), jnp.float32)
    mean = jnp.zeros((cout,), jnp.float32)
    var = jnp.ones((cout,), jnp.float32)
    scale = gamma / jnp.sqrt(var + BN_EPS)
    bias = beta - mean * scale
    return {"w": w, "scale": scale, "bias": bias}


def init_model_params(key, ch=3):
    # Representative cfg produced by parse_custom_model:
    #   Conv(ch,16,3,2) -> CARC(16,16,n=1,e=0.5) -> AFGCAttention(16) -> RegressionHead(16)
    ks = jax.random.split(key, 10)
    c0, c_carc = 16, 16
    c_hidden = int(c_carc * 0.5)
    return {
        "stem": init_conv_params(ks[0], ch, c0, 3),
        "carc": {
            "cv1": init_conv_params(ks[1], c0, c_hidden, 1),
            "cv2": init_conv_params(ks[2], c0, c_hidden, 1),
            "cv3": init_conv_params(ks[3], 2 * c_hidden, c_carc, 1),
            "m0_cv1": init_conv_params(ks[4], c_hidden, c_hidden, 3),
            "m0_cv2": init_conv_params(ks[5], c_hidden, c_hidden, 3),
        },
        "afgc": {
            "conv1d_w": jax.random.normal(ks[6], (afgc_kernel_size(c_carc),),
                                          jnp.float32) * 0.5,
        },
        "head": {
            "conv": init_conv_params(ks[7], c_carc, 1280, 1),
            "lin_w": jax.random.normal(ks[8], (1280, 1), jnp.float32) / math.sqrt(1280.0),
            "lin_b": jax.random.normal(ks[9], (1,), jnp.float32) * 0.1,
        },
    }


# ----------------------------- main ------------------------------------------

if __name__ == "__main__":
    key = jax.random.PRNGKey(0)
    kx, kp = jax.random.split(key)
    x = jax.random.normal(kx, (2, 3, 16, 16), jnp.float32)   # NCHW, like PyTorch
    params = init_model_params(kp, ch=3)

    out = jax.jit(regression_model_forward)(x, params)
    jax.block_until_ready(out)
    assert out.shape == (2, 1) and out.dtype == jnp.float32

    ref = _reference_forward(x, params)
    # bf16 head weights/activations in the kernel -> loose-ish tolerance vs f32 ref
    assert bool(jnp.allclose(out, ref, rtol=5e-2, atol=2e-2)), (out, ref)
    print("KERNEL_OK")
</pallas_src>

<mosaic_0001>
module attributes {stable_mosaic.version = 11 : i64} {
  func.func @_fused_regression_kernel(%arg0: memref<128x32xf32, #tpu.memory_space<vmem>>, %arg1: memref<192x16xf32, #tpu.memory_space<vmem>>, %arg2: memref<128x74xf32, #tpu.memory_space<vmem>>, %arg3: memref<2x128xf32, #tpu.memory_space<vmem>>, %arg4: memref<16x1280xbf16, #tpu.memory_space<vmem>>, %arg5: memref<2x1280xf32, #tpu.memory_space<vmem>>, %arg6: memref<2x1xf32, #tpu.memory_space<vmem>>, %arg7: memref<160x8xf32, #tpu.memory_space<vmem>>) attributes {dimension_semantics = [], scalar_prefetch = 0 : i64, scratch_operands = 1 : i64, tpu.core_type = #tpu.core_type<tc>} {
    %c0 = arith.constant 0 : index
    %c0_0 = arith.constant 0 : index
    %0 = vector.load %arg2[%c0, %c0_0] : memref<128x74xf32, #tpu.memory_space<vmem>>, vector<128x74xf32>
    %1 = vector.extract_strided_slice %0 {offsets = [0, 0], sizes = [128, 72], strides = [1, 1]} : vector<128x74xf32> to vector<128x72xf32>
    %cst = arith.constant 0.000000e+00 : f32
    %2 = vector.broadcast %cst : f32 to vector<128x72xf32>
    %3 = arith.cmpf one, %1, %2 : vector<128x72xf32>
    %4 = vector.extract_strided_slice %0 {offsets = [0, 72], sizes = [128, 2], strides = [1, 1]} : vector<128x74xf32> to vector<128x2xf32>
    %c0_1 = arith.constant 0 : index
    %c0_2 = arith.constant 0 : index
    %5 = vector.load %arg3[%c0_1, %c0_2] : memref<2x128xf32, #tpu.memory_space<vmem>>, vector<2x128xf32>
    %c0_3 = arith.constant 0 : index
    %c0_4 = arith.constant 0 : index
    %6 = vector.load %arg0[%c0_3, %c0_4] : memref<128x32xf32, #tpu.memory_space<vmem>>, vector<128x32xf32>
    %c0_5 = arith.constant 0 : index
    %c0_6 = arith.constant 0 : index
    %7 = vector.load %arg1[%c0_5, %c0_6] : memref<192x16xf32, #tpu.memory_space<vmem>>, vector<32x16xf32>
    %cst_7 = arith.constant dense<0.000000e+00> : vector<128x16xf32>
    %8 = tpu.matmul %6, %7, %cst_7 {dimension_numbers = #tpu.dot_dimension_numbers<[1], [0], [0], [1], [0, 0, 1, 1], [], []>} : vector<128x32xf32>, vector<32x16xf32>, vector<128x16xf32> -> vector<128x16xf32>
    %c152 = arith.constant 152 : index
    %c0_8 = arith.constant 0 : index
    %9 = vector.load %arg1[%c152, %c0_8] : memref<192x16xf32, #tpu.memory_space<vmem>>, vector<1x16xf32>
    %10 = vector.broadcast %9 : vector<1x16xf32> to vector<128x16xf32>
    %11 = arith.addf %8, %10 : vector<128x16xf32>
    %12 = arith.negf %11 : vector<128x16xf32>
    %13 = math.exp %12 : vector<128x16xf32>
    %cst_9 = arith.constant 1.000000e+00 : f32
    %14 = vector.broadcast %cst_9 : f32 to vector<128x16xf32>
    %15 = arith.addf %14, %13 : vector<128x16xf32>
    %16 = arith.divf %14, %15 : vector<128x16xf32>
    %17 = arith.mulf %11, %16 : vector<128x16xf32>
    %c32 = arith.constant 32 : index
    %c0_10 = arith.constant 0 : index
    %18 = vector.load %arg1[%c32, %c0_10] : memref<192x16xf32, #tpu.memory_space<vmem>>, vector<16x16xf32>
    %cst_11 = arith.constant dense<0.000000e+00> : vector<128x16xf32>
    %19 = tpu.matmul %17, %18, %cst_11 {dimension_numbers = #tpu.dot_dimension_numbers<[1], [0], [0], [1], [0, 0, 1, 1], [], []>} : vector<128x16xf32>, vector<16x16xf32>, vector<128x16xf32> -> vector<128x16xf32>
    %c160 = arith.constant 160 : index
    %c0_12 = arith.constant 0 : index
    %20 = vector.load %arg1[%c160, %c0_12] : memref<192x16xf32, #tpu.memory_space<vmem>>, vector<1x16xf32>
    %21 = vector.broadcast %20 : vector<1x16xf32> to vector<128x16xf32>
    %22 = arith.addf %19, %21 : vector<128x16xf32>
    %23 = arith.negf %22 : vector<128x16xf32>
    %24 = math.exp %23 : vector<128x16xf32>
    %cst_13 = arith.constant 1.000000e+00 : f32
    %25 = vector.broadcast %cst_13 : f32 to vector<128x16xf32>
    %26 = arith.addf %25, %24 : vector<128x16xf32>
    %27 = arith.divf %25, %26 : vector<128x16xf32>
    %28 = arith.mulf %22, %27 : vector<128x16xf32>
    %29 = vector.extract_strided_slice %28 {offsets = [0, 0], sizes = [128, 8], strides = [1, 1]} : vector<128x16xf32> to vector<128x8xf32>
    %30 = vector.extract_strided_slice %28 {offsets = [0, 8], sizes = [128, 8], strides = [1, 1]} : vector<128x16xf32> to vector<128x8xf32>
    %c80 = arith.constant 80 : index
    %c0_14 = arith.constant 0 : index
    %31 = vector.load %arg1[%c80, %c0_14] : memref<192x16xf32, #tpu.memory_space<vmem>>, vector<72x16xf32>
    %c176 = arith.constant 176 : index
    %c0_15 = arith.constant 0 : index
    %32 = vector.load %arg1[%c176, %c0_15] : memref<192x16xf32, #tpu.memory_space<vmem>>, vector<1x16xf32>
    %c16 = arith.constant 16 : index
    %c0_16 = arith.constant 0 : index
    %33 = vector.load %arg7[%c16, %c0_16] : memref<160x8xf32, #tpu.memory_space<vmem>>, vector<128x8xf32>
    tpu.vector_store %arg7[%c16, %c0_16], %29 {strides = array<i32>} : memref<160x8xf32, #tpu.memory_space<vmem>>, vector<128x8xf32>,
    %c7 = arith.constant 7 : index
    %c0_17 = arith.constant 0 : index
    %34 = vector.load %arg7[%c7, %c0_17] : memref<160x8xf32, #tpu.memory_space<vmem>>, vector<128x8xf32>
    %c8 = arith.constant 8 : index
    %c0_18 = arith.constant 0 : index
    %35 = vector.load %arg7[%c8, %c0_18] : memref<160x8xf32, #tpu.memory_space<vmem>>, vector<128x8xf32>
    %c9 = arith.constant 9 : index
    %c0_19 = arith.constant 0 : index
    %36 = vector.load %arg7[%c9, %c0_19] : memref<160x8xf32, #tpu.memory_space<vmem>>, vector<128x8xf32>
    %c15 = arith.constant 15 : index
    %c0_20 = arith.constant 0 : index
    %37 = vector.load %arg7[%c15, %c0_20] : memref<160x8xf32, #tpu.memory_space<vmem>>, vector<128x8xf32>
    %c16_21 = arith.constant 16 : index
    %c0_22 = arith.constant 0 : index
    %38 = vector.load %arg7[%c16_21, %c0_22] : memref<160x8xf32, #tpu.memory_space<vmem>>, vector<128x8xf32>
    %c17 = arith.constant 17 : index
    %c0_23 = arith.constant 0 : index
    %39 = vector.load %arg7[%c17, %c0_23] : memref<160x8xf32, #tpu.memory_space<vmem>>, vector<128x8xf32>
    %c23 = arith.constant 23 : index
    %c0_24 = arith.constant 0 : index
    %40 = vector.load %arg7[%c23, %c0_24] : memref<160x8xf32, #tpu.memory_space<vmem>>, vector<128x8xf32>
    %c24 = arith.constant 24 : index
    %c0_25 = arith.constant 0 : index
    %41 = vector.load %arg7[%c24, %c0_25] : memref<160x8xf32, #tpu.memory_space<vmem>>, vector<128x8xf32>
    %c25 = arith.constant 25 : index
    %c0_26 = arith.constant 0 : index
    %42 = vector.load %arg7[%c25, %c0_26] : memref<160x8xf32, #tpu.memory_space<vmem>>, vector<128x8xf32>
    %43 = tpu.concatenate %34, %35, %36, %37, %38, %39, %40, %41, %42 in 1 : vector<128x8xf32>, vector<128x8xf32>, vector<128x8xf32>, vector<128x8xf32>, vector<128x8xf32>, vector<128x8xf32>, vector<128x8xf32>, vector<128x8xf32>, vector<128x8xf32> -> vector<128x72xf32>
    %cst_27 = arith.constant 0.000000e+00 : f32
    %44 = vector.broadcast %cst_27 : f32 to vector<128x72xf32>
    %45 = arith.select %3, %43, %44 : vector<128x72xi1>, vector<128x72xf32>
    %46 = vector.extract_strided_slice %31 {offsets = [0, 0], sizes = [72, 8], strides = [1, 1]} : vector<72x16xf32> to vector<72x8xf32>
    %cst_28 = arith.constant dense<0.000000e+00> : vector<128x8xf32>
    %47 = tpu.matmul %45, %46, %cst_28 {dimension_numbers = #tpu.dot_dimension_numbers<[1], [0], [0], [1], [0, 0, 1, 1], [], []>} : vector<128x72xf32>, vector<72x8xf32>, vector<128x8xf32> -> vector<128x8xf32>
    %48 = vector.extract_strided_slice %32 {offsets = [0, 0], sizes = [1, 8], strides = [1, 1]} : vector<1x16xf32> to vector<1x8xf32>
    %49 = vector.broadcast %48 : vector<1x8xf32> to vector<128x8xf32>
    %50 = arith.addf %47, %49 : vector<128x8xf32>
    %51 = arith.negf %50 : vector<128x8xf32>
    %52 = math.exp %51 : vector<128x8xf32>
    %cst_29 = arith.constant 1.000000e+00 : f32
    %53 = vector.broadcast %cst_29 : f32 to vector<128x8xf32>
    %54 = arith.addf %53, %52 : vector<128x8xf32>
    %55 = arith.divf %53, %54 : vector<128x8xf32>
    %56 = arith.mulf %50, %55 : vector<128x8xf32>
    %c16_30 = arith.constant 16 : index
    %c0_31 = arith.constant 0 : index
    %57 = vector.load %arg7[%c16_30, %c0_31] : memref<160x8xf32, #tpu.memory_space<vmem>>, vector<128x8xf32>
    tpu.vector_store %arg7[%c16_30, %c0_31], %56 {strides = array<i32>} : memref<160x8xf32, #tpu.memory_space<vmem>>, vector<128x8xf32>,
    %c7_32 = arith.constant 7 : index
    %c0_33 = arith.constant 0 : index
    %58 = vector.load %arg7[%c7_32, %c0_33] : memref<160x8xf32, #tpu.memory_space<vmem>>, vector<128x8xf32>
    %c8_34 = arith.constant 8 : index
    %c0_35 = arith.constant 0 : index
    %59 = vector.load %arg7[%c8_34, %c0_35] : memref<160x8xf32, #tpu.memory_space<vmem>>, vector<128x8xf32>
    %c9_36 = arith.constant 9 : index
    %c0_37 = arith.constant 0 : index
    %60 = vector.load %arg7[%c9_36, %c0_37] : memref<160x8xf32, #tpu.memory_space<vmem>>, vector<128x8xf32>
    %c15_38 = arith.constant 15 : index
    %c0_39 = arith.constant 0 : index
    %61 = vector.load %arg7[%c15_38, %c0_39] : memref<160x8xf32, #tpu.memory_space<vmem>>, vector<128x8xf32>
    %c16_40 = arith.constant 16 : index
    %c0_41 = arith.constant 0 : index
    %62 = vector.load %arg7[%c16_40, %c0_41] : memref<160x8xf32, #tpu.memory_space<vmem>>, vector<128x8xf32>
    %c17_42 = arith.constant 17 : index
    %c0_43 = arith.constant 0 : index
    %63 = vector.load %arg7[%c17_42, %c0_43] : memref<160x8xf32, #tpu.memory_space<vmem>>, vector<128x8xf32>
    %c23_44 = arith.constant 23 : index
    %c0_45 = arith.constant 0 : index
    %64 = vector.load %arg7[%c23_44, %c0_45] : memref<160x8xf32, #tpu.memory_space<vmem>>, vector<128x8xf32>
    %c24_46 = arith.constant 24 : index
    %c0_47 = arith.constant 0 : index
    %65 = vector.load %arg7[%c24_46, %c0_47] : memref<160x8xf32, #tpu.memory_space<vmem>>, vector<128x8xf32>
    %c25_48 = arith.constant 25 : index
    %c0_49 = arith.constant 0 : index
    %66 = vector.load %arg7[%c25_48, %c0_49] : memref<160x8xf32, #tpu.memory_space<vmem>>, vector<128x8xf32>
    %67 = tpu.concatenate %58, %59, %60, %61, %62, %63, %64, %65, %66 in 1 : vector<128x8xf32>, vector<128x8xf32>, vector<128x8xf32>, vector<128x8xf32>, vector<128x8xf32>, vector<128x8xf32>, vector<128x8xf32>, vector<128x8xf32>, vector<128x8xf32> -> vector<128x72xf32>
    %cst_50 = arith.constant 0.000000e+00 : f32
    %68 = vector.broadcast %cst_50 : f32 to vector<128x72xf32>
    %69 = arith.select %3, %67, %68 : vector<128x72xi1>, vector<128x72xf32>
    %70 = vector.extract_strided_slice %31 {offsets = [0, 8], sizes = [72, 8], strides = [1, 1]} : vector<72x16xf32> to vector<72x8xf32>
    %cst_51 = arith.constant dense<0.000000e+00> : vector<128x8xf32>
    %71 = tpu.matmul %69, %70, %cst_51 {dimension_numbers = #tpu.dot_dimension_numbers<[1], [0], [0], [1], [0, 0, 1, 1], [], []>} : vector<128x72xf32>, vector<72x8xf32>, vector<128x8xf32> -> vector<128x8xf32>
    %72 = vector.extract_strided_slice %32 {offsets = [0, 8], sizes = [1, 8], strides = [1, 1]} : vector<1x16xf32> to vector<1x8xf32>
    %73 = vector.broadcast %72 : vector<1x8xf32> to vector<128x8xf32>
    %74 = arith.addf %71, %73 : vector<128x8xf32>
    %75 = arith.negf %74 : vector<128x8xf32>
    %76 = math.exp %75 : vector<128x8xf32>
    %cst_52 = arith.constant 1.000000e+00 : f32
    %77 = vector.broadcast %cst_52 : f32 to vector<128x8xf32>
    %78 = arith.addf %77, %76 : vector<128x8xf32>
    %79 = arith.divf %77, %78 : vector<128x8xf32>
    %80 = arith.mulf %74, %79 : vector<128x8xf32>
    %81 = arith.addf %29, %80 : vector<128x8xf32>
    %82 = tpu.concatenate %81, %30 in 1 : vector<128x8xf32>, vector<128x8xf32> -> vector<128x16xf32>
    %c48 = arith.constant 48 : index
    %c0_53 = arith.constant 0 : index
    %83 = vector.load %arg1[%c48, %c0_53] : memref<192x16xf32, #tpu.memory_space<vmem>>, vector<16x16xf32>
    %cst_54 = arith.constant dense<0.000000e+00> : vector<128x16xf32>
    %84 = tpu.matmul %82, %83, %cst_54 {dimension_numbers = #tpu.dot_dimension_numbers<[1], [0], [0], [1], [0, 0, 1, 1], [], []>} : vector<128x16xf32>, vector<16x16xf32>, vector<128x16xf32> -> vector<128x16xf32>
    %c168 = arith.constant 168 : index
    %c0_55 = arith.constant 0 : index
    %85 = vector.load %arg1[%c168, %c0_55] : memref<192x16xf32, #tpu.memory_space<vmem>>, vector<1x16xf32>
    %86 = vector.broadcast %85 : vector<1x16xf32> to vector<128x16xf32>
    %87 = arith.addf %84, %86 : vector<128x16xf32>
    %88 = arith.negf %87 : vector<128x16xf32>
    %89 = math.exp %88 : vector<128x16xf32>
    %cst_56 = arith.constant 1.000000e+00 : f32
    %90 = vector.broadcast %cst_56 : f32 to vector<128x16xf32>
    %91 = arith.addf %90, %89 : vector<128x16xf32>
    %92 = arith.divf %90, %91 : vector<128x16xf32>
    %93 = arith.mulf %87, %92 : vector<128x16xf32>
    %cst_57 = arith.constant dense<0.000000e+00> : vector<2x16xf32>
    %94 = tpu.matmul %5, %93, %cst_57 {dimension_numbers = #tpu.dot_dimension_numbers<[1], [0], [0], [1], [0, 0, 1, 1], [], []>} : vector<2x128xf32>, vector<128x16xf32>, vector<2x16xf32> -> vector<2x16xf32>
    %c64 = arith.constant 64 : index
    %c0_58 = arith.constant 0 : index
    %95 = vector.load %arg1[%c64, %c0_58] : memref<192x16xf32, #tpu.memory_space<vmem>>, vector<16x16xf32>
    %cst_59 = arith.constant dense<0.000000e+00> : vector<2x16xf32>
    %96 = tpu.matmul %94, %95, %cst_59 {dimension_numbers = #tpu.dot_dimension_numbers<[1], [0], [0], [1], [0, 0, 1, 1], [], []>} : vector<2x16xf32>, vector<16x16xf32>, vector<2x16xf32> -> vector<2x16xf32>
    %97 = arith.negf %96 : vector<2x16xf32>
    %98 = math.exp %97 : vector<2x16xf32>
    %cst_60 = arith.constant 1.000000e+00 : f32
    %99 = vector.broadcast %cst_60 : f32 to vector<2x16xf32>
    %100 = arith.addf %99, %98 : vector<2x16xf32>
    %101 = arith.divf %99, %100 : vector<2x16xf32>
    %102 = vector.extract_strided_slice %4 {offsets = [0, 0], sizes = [128, 1], strides = [1, 1]} : vector<128x2xf32> to vector<128x1xf32>
    %103 = vector.extract_strided_slice %101 {offsets = [0, 0], sizes = [1, 16], strides = [1, 1]} : vector<2x16xf32> to vector<1x16xf32>
    %104 = vector.broadcast %102 : vector<128x1xf32> to vector<128x16xf32>
    %105 = vector.broadcast %103 : vector<1x16xf32> to vector<128x16xf32>
    %106 = arith.mulf %104, %105 : vector<128x16xf32>
    %107 = vector.extract_strided_slice %4 {offsets = [0, 1], sizes = [128, 1], strides = [1, 1]} : vector<128x2xf32> to vector<128x1xf32>
    %108 = vector.extract_strided_slice %101 {offsets = [1, 0], sizes = [1, 16], strides = [1, 1]} : vector<2x16xf32> to vector<1x16xf32>
    %109 = vector.broadcast %107 : vector<128x1xf32> to vector<128x16xf32>
    %110 = vector.broadcast %108 : vector<1x16xf32> to vector<128x16xf32>
    %111 = arith.mulf %109, %110 : vector<128x16xf32>
    %112 = arith.addf %106, %111 : vector<128x16xf32>
    %113 = arith.mulf %93, %112 : vector<128x16xf32>
    %114 = arith.truncf %113 : vector<128x16xf32> to vector<128x16xbf16>
    %115 = arith.truncf %5 : vector<2x128xf32> to vector<2x128xbf16>
    %cst_61 = arith.constant 0.000000e+00 : f32
    %116 = vector.broadcast %cst_61 : f32 to vector<2x256xf32>
    %c0_62 = arith.constant 0 : index
    %c0_63 = arith.constant 0 : index
    %117 = vector.load %arg4[%c0_62, %c0_63] : memref<16x1280xbf16, #tpu.memory_space<vmem>>, vector<16x256xbf16>
    %cst_64 = arith.constant dense<0.000000e+00> : vector<128x256xf32>
    %118 = tpu.matmul %114, %117, %cst_64 {dimension_numbers = #tpu.dot_dimension_numbers<[1], [0], [0], [1], [0, 0, 1, 1], [], []>} : vector<128x16xbf16>, vector<16x256xbf16>, vector<128x256xf32> -> vector<128x256xf32>
    %c0_65 = arith.constant 0 : index
    %c0_66 = arith.constant 0 : index
    %119 = vector.load %arg5[%c0_65, %c0_66] : memref<2x1280xf32, #tpu.memory_space<vmem>>, vector<1x256xf32>
    %120 = vector.broadcast %119 : vector<1x256xf32> to vector<128x256xf32>
    %121 = arith.addf %118, %120 : vector<128x256xf32>
    %122 = arith.truncf %121 : vector<128x256xf32> to vector<128x256xbf16>
    %123 = arith.negf %122 : vector<128x256xbf16>
    %124 = math.exp %123 : vector<128x256xbf16>
    %cst_67 = arith.constant 1.000000e+00 : bf16
    %125 = vector.broadcast %cst_67 : bf16 to vector<128x256xbf16>
    %126 = arith.addf %125, %124 : vector<128x256xbf16>
    %127 = arith.divf %125, %126 : vector<128x256xbf16>
    %128 = arith.mulf %122, %127 : vector<128x256xbf16>
    %cst_68 = arith.constant dense<0.000000e+00> : vector<2x256xf32>
    %129 = tpu.matmul %115, %128, %cst_68 {dimension_numbers = #tpu.dot_dimension_numbers<[1], [0], [0], [1], [0, 0, 1, 1], [], []>} : vector<2x128xbf16>, vector<128x256xbf16>, vector<2x256xf32> -> vector<2x256xf32>
    %c1 = arith.constant 1 : index
    %c0_69 = arith.constant 0 : index
    %130 = vector.load %arg5[%c1, %c0_69] : memref<2x1280xf32, #tpu.memory_space<vmem>>, vector<1x256xf32>
    %131 = vector.broadcast %130 : vector<1x256xf32> to vector<2x256xf32>
    %132 = arith.mulf %129, %131 : vector<2x256xf32>
    %133 = arith.addf %116, %132 : vector<2x256xf32>
    %c0_70 = arith.constant 0 : index
    %c256 = arith.constant 256 : index
    %134 = vector.load %arg4[%c0_70, %c256] : memref<16x1280xbf16, #tpu.memory_space<vmem>>, vector<16x256xbf16>
    %cst_71 = arith.constant dense<0.000000e+00> : vector<128x256xf32>
    %135 = tpu.matmul %114, %134, %cst_71 {dimension_numbers = #tpu.dot_dimension_numbers<[1], [0], [0], [1], [0, 0, 1, 1], [], []>} : vector<128x16xbf16>, vector<16x256xbf16>, vector<128x256xf32> -> vector<128x256xf32>
    %c0_72 = arith.constant 0 : index
    %c256_73 = arith.constant 256 : index
    %136 = vector.load %arg5[%c0_72, %c256_73] : memref<2x1280xf32, #tpu.memory_space<vmem>>, vector<1x256xf32>
    %137 = vector.broadcast %136 : vector<1x256xf32> to vector<128x256xf32>
    %138 = arith.addf %135, %137 : vector<128x256xf32>
    %139 = arith.truncf %138 : vector<128x256xf32> to vector<128x256xbf16>
    %140 = arith.negf %139 : vector<128x256xbf16>
    %141 = math.exp %140 : vector<128x256xbf16>
    %cst_74 = arith.constant 1.000000e+00 : bf16
    %142 = vector.broadcast %cst_74 : bf16 to vector<128x256xbf16>
    %143 = arith.addf %142, %141 : vector<128x256xbf16>
    %144 = arith.divf %142, %143 : vector<128x256xbf16>
    %145 = arith.mulf %139, %144 : vector<128x256xbf16>
    %cst_75 = arith.constant dense<0.000000e+00> : vector<2x256xf32>
    %146 = tpu.matmul %115, %145, %cst_75 {dimension_numbers = #tpu.dot_dimension_numbers<[1], [0], [0], [1], [0, 0, 1, 1], [], []>} : vector<2x128xbf16>, vector<128x256xbf16>, vector<2x256xf32> -> vector<2x256xf32>
    %c1_76 = arith.constant 1 : index
    %c256_77 = arith.constant 256 : index
    %147 = vector.load %arg5[%c1_76, %c256_77] : memref<2x1280xf32, #tpu.memory_space<vmem>>, vector<1x256xf32>
    %148 = vector.broadcast %147 : vector<1x256xf32> to vector<2x256xf32>
    %149 = arith.mulf %146, %148 : vector<2x256xf32>
    %150 = arith.addf %133, %149 : vector<2x256xf32>
    %c0_78 = arith.constant 0 : index
    %c512 = arith.constant 512 : index
    %151 = vector.load %arg4[%c0_78, %c512] : memref<16x1280xbf16, #tpu.memory_space<vmem>>, vector<16x256xbf16>
    %cst_79 = arith.constant dense<0.000000e+00> : vector<128x256xf32>
    %152 = tpu.matmul %114, %151, %cst_79 {dimension_numbers = #tpu.dot_dimension_numbers<[1], [0], [0], [1], [0, 0, 1, 1], [], []>} : vector<128x16xbf16>, vector<16x256xbf16>, vector<128x256xf32> -> vector<128x256xf32>
    %c0_80 = arith.constant 0 : index
    %c512_81 = arith.constant 512 : index
    %153 = vector.load %arg5[%c0_80, %c512_81] : memref<2x1280xf32, #tpu.memory_space<vmem>>, vector<1x256xf32>
    %154 = vector.broadcast %153 : vector<1x256xf32> to vector<128x256xf32>
    %155 = arith.addf %152, %154 : vector<128x256xf32>
    %156 = arith.truncf %155 : vector<128x256xf32> to vector<128x256xbf16>
    %157 = arith.negf %156 : vector<128x256xbf16>
    %158 = math.exp %157 : vector<128x256xbf16>
    %cst_82 = arith.constant 1.000000e+00 : bf16
    %159 = vector.broadcast %cst_82 : bf16 to vector<128x256xbf16>
    %160 = arith.addf %159, %158 : vector<128x256xbf16>
    %161 = arith.divf %159, %160 : vector<128x256xbf16>
    %162 = arith.mulf %156, %161 : vector<128x256xbf16>
    %cst_83 = arith.constant dense<0.000000e+00> : vector<2x256xf32>
    %163 = tpu.matmul %115, %162, %cst_83 {dimension_numbers = #tpu.dot_dimension_numbers<[1], [0], [0], [1], [0, 0, 1, 1], [], []>} : vector<2x128xbf16>, vector<128x256xbf16>, vector<2x256xf32> -> vector<2x256xf32>
    %c1_84 = arith.constant 1 : index
    %c512_85 = arith.constant 512 : index
    %164 = vector.load %arg5[%c1_84, %c512_85] : memref<2x1280xf32, #tpu.memory_space<vmem>>, vector<1x256xf32>
    %165 = vector.broadcast %164 : vector<1x256xf32> to vector<2x256xf32>
    %166 = arith.mulf %163, %165 : vector<2x256xf32>
    %167 = arith.addf %150, %166 : vector<2x256xf32>
    %c0_86 = arith.constant 0 : index
    %c768 = arith.constant 768 : index
    %168 = vector.load %arg4[%c0_86, %c768] : memref<16x1280xbf16, #tpu.memory_space<vmem>>, vector<16x256xbf16>
    %cst_87 = arith.constant dense<0.000000e+00> : vector<128x256xf32>
    %169 = tpu.matmul %114, %168, %cst_87 {dimension_numbers = #tpu.dot_dimension_numbers<[1], [0], [0], [1], [0, 0, 1, 1], [], []>} : vector<128x16xbf16>, vector<16x256xbf16>, vector<128x256xf32> -> vector<128x256xf32>
    %c0_88 = arith.constant 0 : index
    %c768_89 = arith.constant 768 : index
    %170 = vector.load %arg5[%c0_88, %c768_89] : memref<2x1280xf32, #tpu.memory_space<vmem>>, vector<1x256xf32>
    %171 = vector.broadcast %170 : vector<1x256xf32> to vector<128x256xf32>
    %172 = arith.addf %169, %171 : vector<128x256xf32>
    %173 = arith.truncf %172 : vector<128x256xf32> to vector<128x256xbf16>
    %174 = arith.negf %173 : vector<128x256xbf16>
    %175 = math.exp %174 : vector<128x256xbf16>
    %cst_90 = arith.constant 1.000000e+00 : bf16
    %176 = vector.broadcast %cst_90 : bf16 to vector<128x256xbf16>
    %177 = arith.addf %176, %175 : vector<128x256xbf16>
    %178 = arith.divf %176, %177 : vector<128x256xbf16>
    %179 = arith.mulf %173, %178 : vector<128x256xbf16>
    %cst_91 = arith.constant dense<0.000000e+00> : vector<2x256xf32>
    %180 = tpu.matmul %115, %179, %cst_91 {dimension_numbers = #tpu.dot_dimension_numbers<[1], [0], [0], [1], [0, 0, 1, 1], [], []>} : vector<2x128xbf16>, vector<128x256xbf16>, vector<2x256xf32> -> vector<2x256xf32>
    %c1_92 = arith.constant 1 : index
    %c768_93 = arith.constant 768 : index
    %181 = vector.load %arg5[%c1_92, %c768_93] : memref<2x1280xf32, #tpu.memory_space<vmem>>, vector<1x256xf32>
    %182 = vector.broadcast %181 : vector<1x256xf32> to vector<2x256xf32>
    %183 = arith.mulf %180, %182 : vector<2x256xf32>
    %184 = arith.addf %167, %183 : vector<2x256xf32>
    %c0_94 = arith.constant 0 : index
    %c1024 = arith.constant 1024 : index
    %185 = vector.load %arg4[%c0_94, %c1024] : memref<16x1280xbf16, #tpu.memory_space<vmem>>, vector<16x256xbf16>
    %cst_95 = arith.constant dense<0.000000e+00> : vector<128x256xf32>
    %186 = tpu.matmul %114, %185, %cst_95 {dimension_numbers = #tpu.dot_dimension_numbers<[1], [0], [0], [1], [0, 0, 1, 1], [], []>} : vector<128x16xbf16>, vector<16x256xbf16>, vector<128x256xf32> -> vector<128x256xf32>
    %c0_96 = arith.constant 0 : index
    %c1024_97 = arith.constant 1024 : index
    %187 = vector.load %arg5[%c0_96, %c1024_97] : memref<2x1280xf32, #tpu.memory_space<vmem>>, vector<1x256xf32>
    %188 = vector.broadcast %187 : vector<1x256xf32> to vector<128x256xf32>
    %189 = arith.addf %186, %188 : vector<128x256xf32>
    %190 = arith.truncf %189 : vector<128x256xf32> to vector<128x256xbf16>
    %191 = arith.negf %190 : vector<128x256xbf16>
    %192 = math.exp %191 : vector<128x256xbf16>
    %cst_98 = arith.constant 1.000000e+00 : bf16
    %193 = vector.broadcast %cst_98 : bf16 to vector<128x256xbf16>
    %194 = arith.addf %193, %192 : vector<128x256xbf16>
    %195 = arith.divf %193, %194 : vector<128x256xbf16>
    %196 = arith.mulf %190, %195 : vector<128x256xbf16>
    %cst_99 = arith.constant dense<0.000000e+00> : vector<2x256xf32>
    %197 = tpu.matmul %115, %196, %cst_99 {dimension_numbers = #tpu.dot_dimension_numbers<[1], [0], [0], [1], [0, 0, 1, 1], [], []>} : vector<2x128xbf16>, vector<128x256xbf16>, vector<2x256xf32> -> vector<2x256xf32>
    %c1_100 = arith.constant 1 : index
    %c1024_101 = arith.constant 1024 : index
    %198 = vector.load %arg5[%c1_100, %c1024_101] : memref<2x1280xf32, #tpu.memory_space<vmem>>, vector<1x256xf32>
    %199 = vector.broadcast %198 : vector<1x256xf32> to vector<2x256xf32>
    %200 = arith.mulf %197, %199 : vector<2x256xf32>
    %201 = arith.addf %184, %200 : vector<2x256xf32>
    %c184 = arith.constant 184 : index
    %c0_102 = arith.constant 0 : index
    %202 = vector.load %arg1[%c184, %c0_102] : memref<192x16xf32, #tpu.memory_space<vmem>>, vector<1x16xf32>
    %203 = vector.extract_strided_slice %202 {offsets = [0, 0], sizes = [1, 1], strides = [1, 1]} : vector<1x16xf32> to vector<1x1xf32>
    %cst_103 = arith.constant dense<0.000000e+00> : vector<2xf32>
    %204 = vector.multi_reduction <add>, %201, %cst_103 [1] : vector<2x256xf32> to vector<2xf32>
    %205 = vector.shape_cast %204 : vector<2xf32> to vector<2x1xf32>
    %206 = vector.broadcast %203 : vector<1x1xf32> to vector<2x1xf32>
    %207 = arith.addf %205, %206 : vector<2x1xf32>
    %c0_104 = arith.constant 0 : index
    %c0_105 = arith.constant 0 : index
    %208 = vector.load %arg6[%c0_104, %c0_105] : memref<2x1xf32, #tpu.memory_space<vmem>>, vector<2x1xf32>
    tpu.vector_store %arg6[%c0_104, %c0_105], %207 {strides = array<i32>} : memref<2x1xf32, #tpu.memory_space<vmem>>, vector<2x1xf32>,
    return
  }
}

</mosaic_0001>

<bundles_post_ra>
// kernel: regression_model_forward.1
= control target key start
LH: loop header
LB: loop body
LE: loop exit
PB: predicated region body
PF: predicated region fallthrough
CT: control target
= control target key end

     0   :  { %vm83_vm0 = vcmask 261120   ;;  %vm396_vm1 = vcmask 130048   ;;  %s6594_s19 = smov 8   ;;  %vm712_vm2 = vcmask 64512   ;;  %s6595_s22 = smov 32   ;;  %vm1252_vm3 = vcmask 195584   ;;  %s9229_s1 = inlined_call_operand.vmem [shape: f32[192,16], index: 1, kind: input, shape index: {}]   ;;  %s9230_s0 = inlined_call_operand.vmem [shape: f32[128,32], index: 0, kind: input, shape index: {}]   ;;  %s9231_s2 = inlined_call_operand.vmem [shape: f32[128,74], index: 2, kind: input, shape index: {}]   ;;  %s9232_s3 = inlined_call_operand.vmem [shape: f32[2,128], index: 3, kind: input, shape index: {}]   ;;  %s9233_s4 = inlined_call_operand.vmem [shape: bf16[16,1280], index: 4, kind: input, shape index: {}]   ;;  %s9234_s5 = inlined_call_operand.vmem [shape: f32[2,1280], index: 5, kind: input, shape index: {}]   ;;  %s9235_s6 = inlined_call_operand.vmem [shape: f32[2,1], index: 6, kind: output, shape index: {}]  }
   0x1   :  { %v74_v0 = vld [vmem:[%s9229_s1] sm:$0xff]  ;;  %v75_v1 = vld [vmem:[%s9229_s1 + $0x8] sm:$0xff]  ;;  %v76_v2 = vld [vmem:[%s9229_s1 + $0x10] sm:$0xff]  ;;  %s6596_s23 = smov 16   ;;  %s6597_s24 = smov 24   ;;  %vm1285_vm4 = vcmask 326656  }
   0x2   :  { %v5782_v3 = vpack.c.bf16 %v75_v1, %v74_v0  ;;  %v77_v4 = vld [vmem:[%s9229_s1 + $0x18] sm:$0xff]  ;;  %v58_v5 = vld [vmem:[%s9230_s0] sm:$0xff]  ;;  %v68_v7 = vld [vmem:[%s9230_s0 + $0x50] sm:$0xff]  ;;  %s6598_s25 = smov 40   ;;  %s6599_s30 = smov 48   ;;  %vm1302_vm5 = vcmask 392192  }
   0x3   :  { %v5786_v6 = vpack.c.bf16 %v77_v4, %v76_v2  ;;  %5576 = vmatprep.mubr.msk.f32.mxu0 %vm83_vm0, %v58_v5  ;;  %5591 = vmatprep.mubr.msk.f32.mxu1 %vm83_vm0, %v68_v7  ;;  %v59_v8 = vld [vmem:[%s9230_s0 + $0x8] sm:$0xff]  ;;  %v69_v9 = vld [vmem:[%s9230_s0 + $0x58] sm:$0xff]  ;;  %v60_v10 = vld [vmem:[%s9230_s0 + $0x10] sm:$0xff]  ;;  %s6600_s26 = smov 64   ;;  %vm1319_vm6 = vcmask 457728   ;;  %vm1336_vm7 = vcmask 523264  }
   0x4   :  { %5783 = vmatprep.subr.bf16.mxu0 %v5782_v3  ;;  %5857 = vmatprep.subr.bf16.mxu1 %v5782_v3  ;;  %v70_v11 = vld [vmem:[%s9230_s0 + $0x60] sm:$0xff]  ;;  %v61_v12 = vld [vmem:[%s9230_s0 + $0x18] sm:$0xff]  ;;  %v71_v13 = vld [vmem:[%s9230_s0 + $0x68] sm:$0xff]  ;;  %vm1373_vm9 = vcmask 588800   ;;  %s6601_s21 = smov 120  }
   0x5   :  { %5785 = vmatpush3.bf16.msra.mxu0 %v5782_v3  ;;  %5859 = vmatpush3.bf16.msra.mxu1 %v5782_v3  ;;  %v62_v14 = vld [vmem:[%s9230_s0 + $0x20] sm:$0xff]  ;;  %v72_v15 = vld [vmem:[%s9230_s0 + $0x70] sm:$0xff]  ;;  %v63_v16 = vld [vmem:[%s9230_s0 + $0x28] sm:$0xff] }
   0x6   :  { %5787 = vmatprep.subr.bf16.mxu0 %v5786_v6  ;;  %5858 = vmatprep.subr.bf16.mxu1 %v5786_v6  ;;  %v73_v17 = vld [vmem:[%s9230_s0 + $0x78] sm:$0xff]  ;;  %v64_v18 = vld [vmem:[%s9230_s0 + $0x30] sm:$0xff]  ;;  %v66_v20 = vld [vmem:[%s9230_s0 + $0x40] sm:$0xff] }
   0x7   :  { %v65_v19 = vld [vmem:[%s9230_s0 + $0x38] sm:$0xff]  ;;  %v67_v21 = vld [vmem:[%s9230_s0 + $0x48] sm:$0xff]  ;;  %v389_v22 = vld [vmem:[%s9229_s1 + $0x20] sm:$0xff]  ;;  %s6593_s0 = smov 56  }
   0x8   :  { %v390_v23 = vld [vmem:[%s9229_s1 + $0x28] sm:$0xff]  ;;  %v6728_v25 = vld [vmem:[%s9229_s1 + $0x98] ss:$0 sm:$0xff] }
   0x9   :  { %5789 = vmatpush3.bf16.msra.mxu0 %v5786_v6  ;;  %5860 = vmatpush3.bf16.msra.mxu1 %v5786_v6  ;;  %v5790_v24 = vpack.c.bf16 %v390_v23, %v389_v22 }
   0xb   :  { %5791 = vmatprep.subr.bf16.mxu1 %v5790_v24 }
   0xc   :  { %5577 = vmatmul.mubr.msk.f32.vlgmr.msra.gmra.mrb[0].mxu0 %vm83_vm0, %v59_v8  ;;  %5592 = vmatmul.mubr.msk.f32.vlgmr.msra.gmra.mrb[0].mxu1 %vm83_vm0, %v69_v9 }
   0xd   :  { %5579 = vmatprep.mubr.msk.f32.mxu0 %vm83_vm0, %v60_v10  ;;  %5594 = vmatprep.mubr.msk.f32.mxu1 %vm83_vm0, %v70_v11 }
   0xe   :  { %5793 = vmatpush3.bf16.msra.mxu1 %v5790_v24 }
  0x10   :  { %5580 = vmatmul.mubr.msk.f32.gmra.mrb[2].mxu0 %vm83_vm0, %v61_v12  ;;  %5595 = vmatmul.mubr.msk.f32.gmra.mrb[2].mxu1 %vm83_vm0, %v71_v13 }
  0x11   :  { %5582 = vmatprep.mubr.msk.f32.mxu0 %vm83_vm0, %v62_v14  ;;  %5597 = vmatprep.mubr.msk.f32.mxu1 %vm83_vm0, %v72_v15 }
  0x14   :  { %5583 = vmatmul.mubr.msk.f32.gmra.mrb[4].mxu0 %vm83_vm0, %v63_v16  ;;  %5598 = vmatmul.mubr.msk.f32.gmra.mrb[4].mxu1 %vm83_vm0, %v73_v17 }
  0x15   :  { %5585 = vmatprep.mubr.msk.f32.mxu0 %vm83_vm0, %v64_v18 }
  0x18   :  { %5586 = vmatmul.mubr.msk.f32.gmra.mrb[6].mxu0 %vm83_vm0, %v65_v19 }
  0x19   :  { %5588 = vmatprep.mubr.msk.f32.mxu0 %vm83_vm0, %v66_v20 }
  0x1c   :  { %5589 = vmatmul.mubr.msk.f32.gmra.mrb[8].mxu0 %vm83_vm0, %v67_v21 }
  0xdf   :  { %v5578_v26 = vpop.f32.mrb[0].mxu0  ;;  %v5593_v27 = vpop.f32.mrb[0].mxu1 }
  0xe0   :  { %v6731_v28 = vadd.f32 %v5578_v26, %v6728_v25  ;;  %v198_v29 = vpop.f32.mrb[1].mxu0  ;;  %v248_v30 = vpop.f32.mrb[1].mxu1  ;;  %v6738_v33 = vadd.f32 %v5593_v27, %v6728_v25 }
  0xe1   :  { %v6734_v31 = vadd.f32 %v6728_v25, %v198_v29  ;;  %v6742_v36 = vadd.f32 %v6728_v25, %v248_v30 }
  0xe2   :  { %v5154_v32 = vmul.f32 -1.442695, %v6731_v28  ;;  %v5164_v43 = vmul.f32 -1.442695, %v6738_v33 }
  0xe3   :  { %v5153_v34 = vmul.f32 -1.442695, %v6734_v31  ;;  %v5581_v35 = vpop.f32.mrb[2].mxu0  ;;  %v5596_v37 = vpop.f32.mrb[2].mxu1  ;;  %v5163_v47 = vmul.f32 -1.442695, %v6742_v36 }
  0xe4   :  { %5933 = vpow2.f32 %v5154_v32  ;;  %v6745_v38 = vadd.f32 %v5581_v35, %v6728_v25  ;;  %v208_v39 = vpop.f32.mrb[3].mxu0  ;;  %v258_v40 = vpop.f32.mrb[3].mxu1  ;;  %v6753_v44 = vadd.f32 %v5596_v37, %v6728_v25 }
  0xe5   :  { %5935 = vpow2.f32 %v5153_v34  ;;  %v6748_v41 = vadd.f32 %v6728_v25, %v208_v39  ;;  %v6758_v48 = vadd.f32 %v6728_v25, %v258_v40 }
  0xe6   :  { %v5156_v42 = vmul.f32 -1.442695, %v6745_v38  ;;  %v5166_v55 = vmul.f32 -1.442695, %v6753_v44 }
  0xe7   :  { %v5155_v45 = vmul.f32 -1.442695, %v6748_v41  ;;  %v5584_v46 = vpop.f32.mrb[4].mxu0  ;;  %v5599_v49 = vpop.f32.mrb[4].mxu1  ;;  %v5165_v58 = vmul.f32 -1.442695, %v6758_v48 }
  0xe8   :  { %5937 = vpow2.f32 %v5156_v42  ;;  %v6761_v50 = vadd.f32 %v5584_v46, %v6728_v25  ;;  %v218_v51 = vpop.f32.mrb[5].mxu0  ;;  %v268_v52 = vpop.f32.mrb[5].mxu1  ;;  %v6790_v16 = vadd.f32 %v5599_v49, %v6728_v25 }
  0xe9   :  { %5939 = vpow2.f32 %v5155_v45  ;;  %v6764_v53 = vadd.f32 %v6728_v25, %v218_v51  ;;  %v6782_v7 = vadd.f32 %v6728_v25, %v268_v52 }
  0xea   :  { %v5158_v54 = vmul.f32 -1.442695, %v6761_v50  ;;  %5941 = vpow2.f32 %v5164_v43  ;;  %v5168_v24 = vmul.f32 -1.442695, %v6790_v16 }
  0xeb   :  { %v5157_v56 = vmul.f32 -1.442695, %v6764_v53  ;;  %v5587_v57 = vpop.f32.mrb[6].mxu0  ;;  %5943 = vpow2.f32 %v5163_v47  ;;  %v5167_v17 = vmul.f32 -1.442695, %v6782_v7 }
  0xec   :  { %5945 = vpow2.f32 %v5158_v54  ;;  %v6771_v59 = vadd.f32 %v5587_v57, %v6728_v25  ;;  %v228_v60 = vpop.f32.mrb[7].mxu0 }
  0xed   :  { %5947 = vpow2.f32 %v5157_v56  ;;  %v6774_v61 = vadd.f32 %v6728_v25, %v228_v60 }
  0xee   :  { %v5934_v62 = vpop.eup %5933  ;;  %v5160_v63 = vmul.f32 -1.442695, %v6771_v59  ;;  %5949 = vpow2.f32 %v5166_v55 }
  0xef   :  { %v5936_v0 = vpop.eup %5935  ;;  %v326_v1 = vadd.f32 1.0, %v5934_v62  ;;  %v5159_v2 = vmul.f32 -1.442695, %v6774_v61  ;;  %v5590_v3 = vpop.f32.mrb[8].mxu0  ;;  %5951 = vpow2.f32 %v5165_v58 }
  0xf0   :  { %v325_v4 = vadd.f32 1.0, %v5936_v0  ;;  %5953 = vpow2.f32 %v5160_v63  ;;  %v6779_v5 = vadd.f32 %v5590_v3, %v6728_v25  ;;  %v238_v6 = vpop.f32.mrb[9].mxu0 }
  0xf1   :  { %5955 = vrcp.f32 %v326_v1  ;;  %v6785_v8 = vadd.f32 %v6728_v25, %v238_v6 }
  0xf2   :  { %v5938_v9 = vpop.eup %5937  ;;  %5957 = vrcp.f32 %v325_v4  ;;  %v5162_v10 = vmul.f32 -1.442695, %v6779_v5 }
  0xf3   :  { %v5940_v11 = vpop.eup %5939  ;;  %v328_v12 = vadd.f32 1.0, %v5938_v9  ;;  %5959 = vpow2.f32 %v5159_v2  ;;  %v5161_v13 = vmul.f32 -1.442695, %v6785_v8 }
  0xf4   :  { %v5942_v14 = vpop.eup %5941  ;;  %v327_v15 = vadd.f32 1.0, %v5940_v11  ;;  %5961 = vpow2.f32 %v5162_v10 }
  0xf5   :  { %v5944_v18 = vpop.eup %5943  ;;  %5963 = vrcp.f32 %v328_v12  ;;  %v336_v49 = vadd.f32 1.0, %v5942_v14 }
  0xf6   :  { %v5946_v19 = vpop.eup %5945  ;;  %5965 = vrcp.f32 %v327_v15  ;;  %v335_v40 = vadd.f32 1.0, %v5944_v18 }
  0xf7   :  { %v5948_v20 = vpop.eup %5947  ;;  %v330_v21 = vadd.f32 1.0, %v5946_v19  ;;  %5967 = vpow2.f32 %v5161_v13 }
  0xf8   :  { %v5950_v22 = vpop.eup %5949  ;;  %v329_v23 = vadd.f32 1.0, %v5948_v20  ;;  %5969 = vpow2.f32 %v5167_v17 }
  0xf9   :  { %v5952_v26 = vpop.eup %5951  ;;  %5971 = vrcp.f32 %v330_v21 }
  0xfa   :  { %v5954_v27 = vpop.eup %5953  ;;  %5973 = vrcp.f32 %v329_v23 }
  0xfb   :  { %v5956_v25 = vpop.eup %5955  ;;  %v332_v29 = vadd.f32 1.0, %v5954_v27  ;;  %5975 = vpow2.f32 %v5168_v24 }
  0xfc   :  { %v5958_v30 = vpop.eup %5957  ;;  %v374_v37 = vmul.f32 %v5956_v25, %v6731_v28  ;;  %v337_v28 = vadd.f32 1.0, %v5952_v26 }
  0xfd   :  { %v5960_v32 = vpop.eup %5959  ;;  %v373_v34 = vmul.f32 %v5958_v30, %v6734_v31  ;;  %5977 = vrcp.f32 %v332_v29 }
  0xfe   :  { %v5962_v35 = vpop.eup %5961  ;;  %v331_v39 = vadd.f32 1.0, %v5960_v32 }
  0xff   :  { %v5964_v42 = vpop.eup %5963  ;;  %v334_v43 = vadd.f32 1.0, %v5962_v35  ;;  %5604 = vmatprep.mubr.msk.f32.mxu1 %vm396_vm1, %v373_v34 }
 0x100   :  { %v5966_v45 = vpop.eup %5965  ;;  %5979 = vrcp.f32 %v331_v39  ;;  %5605 = vmatmul.mubr.msk.f32.vlgmr.msra.gmra.mrb[6].mxu1 %vm396_vm1, %v374_v37  ;;  %v376_v51 = vmul.f32 %v5964_v42, %v6745_v38 }
 0x101   :  { %v5968_v46 = vpop.eup %5967  ;;  %v375_v47 = vmul.f32 %v5966_v45, %v6748_v41  ;;  %5981 = vrcp.f32 %v334_v43  ;;  %v338_v41 = vadd.f32 1.0, %v5950_v22 }
 0x102   :  { %v5970_v31 = vpop.eup %5969  ;;  %v333_v52 = vadd.f32 1.0, %v5968_v46  ;;  %5983 = vrcp.f32 %v335_v40 }
 0x103   :  { %v5972_v54 = vpop.eup %5971  ;;  %5607 = vmatprep.mubr.msk.f32.mxu1 %vm396_vm1, %v375_v47  ;;  %v339_v60 = vadd.f32 1.0, %v5970_v31 }
 0x104   :  { %v5974_v55 = vpop.eup %5973  ;;  %v378_v56 = vmul.f32 %v5972_v54, %v6761_v50  ;;  %5985 = vrcp.f32 %v333_v52  ;;  %5608 = vmatmul.mubr.msk.f32.gmra.mrb[8].mxu1 %vm396_vm1, %v376_v51 }
 0x105   :  { %v377_v57 = vmul.f32 %v5974_v55, %v6764_v53  ;;  %5987 = vrcp.f32 %v336_v49  ;;  %v5976_v58 = vpop.eup %5975 }
 0x106   :  { %5989 = vrcp.f32 %v337_v28  ;;  %v340_v62 = vadd.f32 1.0, %v5976_v58 }
 0x107   :  { %v5978_v38 = vpop.eup %5977  ;;  %5610 = vmatprep.mubr.msk.f32.mxu1 %vm396_vm1, %v377_v57  ;;  %5991 = vrcp.f32 %v338_v41 }
 0x108   :  { %5611 = vmatmul.mubr.msk.f32.gmra.mrb[10].mxu1 %vm396_vm1, %v378_v56  ;;  %v380_v50 = vmul.f32 %v5978_v38, %v6771_v59  ;;  %5993 = vrcp.f32 %v339_v60 }
 0x109   :  { %5995 = vrcp.f32 %v340_v62 }
 0x10a   :  { %v5980_v63 = vpop.eup %5979 }
 0x10b   :  { %v5982_v0 = vpop.eup %5981  ;;  %v379_v1 = vmul.f32 %v5980_v63, %v6774_v61 }
 0x10c   :  { %v5984_v53 = vpop.eup %5983  ;;  %v382_v3 = vmul.f32 %v5982_v0, %v6779_v5 }
 0x10d   :  { %5613 = vmatprep.mubr.msk.f32.mxu1 %vm396_vm1, %v379_v1  ;;  %v383_v9 = vmul.f32 %v5984_v53, %v6742_v36 }
 0x10e   :  { %v5986_v2 = vpop.eup %5985  ;;  %5614 = vmatmul.mubr.msk.f32.gmra.mrb[12].mxu1 %vm396_vm1, %v380_v50 }
 0x10f   :  { %v5988_v4 = vpop.eup %5987  ;;  %v381_v6 = vmul.f32 %v5986_v2, %v6785_v8 }
 0x110   :  { %v5990_v10 = vpop.eup %5989  ;;  %v384_v59 = vmul.f32 %v5988_v4, %v6738_v33  ;;  %v781_v33 = vld [vmem:[#allocation2 + $0x90] sm:$0xff] }
 0x111   :  { %5616 = vmatprep.mubr.msk.f32.mxu1 %vm396_vm1, %v381_v6  ;;  %v5992_v61 = vpop.eup %5991  ;;  %v385_v11 = vmul.f32 %v5990_v10, %v6758_v48  ;;  %v745_v48 = vld [vmem:[#allocation2 + $0x8] sm:$0xff]  ;;  %1153 = vrot.lane.b32.xlu1 %v781_v33, %s6593_s0 }
 0x112   :  { %5617 = vmatmul.mubr.msk.f32.gmra.mrb[14].mxu1 %vm396_vm1, %v382_v3  ;;  %v5994_v5 = vpop.eup %5993  ;;  %v386_v12 = vmul.f32 %v5992_v61, %v6753_v44  ;;  %799 = vrot.lane.b32.xlu0 %v745_v48, %s6594_s19  ;;  %v6831_v44 = vld [vmem:[%s9229_s1 + $0xa0] ss:$0 sm:$0xff] }
 0x113   :  { %5619 = vmatprep.mubr.msk.f32.mxu1 %vm396_vm1, %v383_v9  ;;  %v5996_v8 = vpop.eup %5995  ;;  %v387_v36 = vmul.f32 %v5994_v5, %v6782_v7 }
 0x114   :  { %v388_v13 = vmul.f32 %v5996_v8, %v6790_v16 }
 0x116   :  { %5620 = vmatmul.mubr.msk.f32.gmra.mrb[16].mxu1 %vm396_vm1, %v384_v59 }
 0x117   :  { %5622 = vmatprep.mubr.msk.f32.mxu1 %vm396_vm1, %v385_v11 }
 0x11a   :  { %5623 = vmatmul.mubr.msk.f32.gmra.mrb[18].mxu1 %vm396_vm1, %v386_v12 }
 0x11b   :  { %5625 = vmatprep.mubr.msk.f32.mxu1 %vm396_vm1, %v387_v36 }
 0x11e   :  { %5626 = vmatmul.mubr.msk.f32.gmra.mrb[20].mxu1 %vm396_vm1, %v388_v13 }
 0x1d3   :  { %v5606_v7 = vpop.f32.mrb[6].mxu1 }
 0x1d4   :  { %v6834_v14 = vadd.f32 %v5606_v7, %v6831_v44  ;;  %v511_v15 = vpop.f32.mrb[7].mxu1 }
 0x1d5   :  { %v6837_v16 = vadd.f32 %v6831_v44, %v511_v15 }
 0x1d6   :  { %v5187_v17 = vmul.f32 -1.442695, %v6834_v14 }
 0x1d7   :  { %v5186_v18 = vmul.f32 -1.442695, %v6837_v16  ;;  %v5609_v19 = vpop.f32.mrb[8].mxu1 }
 0x1d8   :  { %5997 = vpow2.f32 %v5187_v17  ;;  %v6842_v20 = vadd.f32 %v5609_v19, %v6831_v44  ;;  %v521_v21 = vpop.f32.mrb[9].mxu1 }
 0x1d9   :  { %5999 = vpow2.f32 %v5186_v18  ;;  %v6845_v22 = vadd.f32 %v6831_v44, %v521_v21 }
 0x1da   :  { %v5189_v23 = vmul.f32 -1.442695, %v6842_v20 }
 0x1db   :  { %v5188_v24 = vmul.f32 -1.442695, %v6845_v22  ;;  %v5612_v26 = vpop.f32.mrb[10].mxu1 }
 0x1dc   :  { %6001 = vpow2.f32 %v5189_v23  ;;  %v6850_v27 = vadd.f32 %v5612_v26, %v6831_v44  ;;  %v531_v25 = vpop.f32.mrb[11].mxu1 }
 0x1dd   :  { %6003 = vpow2.f32 %v5188_v24  ;;  %v6853_v29 = vadd.f32 %v6831_v44, %v531_v25 }
 0x1de   :  { %v5191_v30 = vmul.f32 -1.442695, %v6850_v27 }
 0x1df   :  { %v5190_v32 = vmul.f32 -1.442695, %v6853_v29 }
 0x1e0   :  { %6005 = vpow2.f32 %v5191_v30 }
 0x1e1   :  { %6007 = vpow2.f32 %v5190_v32  ;;  %v5615_v34 = vpop.f32.mrb[12].mxu1 }
 0x1e2   :  { %v5998_v35 = vpop.eup %5997  ;;  %v6858_v37 = vadd.f32 %v5615_v34, %v6831_v44  ;;  %v541_v39 = vpop.f32.mrb[13].mxu1 }
 0x1e3   :  { %v6000_v40 = vpop.eup %5999  ;;  %v639_v42 = vadd.f32 1.0, %v5998_v35  ;;  %v6861_v43 = vadd.f32 %v6831_v44, %v541_v39 }
 0x1e4   :  { %v638_v45 = vadd.f32 1.0, %v6000_v40  ;;  %v5193_v46 = vmul.f32 -1.442695, %v6858_v37 }
 0x1e5   :  { %6009 = vrcp.f32 %v639_v42  ;;  %v5192_v47 = vmul.f32 -1.442695, %v6861_v43  ;;  %v5618_v49 = vpop.f32.mrb[14].mxu1 }
 0x1e6   :  { %v6002_v31 = vpop.eup %6001  ;;  %6011 = vrcp.f32 %v638_v45  ;;  %v6866_v51 = vadd.f32 %v5618_v49, %v6831_v44  ;;  %v551_v52 = vpop.f32.mrb[15].mxu1 }
 0x1e7   :  { %v6004_v28 = vpop.eup %6003  ;;  %v641_v54 = vadd.f32 1.0, %v6002_v31  ;;  %6013 = vpow2.f32 %v5193_v46  ;;  %v6869_v55 = vadd.f32 %v6831_v44, %v551_v52 }
 0x1e8   :  { %v640_v56 = vadd.f32 1.0, %v6004_v28  ;;  %6015 = vpow2.f32 %v5192_v47  ;;  %v5195_v57 = vmul.f32 -1.442695, %v6866_v51 }
 0x1e9   :  { %6017 = vrcp.f32 %v641_v54  ;;  %v5194_v41 = vmul.f32 -1.442695, %v6869_v55  ;;  %v5621_v58 = vpop.f32.mrb[16].mxu1 }
 0x1ea   :  { %v6006_v60 = vpop.eup %6005  ;;  %6019 = vrcp.f32 %v640_v56  ;;  %v6874_v38 = vadd.f32 %v5621_v58, %v6831_v44  ;;  %v561_v62 = vpop.f32.mrb[17].mxu1 }
 0x1eb   :  { %v6008_v63 = vpop.eup %6007  ;;  %v643_v50 = vadd.f32 1.0, %v6006_v60  ;;  %6021 = vpow2.f32 %v5195_v57  ;;  %v6877_v0 = vadd.f32 %v6831_v44, %v561_v62 }
 0x1ec   :  { %v642_v1 = vadd.f32 1.0, %v6008_v63  ;;  %6023 = vpow2.f32 %v5194_v41  ;;  %v5197_v53 = vmul.f32 -1.442695, %v6874_v38 }
 0x1ed   :  { %6025 = vrcp.f32 %v643_v50  ;;  %v5196_v2 = vmul.f32 -1.442695, %v6877_v0  ;;  %v5624_v3 = vpop.f32.mrb[18].mxu1 }
 0x1ee   :  { %6027 = vrcp.f32 %v642_v1  ;;  %v6882_v4 = vadd.f32 %v5624_v3, %v6831_v44  ;;  %v571_v6 = vpop.f32.mrb[19].mxu1 }
 0x1ef   :  { %v6010_v9 = vpop.eup %6009  ;;  %6029 = vpow2.f32 %v5197_v53  ;;  %v6885_v10 = vadd.f32 %v6831_v44, %v571_v6 }
 0x1f0   :  { %v6012_v59 = vpop.eup %6011  ;;  %v6888_v61 = vmul.f32 %v6010_v9, %v6834_v14  ;;  %6031 = vpow2.f32 %v5196_v2  ;;  %v5199_v11 = vmul.f32 -1.442695, %v6882_v4 }
 0x1f1   :  { %v6014_v5 = vpop.eup %6013  ;;  %v6892_v12 = vmul.f32 %v6012_v59, %v6837_v16  ;;  %v5198_v8 = vmul.f32 -1.442695, %v6885_v10  ;;  %v5627_v36 = vpop.f32.mrb[20].mxu1 }
 0x1f2   :  { %v6016_v13 = vpop.eup %6015  ;;  %714 = vst.msk [vmem:[#allocation2 + $0x18] sm:$0xff] %vm712_vm2, %v6888_v61  ;;  %v645_v33 = vadd.f32 1.0, %v6014_v5  ;;  %6033 = vpow2.f32 %v5199_v11  ;;  %v6898_v48 = vadd.f32 %v5627_v36, %v6831_v44  ;;  %v581_v7 = vpop.f32.mrb[21].mxu1  ;;  %v6998_v36 = vld [vmem:[%s9229_s1 + $0x50] sm:$0xff] }
 0x1f3   :  { %v6018_v14 = vpop.eup %6017  ;;  %713 = vst.msk [vmem:[#allocation2 + $0x10] sm:$0xff] %vm712_vm2, %v6892_v12  ;;  %v644_v15 = vadd.f32 1.0, %v6016_v13  ;;  %6035 = vpow2.f32 %v5198_v8  ;;  %v6903_v16 = vadd.f32 %v6831_v44, %v581_v7  ;;  %v7003_v13 = vld [vmem:[%s9229_s1 + $0x58] sm:$0xff] }
 0x1f4   :  { %v6020_v17 = vpop.eup %6019  ;;  %v6906_v18 = vmul.f32 %v6018_v14, %v6842_v20  ;;  %6037 = vrcp.f32 %v645_v33  ;;  %v5201_v19 = vmul.f32 -1.442695, %v6898_v48  ;;  %v7015_v14 = vld [vmem:[%s9229_s1 + $0x60] sm:$0xff] }
 0x1f5   :  { %v6022_v21 = vpop.eup %6021  ;;  %v6910_v23 = vmul.f32 %v6020_v17, %v6845_v22  ;;  %6039 = vrcp.f32 %v644_v15  ;;  %v5200_v24 = vmul.f32 -1.442695, %v6903_v16  ;;  %v7020_v15 = vld [vmem:[%s9229_s1 + $0x68] sm:$0xff] }
 0x1f6   :  { %v6024_v26 = vpop.eup %6023  ;;  %716 = vst.msk [vmem:[#allocation2 + $0x28] sm:$0xff] %vm712_vm2, %v6906_v18  ;;  %v647_v44 = vadd.f32 1.0, %v6022_v21  ;;  %6041 = vpow2.f32 %v5201_v19  ;;  %v5798_v17 = vpack.c.bf16 %v7020_v15, %v7015_v14  ;;  %v7036_v21 = vld [vmem:[%s9229_s1 + $0x70] sm:$0xff] }
 0x1f7   :  { %v6026_v25 = vpop.eup %6025  ;;  %715 = vst.msk [vmem:[#allocation2 + $0x20] sm:$0xff] %vm712_vm2, %v6910_v23  ;;  %v646_v20 = vadd.f32 1.0, %v6024_v26  ;;  %6043 = vpow2.f32 %v5200_v24  ;;  %v7041_v24 = vld [vmem:[%s9229_s1 + $0x78] sm:$0xff] }
 0x1f8   :  { %v6028_v30 = vpop.eup %6027  ;;  %v6918_v32 = vmul.f32 %v6026_v25, %v6850_v27  ;;  %6045 = vrcp.f32 %v647_v44  ;;  %v5802_v44 = vpack.c.bf16 %v7041_v24, %v7036_v21 }
 0x1f9   :  { %v6030_v22 = vpop.eup %6029  ;;  %v6921_v34 = vmul.f32 %v6028_v30, %v6853_v29  ;;  %6047 = vrcp.f32 %v646_v20  ;;  %v747_v35 = vld [vmem:[#allocation2 + $0x18] sm:$0xff]  ;;  %v7055_v20 = vld [vmem:[%s9229_s1 + $0x80] sm:$0xff]  ;;  %v7060_v30 = vld [vmem:[%s9229_s1 + $0x88] sm:$0xff] }
 0x1fa   :  { %v6032_v39 = vpop.eup %6031  ;;  %718 = vst.msk [vmem:[#allocation2 + $0x38] sm:$0xff] %vm712_vm2, %v6918_v32  ;;  %978 = vrot.lane.b32.xlu0 %v747_v35, %s6595_s22  ;;  %803 = vrot.lane.b32.xlu1 %v747_v35, %s6594_s19  ;;  %v649_v40 = vadd.f32 1.0, %v6030_v22  ;;  %v746_v45 = vld [vmem:[#allocation2 + $0x10] sm:$0xff] }
 0x1fb   :  { %9267 = vst [vmem:[#allocation3_spill] sm:$0xff] %v6921_v34  ;;  %717 = vst.msk [vmem:[#allocation2 + $0x30] sm:$0xff] %vm712_vm2, %v6921_v34  ;;  %v648_v27 = vadd.f32 1.0, %v6032_v39  ;;  %v761_v57 = vld [vmem:[#allocation2 + $0x9] sm:$0xff]  ;;  %v762_v50 = vld [vmem:[#allocation2 + $0x11] sm:$0xff] }
 0x1fc   :  { %v6034_v42 = vpop.eup %6033  ;;  %6049 = vrcp.f32 %v649_v40  ;;  %v6939_v41 = vld [vmem:[#allocation2 + $0xf] sm:$0xff]  ;;  %v6964_v3 = vld [vmem:[#allocation2 + $0x17] sm:$0xff] }
 0x1fd   :  { %v6036_v29 = vpop.eup %6035  ;;  %6051 = vrcp.f32 %v648_v27  ;;  %v651_v46 = vadd.f32 1.0, %v6034_v42  ;;  %v749_v6 = vld [vmem:[#allocation2 + $0x28] sm:$0xff]  ;;  %v7072_v39 = vld [vmem:[%s9229_s1 + $0x90] sm:$0xff] }
 0x1fe   :  { %v6038_v47 = vpop.eup %6037  ;;  %1123 = vrot.lane.b32.xlu1 %v747_v35, %s6593_s0  ;;  %801 = vrot.lane.b32.xlu0 %v746_v45, %s6594_s19  ;;  %v650_v49 = vadd.f32 1.0, %v6036_v29  ;;  %v748_v11 = vld [vmem:[#allocation2 + $0x20] sm:$0xff]  ;;  %v5806_v35 = vpack.c.bf16 %v7060_v30, %v7055_v20 }
 0x1ff   :  { %v6040_v31 = vpop.eup %6039  ;;  %v6932_v52 = vmul.f32 %v6038_v47, %v6858_v37  ;;  %6053 = vrcp.f32 %v651_v46  ;;  %v763_v8 = vld [vmem:[#allocation2 + $0x19] sm:$0xff]  ;;  %v764_v7 = vld [vmem:[#allocation2 + $0x21] sm:$0xff] }
 0x200   :  { %v6042_v28 = vpop.eup %6041  ;;  %v6935_v54 = vmul.f32 %v6040_v31, %v6861_v43  ;;  %6055 = vrcp.f32 %v650_v49  ;;  %v7028_v19 = vld [vmem:[#allocation2 + $0x1f] sm:$0xff]  ;;  %v7047_v25 = vld [vmem:[#allocation2 + $0x27] sm:$0xff] }
 0x201   :  { %9268 = vst [vmem:[#allocation4_spill] sm:$0xff] %v6932_v52  ;;  %v6044_v56 = vpop.eup %6043  ;;  %720 = vst.msk [vmem:[#allocation2 + $0x48] sm:$0xff] %vm712_vm2, %v6932_v52  ;;  %v653_v58 = vadd.f32 1.0, %v6042_v28  ;;  %v751_v40 = vld [vmem:[#allocation2 + $0x38] sm:$0xff] }
 0x202   :  { %9269 = vst [vmem:[#allocation5_spill] sm:$0xff] %v6935_v54  ;;  %v6046_v60 = vpop.eup %6045  ;;  %719 = vst.msk [vmem:[#allocation2 + $0x40] sm:$0xff] %vm712_vm2, %v6935_v54  ;;  %863 = vrot.lane.b32.xlu1 %v761_v57, %s6596_s23  ;;  %927 = vrot.lane.b32.xlu0 %v6939_v41, %s6597_s24  ;;  %v652_v37 = vadd.f32 1.0, %v6044_v56  ;;  %v750_v27 = vld [vmem:[#allocation2 + $0x30] sm:$0xff] }
 0x203   :  { %v6048_v43 = vpop.eup %6047  ;;  %v6947_v62 = vmul.f32 %v6046_v60, %v6866_v51  ;;  %6057 = vrcp.f32 %v653_v58  ;;  %v765_v42 = vld [vmem:[#allocation2 + $0x29] sm:$0xff]  ;;  %v766_v29 = vld [vmem:[#allocation2 + $0x31] sm:$0xff]  ;;  %v7126_v58 = vpop.permute.xlu1 %1153 }
 0x204   :  { %v6950_v63 = vmul.f32 %v6048_v43, %v6869_v55  ;;  %6059 = vrcp.f32 %v652_v37  ;;  %v7092_v46 = vld [vmem:[#allocation2 + $0x37] sm:$0xff]  ;;  %v800_v60 = vpop.permute.xlu0 %799 }
 0x205   :  { %9270 = vst [vmem:[#allocation6_spill] sm:$0xff] %v6947_v62  ;;  %722 = vst.msk [vmem:[#allocation2 + $0x58] sm:$0xff] %vm712_vm2, %v6947_v62 }
 0x206   :  { %9271 = vst [vmem:[#allocation7_spill] sm:$0xff] %v6950_v63  ;;  %v6050_v1 = vpop.eup %6049  ;;  %721 = vst.msk [vmem:[#allocation2 + $0x50] sm:$0xff] %vm712_vm2, %v6950_v63  ;;  %865 = vrot.lane.b32.xlu1 %v762_v50, %s6596_s23  ;;  %976 = vrot.lane.b32.xlu0 %v746_v45, %s6595_s22  ;;  %v7087_v45 = vld [vmem:[#allocation2 + $0x2f] sm:$0xff] }
 0x207   :  { %v6052_v53 = vpop.eup %6051  ;;  %v6959_v51 = vmul.f32 %v6050_v1, %v6874_v38 }
 0x208   :  { %v6962_v55 = vmul.f32 %v6052_v53, %v6877_v0  ;;  %v753_v47 = vld [vmem:[#allocation2 + $0x48] sm:$0xff] }
 0x209   :  { %9272 = vst [vmem:[#allocation8_spill] sm:$0xff] %v6959_v51  ;;  %v6054_v2 = vpop.eup %6053  ;;  %724 = vst.msk [vmem:[#allocation2 + $0x68] sm:$0xff] %vm712_vm2, %v6959_v51  ;;  %v752_v49 = vld [vmem:[#allocation2 + $0x40] sm:$0xff] }
 0x20a   :  { %9273 = vst [vmem:[#allocation9_spill] sm:$0xff] %v6962_v55  ;;  %v6056_v9 = vpop.eup %6055  ;;  %929 = vrot.lane.b32.xlu1 %v6964_v3, %s6597_s24  ;;  %807 = vrot.lane.b32.xlu0 %v749_v6, %s6594_s19  ;;  %723 = vst.msk [vmem:[#allocation2 + $0x60] sm:$0xff] %vm712_vm2, %v6962_v55  ;;  %v6974_v38 = vmul.f32 %v6054_v2, %v6882_v4  ;;  %v767_v31 = vld [vmem:[#allocation2 + $0x39] sm:$0xff]  ;;  %v768_v28 = vld [vmem:[#allocation2 + $0x41] sm:$0xff] }
 0x20b   :  { %v6977_v0 = vmul.f32 %v6056_v9, %v6885_v10  ;;  %v7111_v56 = vld [vmem:[#allocation2 + $0x3f] sm:$0xff]  ;;  %v7116_v57 = vld [vmem:[#allocation2 + $0x47] sm:$0xff] }
 0x20c   :  { %9274 = vst [vmem:[#allocation10_spill] sm:$0xff] %v6974_v38  ;;  %726 = vst.msk [vmem:[#allocation2 + $0x78] sm:$0xff] %vm712_vm2, %v6974_v38  ;;  %v755_v37 = vld [vmem:[#allocation2 + $0x58] sm:$0xff]  ;;  %v7195_v55 = vld [vmem:[%s9231_s2] sm:$0xff] }
 0x20d   :  { %9275 = vst [vmem:[#allocation11_spill] sm:$0xff] %v6977_v0  ;;  %v6058_v59 = vpop.eup %6057  ;;  %725 = vst.msk [vmem:[#allocation2 + $0x70] sm:$0xff] %vm712_vm2, %v6977_v0  ;;  %v754_v1 = vld [vmem:[#allocation2 + $0x50] sm:$0xff]  ;;  %vm41_vm8 = vcmp.ne.f32.partialorder %v7195_v55, 0.0 }
 0x20e   :  { %v6060_v5 = vpop.eup %6059  ;;  %1025 = vrot.lane.b32.xlu1 %v762_v50, %s6598_s25  ;;  %805 = vrot.lane.b32.xlu0 %v748_v11, %s6594_s19  ;;  %v6986_v4 = vmul.f32 %v6058_v59, %v6898_v48  ;;  %v5794_v48 = vpack.c.bf16 %v7003_v13, %v6998_v36 }
 0x20f   :  { %v6989_v10 = vmul.f32 %v6060_v5, %v6903_v16 }
 0x210   :  { %9276 = vst [vmem:[#allocation12_spill] sm:$0xff] %v6986_v4  ;;  %728 = vst.msk [vmem:[#allocation2 + $0x88] sm:$0xff] %vm712_vm2, %v6986_v4  ;;  %5795 = vmatprep.subr.bf16.mxu1 %v5794_v48 }
 0x211   :  { %9277 = vst [vmem:[#allocation13_spill] sm:$0xff] %v6989_v10  ;;  %727 = vst.msk [vmem:[#allocation2 + $0x80] sm:$0xff] %vm712_vm2, %v6989_v10  ;;  %5797 = vmatpush3.bf16.msra.mxu1 %v5794_v48  ;;  %v7143_v48 = vld [vmem:[#allocation2 + $0x4f] sm:$0xff]  ;;  %v771_v16 = vld [vmem:[#allocation2 + $0x59] sm:$0xff] }
 0x212   :  { %1074 = vrot.lane.b32.xlu1 %v6964_v3, %s6599_s30  ;;  %1027 = vrot.lane.b32.xlu0 %v763_v8, %s6598_s25  ;;  %v772_v4 = vld [vmem:[#allocation2 + $0x61] sm:$0xff] }
 0x213   :  { %5799 = vmatprep.subr.bf16.mxu1 %v5798_v17  ;;  %v7199_v51 = vld [vmem:[#allocation2 + $0x5f] sm:$0xff] }
 0x215   :  { %5801 = vmatpush3.bf16.msra.mxu1 %v5798_v17 }
 0x216   :  { %982 = vrot.lane.b32.xlu1 %v749_v6, %s6595_s22  ;;  %869 = vrot.lane.b32.xlu0 %v764_v7, %s6596_s23 }
 0x217   :  { %5803 = vmatprep.subr.bf16.mxu1 %v5802_v44 }
 0x218   :  { %v775_v63 = vld [vmem:[#allocation2 + $0x79] sm:$0xff]  ;;  %v776_v62 = vld [vmem:[#allocation2 + $0x81] sm:$0xff] }
 0x219   :  { %5805 = vmatpush3.bf16.msra.mxu1 %v5802_v44  ;;  %v7150_v44 = vld [vmem:[#allocation2 + $0x57] sm:$0xff] }
 0x21a   :  { %1127 = vrot.lane.b32.xlu1 %v749_v6, %s6593_s0  ;;  %1076 = vrot.lane.b32.xlu0 %v7028_v19, %s6599_s30  ;;  %v769_v6 = vld [vmem:[#allocation2 + $0x49] sm:$0xff] }
 0x21b   :  { %5807 = vmatprep.subr.bf16.mxu1 %v5806_v35 }
 0x21d   :  { %5809 = vmatpush3.bf16.msra.mxu1 %v5806_v35 }
 0x21e   :  { %867 = vrot.lane.b32.xlu1 %v763_v8, %s6596_s23  ;;  %933 = vrot.lane.b32.xlu0 %v7047_v25, %s6597_s24 }
 0x21f   :  { %5644 = vmatprep.subr.mxu1 %v7072_v39 }
 0x221   :  { %5645 = vmatpush3.msra.mxu1 %v7072_v39 }
 0x222   :  { %931 = vrot.lane.b32.xlu1 %v7028_v19, %s6597_s24  ;;  %1125 = vrot.lane.b32.xlu0 %v748_v11, %s6593_s0 }
 0x226   :  { %980 = vrot.lane.b32.xlu1 %v748_v11, %s6595_s22  ;;  %1029 = vrot.lane.b32.xlu0 %v764_v7, %s6598_s25  ;;  %v770_v11 = vld [vmem:[#allocation2 + $0x51] sm:$0xff] }
 0x22a   :  { %1172 = vrot.lane.b32.xlu1 %v763_v8, %s6600_s26  ;;  %811 = vrot.lane.b32.xlu0 %v751_v40, %s6594_s19 }
 0x22e   :  { %1174 = vrot.lane.b32.xlu1 %v764_v7, %s6600_s26  ;;  %809 = vrot.lane.b32.xlu0 %v750_v27, %s6594_s19 }
 0x232   :  { %1078 = vrot.lane.b32.xlu1 %v7047_v25, %s6599_s30  ;;  %1031 = vrot.lane.b32.xlu0 %v765_v42, %s6598_s25 }
 0x236   :  { %986 = vrot.lane.b32.xlu1 %v751_v40, %s6595_s22  ;;  %873 = vrot.lane.b32.xlu0 %v766_v29, %s6596_s23 }
 0x23a   :  { %1131 = vrot.lane.b32.xlu1 %v751_v40, %s6593_s0  ;;  %1080 = vrot.lane.b32.xlu0 %v7087_v45, %s6599_s30 }
 0x23e   :  { %871 = vrot.lane.b32.xlu1 %v765_v42, %s6596_s23  ;;  %937 = vrot.lane.b32.xlu0 %v7092_v46, %s6597_s24 }
 0x242   :  { %935 = vrot.lane.b32.xlu1 %v7087_v45, %s6597_s24  ;;  %1129 = vrot.lane.b32.xlu0 %v750_v27, %s6593_s0 }
 0x246   :  { %984 = vrot.lane.b32.xlu1 %v750_v27, %s6595_s22  ;;  %1033 = vrot.lane.b32.xlu0 %v766_v29, %s6598_s25 }
 0x24a   :  { %1176 = vrot.lane.b32.xlu1 %v765_v42, %s6600_s26  ;;  %815 = vrot.lane.b32.xlu0 %v753_v47, %s6594_s19 }
 0x24e   :  { %1178 = vrot.lane.b32.xlu1 %v766_v29, %s6600_s26  ;;  %813 = vrot.lane.b32.xlu0 %v752_v49, %s6594_s19 }
 0x252   :  { %1082 = vrot.lane.b32.xlu1 %v7092_v46, %s6599_s30  ;;  %1035 = vrot.lane.b32.xlu0 %v767_v31, %s6598_s25 }
 0x256   :  { %990 = vrot.lane.b32.xlu1 %v753_v47, %s6595_s22  ;;  %877 = vrot.lane.b32.xlu0 %v768_v28, %s6596_s23 }
 0x25a   :  { %1135 = vrot.lane.b32.xlu1 %v753_v47, %s6593_s0  ;;  %1084 = vrot.lane.b32.xlu0 %v7111_v56, %s6599_s30 }
 0x25e   :  { %875 = vrot.lane.b32.xlu1 %v767_v31, %s6596_s23  ;;  %941 = vrot.lane.b32.xlu0 %v7116_v57, %s6597_s24 }
 0x262   :  { %939 = vrot.lane.b32.xlu1 %v7111_v56, %s6597_s24  ;;  %1133 = vrot.lane.b32.xlu0 %v752_v49, %s6593_s0 }
 0x266   :  { %988 = vrot.lane.b32.xlu1 %v752_v49, %s6595_s22  ;;  %1037 = vrot.lane.b32.xlu0 %v768_v28, %s6598_s25  ;;  %v757_v49 = vld [vmem:[#allocation2 + $0x68] sm:$0xff] }
 0x26a   :  { %1180 = vrot.lane.b32.xlu1 %v767_v31, %s6600_s26  ;;  %819 = vrot.lane.b32.xlu0 %v755_v37, %s6594_s19 }
 0x26c   :  { %v7130_v43 = vpop.permute.xlu0 %978  ;;  %v7132_v50 = vpop.permute.xlu1 %803 }
 0x26e   :  { %1182 = vrot.lane.b32.xlu1 %v768_v28, %s6600_s26  ;;  %817 = vrot.lane.b32.xlu0 %v754_v1, %s6594_s19 }
 0x270   :  { %v7136_v53 = vpop.permute.xlu1 %1123  ;;  %v802_v2 = vpop.permute.xlu0 %801 }
 0x272   :  { %1086 = vrot.lane.b32.xlu1 %v7116_v57, %s6599_s30  ;;  %1039 = vrot.lane.b32.xlu0 %v769_v6, %s6598_s25 }
 0x274   :  { %v864_v9 = vpop.permute.xlu1 %863  ;;  %v928_v59 = vpop.permute.xlu0 %927 }
 0x276   :  { %994 = vrot.lane.b32.xlu1 %v755_v37, %s6595_s22  ;;  %881 = vrot.lane.b32.xlu0 %v770_v11, %s6596_s23 }
 0x278   :  { %v866_v5 = vpop.permute.xlu1 %865  ;;  %v977_v8 = vpop.permute.xlu0 %976 }
 0x27a   :  { %1139 = vrot.lane.b32.xlu1 %v755_v37, %s6593_s0  ;;  %1088 = vrot.lane.b32.xlu0 %v7143_v48, %s6599_s30  ;;  %v756_v37 = vld [vmem:[#allocation2 + $0x60] sm:$0xff] }
 0x27c   :  { %v930_v7 = vpop.permute.xlu1 %929  ;;  %v7148_v17 = vpop.permute.xlu0 %807 }
 0x27e   :  { %879 = vrot.lane.b32.xlu1 %v769_v6, %s6596_s23  ;;  %945 = vrot.lane.b32.xlu0 %v7150_v44, %s6597_s24 }
 0x280   :  { %v1026_v35 = vpop.permute.xlu1 %1025  ;;  %v7155_v40 = vpop.permute.xlu0 %805 }
 0x282   :  { %943 = vrot.lane.b32.xlu1 %v7143_v48, %s6597_s24  ;;  %1137 = vrot.lane.b32.xlu0 %v754_v1, %s6593_s0 }
 0x284   :  { %v1075_v27 = vpop.permute.xlu1 %1074  ;;  %v1028_v42 = vpop.permute.xlu0 %1027 }
 0x286   :  { %992 = vrot.lane.b32.xlu1 %v754_v1, %s6595_s22  ;;  %1041 = vrot.lane.b32.xlu0 %v770_v11, %s6598_s25  ;;  %v729_v1 = vld [vmem:[#allocation2 + $0x7] sm:$0xff] }
 0x287   :  { %v1220_v33 = vsel %vm712_vm2, %v729_v1, %v800_v60  ;;  %v1221_v1 = vsel %vm712_vm2, %v6939_v41, %v802_v2 }
 0x288   :  { %v7162_v29 = vpop.permute.xlu1 %982  ;;  %v7164_v47 = vpop.permute.xlu0 %869 }
 0x28a   :  { %1184 = vrot.lane.b32.xlu1 %v769_v6, %s6600_s26  ;;  %823 = vrot.lane.b32.xlu0 %v757_v49, %s6594_s19  ;;  %v1236_v6 = vsel %vm396_vm1, %v1220_v33, %v864_v9 }
 0x28b   :  { %v1253_v0 = vsel %vm1252_vm3, %v1236_v6, %v928_v59  ;;  %v1237_v59 = vsel %vm396_vm1, %v1221_v1, %v866_v5 }
 0x28c   :  { %v7168_v31 = vpop.permute.xlu1 %1127  ;;  %v1077_v28 = vpop.permute.xlu0 %1076  ;;  %v1269_v60 = vsel %vm83_vm0, %v1253_v0, %v977_v8  ;;  %v1254_v0 = vsel %vm1252_vm3, %v1237_v59, %v930_v7  ;;  %v7213_v8 = vld [vmem:[%s9231_s2 + $0x8] sm:$0xff] }
 0x28d   :  { %v1286_v33 = vsel %vm1285_vm4, %v1269_v60, %v1026_v35  ;;  %v1270_v7 = vsel %vm83_vm0, %v1254_v0, %v7130_v43  ;;  %vm42_vm10 = vcmp.ne.f32.partialorder %v7213_v8, 0.0 }
 0x28e   :  { %1186 = vrot.lane.b32.xlu1 %v770_v11, %s6600_s26  ;;  %821 = vrot.lane.b32.xlu0 %v756_v37, %s6594_s19  ;;  %v1303_v6 = vsel %vm1302_vm5, %v1286_v33, %v1075_v27  ;;  %v7218_v27 = vld [vmem:[#allocation2 + $0x67] sm:$0xff] }
 0x28f   :  { %v1320_v2 = vsel %vm1319_vm6, %v1303_v6, %v7136_v53 }
 0x290   :  { %v7172_v22 = vpop.permute.xlu1 %867  ;;  %v7174_v26 = vpop.permute.xlu0 %933 }
 0x292   :  { %1090 = vrot.lane.b32.xlu1 %v7150_v44, %s6599_s30  ;;  %1043 = vrot.lane.b32.xlu0 %v771_v16, %s6598_s25 }
 0x294   :  { %v7181_v10 = vpop.permute.xlu1 %931  ;;  %v1126_v11 = vpop.permute.xlu0 %1125 }
 0x296   :  { %998 = vrot.lane.b32.xlu1 %v757_v49, %s6595_s22  ;;  %885 = vrot.lane.b32.xlu0 %v772_v4, %s6596_s23 }
 0x298   :  { %v981_v9 = vpop.permute.xlu1 %980  ;;  %v7190_v38 = vpop.permute.xlu0 %1029 }
 0x29a   :  { %1143 = vrot.lane.b32.xlu1 %v757_v49, %s6593_s0  ;;  %1092 = vrot.lane.b32.xlu0 %v7199_v51, %s6599_s30  ;;  %v1287_v49 = vsel %vm1285_vm4, %v1270_v7, %v1028_v42 }
 0x29b   :  { %v1304_v60 = vsel %vm1302_vm5, %v1287_v49, %v1077_v28 }
 0x29c   :  { %v1173_v41 = vpop.permute.xlu1 %1172  ;;  %v7208_v5 = vpop.permute.xlu0 %811  ;;  %v1321_v43 = vsel %vm1319_vm6, %v1304_v60, %v1126_v11  ;;  %v1222_v60 = vsel %vm712_vm2, %v6964_v3, %v7132_v50  ;;  %v1223_v3 = vsel %vm712_vm2, %v7028_v19, %v7155_v40 }
 0x29d   :  { %v1337_v35 = vsel %vm1336_vm7, %v1320_v2, %v1173_v41  ;;  %v759_v41 = vld [vmem:[#allocation2 + $0x78] sm:$0xff] }
 0x29e   :  { %v1353_v53 = vsel %vm41_vm8, %v1337_v35, 0.0  ;;  %883 = vrot.lane.b32.xlu1 %v771_v16, %s6596_s23  ;;  %949 = vrot.lane.b32.xlu0 %v7218_v27, %s6597_s24  ;;  %v758_v35 = vld [vmem:[#allocation2 + $0x70] sm:$0xff] }
 0x29f   :  { %5646 = vmatprep.mubr.msk.f32.mxu1 %vm1373_vm9, %v1353_v53  ;;  %v773_v53 = vld [vmem:[#allocation2 + $0x69] sm:$0xff] }
 0x2a0   :  { %v1175_v1 = vpop.permute.xlu1 %1174  ;;  %v7230_v33 = vpop.permute.xlu0 %809 }
 0x2a1   :  { %v1338_v42 = vsel %vm1336_vm7, %v1321_v43, %v1175_v1 }
 0x2a2   :  { %v1354_v59 = vsel %vm42_vm10, %v1338_v42, 0.0  ;;  %947 = vrot.lane.b32.xlu1 %v7199_v51, %s6597_s24  ;;  %1141 = vrot.lane.b32.xlu0 %v756_v37, %s6593_s0 }
 0x2a3   :  { %5647 = vmatmul.mubr.msk.f32.vlgmr.msra.gmra.mrb[22].mxu1 %vm1373_vm9, %v1354_v59  ;;  %v774_v59 = vld [vmem:[#allocation2 + $0x71] sm:$0xff] }
 0x2a4   :  { %v1079_v28 = vpop.permute.xlu1 %1078  ;;  %v1032_v6 = vpop.permute.xlu0 %1031 }
 0x2a6   :  { %996 = vrot.lane.b32.xlu1 %v756_v37, %s6595_s22  ;;  %1045 = vrot.lane.b32.xlu0 %v772_v4, %s6598_s25 }
 0x2a8   :  { %v7241_v11 = vpop.permute.xlu1 %986  ;;  %v7243_v0 = vpop.permute.xlu0 %873 }
 0x2aa   :  { %1188 = vrot.lane.b32.xlu1 %v771_v16, %s6600_s26  ;;  %827 = vrot.lane.b32.xlu0 %v759_v41, %s6594_s19  ;;  %v1238_v16 = vsel %vm396_vm1, %v1222_v60, %v7172_v22 }
 0x2ac   :  { %v7247_v2 = vpop.permute.xlu1 %1131  ;;  %v1081_v7 = vpop.permute.xlu0 %1080 }
 0x2ae   :  { %1190 = vrot.lane.b32.xlu1 %v772_v4, %s6600_s26  ;;  %825 = vrot.lane.b32.xlu0 %v758_v35, %s6594_s19  ;;  %v1255_v4 = vsel %vm1252_vm3, %v1238_v16, %v7181_v10  ;;  %v7276_v10 = vld [vmem:[%s9231_s2 + $0x10] sm:$0xff] }
 0x2af   :  { %v1271_v42 = vsel %vm83_vm0, %v1255_v4, %v981_v9  ;;  %v1239_v9 = vsel %vm396_vm1, %v1223_v3, %v7164_v47  ;;  %v7281_v4 = vld [vmem:[#allocation2 + $0x6f] sm:$0xff]  ;;  %vm43_vm11 = vcmp.ne.f32.partialorder %v7276_v10, 0.0  ;;  %v7296_v47 = vld [vmem:[%s9231_s2 + $0x18] sm:$0xff] }
 0x2b0   :  { %v7251_v37 = vpop.permute.xlu1 %871  ;;  %v7253_v49 = vpop.permute.xlu0 %937  ;;  %v1288_v50 = vsel %vm1285_vm4, %v1271_v42, %v7190_v38  ;;  %v1256_v19 = vsel %vm1252_vm3, %v1239_v9, %v7174_v26  ;;  %vm44_vm12 = vcmp.ne.f32.partialorder %v7296_v47, 0.0 }
 0x2b1   :  { %v1305_v16 = vsel %vm1302_vm5, %v1288_v50, %v1079_v28  ;;  %v1272_v26 = vsel %vm83_vm0, %v1256_v19, %v7162_v29 }
 0x2b2   :  { %1094 = vrot.lane.b32.xlu1 %v7218_v27, %s6599_s30  ;;  %1047 = vrot.lane.b32.xlu0 %v773_v53, %s6598_s25  ;;  %v1322_v40 = vsel %vm1319_vm6, %v1305_v16, %v7168_v31  ;;  %v1289_v3 = vsel %vm1285_vm4, %v1272_v26, %v1032_v6  ;;  %v778_v26 = vld [vmem:[#allocation2 + $0x88] sm:$0xff] }
 0x2b3   :  { %v1306_v31 = vsel %vm1302_vm5, %v1289_v3, %v1081_v7 }
 0x2b4   :  { %v936_v43 = vpop.permute.xlu1 %935  ;;  %v1130_v1 = vpop.permute.xlu0 %1129 }
 0x2b5   :  { %v1323_v29 = vsel %vm1319_vm6, %v1306_v31, %v1130_v1  ;;  %v760_v31 = vld [vmem:[#allocation2 + $0x80] sm:$0xff] }
 0x2b6   :  { %1002 = vrot.lane.b32.xlu1 %v759_v41, %s6595_s22  ;;  %889 = vrot.lane.b32.xlu0 %v774_v59, %s6596_s23 }
 0x2b8   :  { %v985_v22 = vpop.permute.xlu1 %984  ;;  %v1034_v60 = vpop.permute.xlu0 %1033 }
 0x2ba   :  { %1147 = vrot.lane.b32.xlu1 %v759_v41, %s6593_s0  ;;  %1096 = vrot.lane.b32.xlu0 %v7281_v4, %s6599_s30  ;;  %v7301_v41 = vld [vmem:[#allocation2 + $0x77] sm:$0xff] }
 0x2bc   :  { %v1177_v38 = vpop.permute.xlu1 %1176  ;;  %v7291_v42 = vpop.permute.xlu0 %815 }
 0x2bd   :  { %v1339_v28 = vsel %vm1336_vm7, %v1322_v40, %v1177_v38 }
 0x2be   :  { %v1355_v50 = vsel %vm43_vm11, %v1339_v28, 0.0  ;;  %887 = vrot.lane.b32.xlu1 %v773_v53, %s6596_s23  ;;  %953 = vrot.lane.b32.xlu0 %v7301_v41, %s6597_s24 }
 0x2bf   :  { %5649 = vmatprep.mubr.msk.f32.mxu1 %vm1373_vm9, %v1355_v50 }
 0x2c0   :  { %v1179_v9 = vpop.permute.xlu1 %1178  ;;  %v7313_v16 = vpop.permute.xlu0 %813 }
 0x2c1   :  { %v1340_v6 = vsel %vm1336_vm7, %v1323_v29, %v1179_v9  ;;  %v1224_v29 = vsel %vm712_vm2, %v7047_v25, %v7148_v17  ;;  %v1225_v25 = vsel %vm712_vm2, %v7087_v45, %v7230_v33 }
 0x2c2   :  { %v1356_v19 = vsel %vm44_vm12, %v1340_v6, 0.0  ;;  %951 = vrot.lane.b32.xlu1 %v7281_v4, %s6597_s24  ;;  %1145 = vrot.lane.b32.xlu0 %v758_v35, %s6593_s0 }
 0x2c3   :  { %5650 = vmatmul.mubr.msk.f32.gmra.mrb[24].mxu1 %vm1373_vm9, %v1356_v19 }
 0x2c4   :  { %v1083_v7 = vpop.permute.xlu1 %1082  ;;  %v1036_v38 = vpop.permute.xlu0 %1035 }
 0x2c6   :  { %1000 = vrot.lane.b32.xlu1 %v758_v35, %s6595_s22  ;;  %1049 = vrot.lane.b32.xlu0 %v774_v59, %s6598_s25 }
 0x2c8   :  { %v7324_v1 = vpop.permute.xlu1 %990  ;;  %v7326_v40 = vpop.permute.xlu0 %877 }
 0x2ca   :  { %1192 = vrot.lane.b32.xlu1 %v773_v53, %s6600_s26  ;;  %1006 = vrot.lane.b32.xlu0 %v778_v26, %s6595_s22  ;;  %v1240_v53 = vsel %vm396_vm1, %v1224_v29, %v7251_v37 }
 0x2cc   :  { %v7330_v28 = vpop.permute.xlu1 %1135  ;;  %v1085_v3 = vpop.permute.xlu0 %1084 }
 0x2ce   :  { %1194 = vrot.lane.b32.xlu1 %v774_v59, %s6600_s26  ;;  %1151 = vrot.lane.b32.xlu0 %v778_v26, %s6593_s0  ;;  %v1257_v59 = vsel %vm1252_vm3, %v1240_v53, %v936_v43  ;;  %v779_v26 = vld [vmem:[#allocation2 + $0x89] sm:$0xff]  ;;  %v7359_v43 = vld [vmem:[%s9231_s2 + $0x20] sm:$0xff] }
 0x2cf   :  { %v1273_v19 = vsel %vm83_vm0, %v1257_v59, %v985_v22  ;;  %v1241_v22 = vsel %vm396_vm1, %v1225_v25, %v7243_v0  ;;  %v780_v59 = vld [vmem:[#allocation2 + $0x8f] sm:$0xff]  ;;  %vm45_vm13 = vcmp.ne.f32.partialorder %v7359_v43, 0.0 }
 0x2d0   :  { %v7334_v50 = vpop.permute.xlu1 %875  ;;  %v7336_v35 = vpop.permute.xlu0 %941  ;;  %v1290_v17 = vsel %vm1285_vm4, %v1273_v19, %v1034_v60  ;;  %v1258_v54 = vsel %vm1252_vm3, %v1241_v22, %v7253_v49  ;;  %v7376_v0 = vld [vmem:[%s9231_s2 + $0x28] sm:$0xff]  ;;  %v7381_v19 = vld [vmem:[#allocation2 + $0x7f] sm:$0xff] }
 0x2d1   :  { %v1307_v53 = vsel %vm1302_vm5, %v1290_v17, %v1083_v7  ;;  %v1274_v49 = vsel %vm83_vm0, %v1258_v54, %v7241_v11  ;;  %vm9254_vm14 = vcmp.ne.f32.partialorder %v7376_v0, 0.0 }
 0x2d2   :  { %1098 = vrot.lane.b32.xlu1 %v7301_v41, %s6599_s30  ;;  %829 = vrot.lane.b32.xlu0 %v760_v31, %s6594_s19  ;;  %v1324_v33 = vsel %vm1319_vm6, %v1307_v53, %v7247_v2  ;;  %v1291_v25 = vsel %vm1285_vm4, %v1274_v49, %v1036_v38  ;;  %v777_v53 = vld [vmem:[#allocation2 + $0x87] sm:$0xff] }
 0x2d3   :  { %v1308_v2 = vsel %vm1302_vm5, %v1291_v25, %v1085_v3  ;;  %v782_v25 = vld [vmem:[#allocation2 + $0x91] sm:$0xff] }
 0x2d4   :  { %v7347_v9 = vpop.permute.xlu1 %939  ;;  %v1134_v6 = vpop.permute.xlu0 %1133 }
 0x2d5   :  { %v1325_v54 = vsel %vm1319_vm6, %v1308_v2, %v1134_v6 }
 0x2d6   :  { %1055 = vrot.lane.b32.xlu1 %v779_v26, %s6598_s25  ;;  %1051 = vrot.lane.b32.xlu0 %v775_v63, %s6598_s25 }
 0x2d8   :  { %v989_v37 = vpop.permute.xlu1 %988  ;;  %v1038_v29 = vpop.permute.xlu0 %1037 }
 0x2da   :  { %1104 = vrot.lane.b32.xlu1 %v780_v59, %s6599_s30  ;;  %893 = vrot.lane.b32.xlu0 %v776_v62, %s6596_s23 }
 0x2dc   :  { %v1181_v45 = vpop.permute.xlu1 %1180  ;;  %v7371_v60 = vpop.permute.xlu0 %819 }
 0x2dd   :  { %v1341_v7 = vsel %vm1336_vm7, %v1324_v33, %v1181_v45 }
 0x2de   :  { %v1357_v17 = vsel %vm45_vm13, %v1341_v7, 0.0  ;;  %891 = vrot.lane.b32.xlu1 %v775_v63, %s6596_s23  ;;  %1100 = vrot.lane.b32.xlu0 %v7381_v19, %s6599_s30 }
 0x2df   :  { %5652 = vmatprep.mubr.msk.f32.mxu1 %vm1373_vm9, %v1357_v17 }
 0x2e0   :  { %v1183_v11 = vpop.permute.xlu1 %1182  ;;  %v7393_v22 = vpop.permute.xlu0 %817 }
 0x2e1   :  { %v1342_v38 = vsel %vm1336_vm7, %v1325_v54, %v1183_v11 }
 0x2e2   :  { %v1358_v59 = vsel %vm9254_vm14, %v1342_v38, 0.0  ;;  %955 = vrot.lane.b32.xlu1 %v7381_v19, %s6597_s24  ;;  %957 = vrot.lane.b32.xlu0 %v777_v53, %s6597_s24 }
 0x2e3   :  { %5653 = vmatmul.mubr.msk.f32.gmra.mrb[26].mxu1 %vm1373_vm9, %v1358_v59 }
 0x2e4   :  { %v1087_v3 = vpop.permute.xlu1 %1086  ;;  %v1040_v45 = vpop.permute.xlu0 %1039 }
 0x2e6   :  { %1004 = vrot.lane.b32.xlu1 %v760_v31, %s6595_s22  ;;  %1149 = vrot.lane.b32.xlu0 %v760_v31, %s6593_s0  ;;  %v1226_v31 = vsel %vm712_vm2, %v7092_v46, %v7208_v5 }
 0x2e8   :  { %v7404_v6 = vpop.permute.xlu1 %994  ;;  %v7406_v33 = vpop.permute.xlu0 %881 }
 0x2ea   :  { %1196 = vrot.lane.b32.xlu1 %v775_v63, %s6600_s26  ;;  %1198 = vrot.lane.b32.xlu0 %v776_v62, %s6600_s26  ;;  %v1242_v63 = vsel %vm396_vm1, %v1226_v31, %v7334_v50 }
 0x2ec   :  { %v7410_v49 = vpop.permute.xlu1 %1139  ;;  %v1089_v7 = vpop.permute.xlu0 %1088 }
 0x2ee   :  { %1053 = vrot.lane.b32.xlu1 %v776_v62, %s6598_s25  ;;  %1102 = vrot.lane.b32.xlu0 %v777_v53, %s6599_s30  ;;  %v1259_v62 = vsel %vm1252_vm3, %v1242_v63, %v7347_v9  ;;  %v1227_v53 = vsel %vm712_vm2, %v7111_v56, %v7313_v16 }
 0x2ef   :  { %v1275_v38 = vsel %vm83_vm0, %v1259_v62, %v989_v37  ;;  %v1243_v50 = vsel %vm396_vm1, %v1227_v53, %v7326_v40 }
 0x2f0   :  { %v880_v17 = vpop.permute.xlu1 %879  ;;  %v7414_v2 = vpop.permute.xlu0 %945  ;;  %v1292_v46 = vsel %vm1285_vm4, %v1275_v38, %v1038_v29  ;;  %v1260_v37 = vsel %vm1252_vm3, %v1243_v50, %v7336_v35 }
 0x2f1   :  { %v1309_v9 = vsel %vm1302_vm5, %v1292_v46, %v1087_v3  ;;  %v1276_v40 = vsel %vm83_vm0, %v1260_v37, %v7324_v1 }
 0x2f2   :  { %1202 = vrot.lane.b32.xlu1 %v782_v25, %s6600_s26  ;;  %1200 = vrot.lane.b32.xlu0 %v779_v26, %s6600_s26  ;;  %v7433_v26 = vld [vmem:[%s9231_s2 + $0x30] sm:$0xff]  ;;  %v1326_v16 = vsel %vm1319_vm6, %v1309_v9, %v7330_v28  ;;  %v7448_v25 = vld [vmem:[%s9231_s2 + $0x38] sm:$0xff]  ;;  %v1293_v35 = vsel %vm1285_vm4, %v1276_v40, %v1040_v45 }
 0x2f3   :  { %vm9256_vm15 = vcmp.ne.f32.partialorder %v7433_v26, 0.0  ;;  %v1310_v63 = vsel %vm1302_vm5, %v1293_v35, %v1089_v7  ;;  %vm9255_vm14 = vcmp.ne.f32.partialorder %v7448_v25, 0.0  ;;  %v1228_v35 = vsel %vm712_vm2, %v7116_v57, %v7291_v42 }
 0x2f4   :  { %v944_v54 = vpop.permute.xlu1 %943  ;;  %v1138_v11 = vpop.permute.xlu0 %1137 }
 0x2f5   :  { %v1327_v28 = vsel %vm1319_vm6, %v1310_v63, %v1138_v11  ;;  %v9278_v11 = vpack.i.bf16 %v7003_v13, %v6998_v36 }
 0x2f7   :  { %5877 = vrot.lane.b32.xlu0 %v9278_v11, %s6601_s21 }
 0x2f8   :  { %v993_v5 = vpop.permute.xlu1 %992  ;;  %v1042_v59 = vpop.permute.xlu0 %1041 }
 0x2fc   :  { %v1185_v56 = vpop.permute.xlu1 %1184  ;;  %v7443_v29 = vpop.permute.xlu0 %823 }
 0x2fd   :  { %v1343_v3 = vsel %vm1336_vm7, %v1326_v16, %v1185_v56  ;;  %v9279_v56 = vpack.i.bf16 %v7020_v15, %v7015_v14  ;;  %v9281_v15 = vpack.i.bf16 %v7060_v30, %v7055_v20 }
 0x2fe   :  { %v1359_v31 = vsel %vm9256_vm15, %v1343_v3, 0.0  ;;  %v9280_v3 = vpack.i.bf16 %v7041_v24, %v7036_v21  ;;  %v1229_v21 = vsel %vm712_vm2, %v7143_v48, %v7393_v22 }
 0x2ff   :  { %5655 = vmatprep.mubr.msk.f32.mxu1 %vm1373_vm9, %v1359_v31  ;;  %5882 = vrot.lane.b32.xlu1 %v9279_v56, %s6601_s21  ;;  %v1244_v31 = vsel %vm396_vm1, %v1228_v35, %v880_v17  ;;  %v7501_v17 = vld [vmem:[%s9231_s2 + $0x40] sm:$0xff] }
 0x300   :  { %v1187_v62 = vpop.permute.xlu1 %1186  ;;  %v7460_v38 = vpop.permute.xlu0 %821  ;;  %5887 = vrot.lane.b32.xlu0 %v9280_v3, %s6601_s21  ;;  %v1261_v36 = vsel %vm1252_vm3, %v1244_v31, %v944_v54  ;;  %v1245_v54 = vsel %vm396_vm1, %v1229_v21, %v7406_v33  ;;  %v7518_v33 = vld [vmem:[%s9231_s2 + $0x48] sm:$0xff] }
 0x301   :  { %v1344_v1 = vsel %vm1336_vm7, %v1327_v28, %v1187_v62  ;;  %v1277_v14 = vsel %vm83_vm0, %v1261_v36, %v993_v5  ;;  %v1262_v20 = vsel %vm1252_vm3, %v1245_v54, %v7414_v2  ;;  %v1747_v28 = vld [vmem:[#allocation2 + $0x90] sm:$0xff]  ;;  %vm9257_vm15 = vcmp.ne.f32.partialorder %v7518_v33, 0.0 }
 0x302   :  { %v1360_v53 = vsel %vm9255_vm14, %v1344_v1, 0.0  ;;  %v1294_v24 = vsel %vm1285_vm4, %v1277_v14, %v1042_v59  ;;  %vm9258_vm14 = vcmp.ne.f32.partialorder %v7501_v17, 0.0  ;;  %v1711_v59 = vld [vmem:[#allocation2 + $0x8] sm:$0xff] }
 0x303   :  { %5656 = vmatmul.mubr.msk.f32.gmra.mrb[28].mxu1 %vm1373_vm9, %v1360_v53  ;;  %1765 = vrot.lane.b32.xlu1 %v1711_v59, %s6594_s19 }
 0x304   :  { %v1091_v45 = vpop.permute.xlu1 %1090  ;;  %v1044_v46 = vpop.permute.xlu0 %1043  ;;  %5892 = vrot.lane.b32.xlu0 %v9281_v15, %s6601_s21 }
 0x305   :  { %v1311_v5 = vsel %vm1302_vm5, %v1294_v24, %v1091_v45 }
 0x306   :  { %v1328_v48 = vsel %vm1319_vm6, %v1311_v5, %v7410_v49 }
 0x308   :  { %v7466_v50 = vpop.permute.xlu1 %998  ;;  %v7468_v7 = vpop.permute.xlu0 %885  ;;  %2355 = vrot.lane.b32.xlu0 %v7072_v39, %s6601_s21  ;;  %v1278_v39 = vsel %vm83_vm0, %v1262_v20, %v7404_v6 }
 0x309   :  { %v1295_v49 = vsel %vm1285_vm4, %v1278_v39, %v1044_v46 }
 0x30c   :  { %v7470_v9 = vpop.permute.xlu1 %1143  ;;  %v1093_v37 = vpop.permute.xlu0 %1092  ;;  %2119 = vrot.lane.b32.xlu0 %v1747_v28, %s6593_s0 }
 0x30d   :  { %v1312_v1 = vsel %vm1302_vm5, %v1295_v49, %v1093_v37 }
 0x310   :  { %v884_v16 = vpop.permute.xlu1 %883  ;;  %v950_v40 = vpop.permute.xlu0 %949 }
 0x314   :  { %v948_v13 = vpop.permute.xlu1 %947  ;;  %v1142_v63 = vpop.permute.xlu0 %1141 }
 0x315   :  { %v1329_v53 = vsel %vm1319_vm6, %v1312_v1, %v1142_v63  ;;  %v1230_v63 = vsel %vm712_vm2, %v7150_v44, %v7371_v60  ;;  %v7553_v44 = vld [vmem:[%s9231_s2 + $0x50] sm:$0xff] }
 0x316   :  { %v1246_v21 = vsel %vm396_vm1, %v1230_v63, %v884_v16 }
 0x317   :  { %v1263_v24 = vsel %vm1252_vm3, %v1246_v21, %v948_v13 }
 0x318   :  { %v997_v57 = vpop.permute.xlu1 %996  ;;  %v1046_v42 = vpop.permute.xlu0 %1045 }
 0x319   :  { %v1279_v20 = vsel %vm83_vm0, %v1263_v24, %v997_v57  ;;  %v1232_v24 = vsel %vm712_vm2, %v7218_v27, %v7443_v29 }
 0x31c   :  { %v1189_v30 = vpop.permute.xlu1 %1188  ;;  %v7513_v22 = vpop.permute.xlu0 %827 }
 0x31d   :  { %v1345_v2 = vsel %vm1336_vm7, %v1328_v48, %v1189_v30  ;;  %v1231_v30 = vsel %vm712_vm2, %v7199_v51, %v7460_v38  ;;  %v1296_v48 = vsel %vm1285_vm4, %v1279_v20, %v1046_v42  ;;  %v7565_v42 = vld [vmem:[%s9231_s2 + $0x58] sm:$0xff] }
 0x31e   :  { %v1361_v62 = vsel %vm9258_vm14, %v1345_v2, 0.0  ;;  %v1247_v60 = vsel %vm396_vm1, %v1231_v30, %v7468_v7  ;;  %vm9259_vm14 = vcmp.ne.f32.partialorder %v7565_v42, 0.0 }
 0x31f   :  { %5658 = vmatprep.mubr.msk.f32.mxu1 %vm1373_vm9, %v1361_v62  ;;  %v1264_v13 = vsel %vm1252_vm3, %v1247_v60, %v950_v40 }
 0x320   :  { %v1191_v6 = vpop.permute.xlu1 %1190  ;;  %v826_v45 = vpop.permute.xlu0 %825  ;;  %v1280_v39 = vsel %vm83_vm0, %v1264_v13, %v7466_v50 }
 0x321   :  { %v1346_v11 = vsel %vm1336_vm7, %v1329_v53, %v1191_v6  ;;  %v1233_v20 = vsel %vm712_vm2, %v7281_v4, %v826_v45 }
 0x322   :  { %v1362_v56 = vsel %vm9257_vm15, %v1346_v11, 0.0  ;;  %vm9260_vm15 = vcmp.ne.f32.partialorder %v7553_v44, 0.0 }
 0x323   :  { %5659 = vmatmul.mubr.msk.f32.gmra.mrb[30].mxu1 %vm1373_vm9, %v1362_v56 }
 0x324   :  { %v1095_v46 = vpop.permute.xlu1 %1094  ;;  %v1048_v3 = vpop.permute.xlu0 %1047 }
 0x325   :  { %v1313_v16 = vsel %vm1302_vm5, %v1296_v48, %v1095_v46  ;;  %v1297_v2 = vsel %vm1285_vm4, %v1280_v39, %v1048_v3 }
 0x326   :  { %v1330_v51 = vsel %vm1319_vm6, %v1313_v16, %v7470_v9 }
 0x328   :  { %v7536_v35 = vpop.permute.xlu1 %1002  ;;  %v890_v37 = vpop.permute.xlu0 %889 }
 0x329   :  { %v1249_v16 = vsel %vm396_vm1, %v1233_v20, %v890_v37  ;;  %v7604_v37 = vld [vmem:[%s9231_s2 + $0x68] sm:$0xff] }
 0x32c   :  { %v7538_v31 = vpop.permute.xlu1 %1147  ;;  %v1097_v36 = vpop.permute.xlu0 %1096 }
 0x32d   :  { %v1314_v49 = vsel %vm1302_vm5, %v1297_v2, %v1097_v36 }
 0x330   :  { %v888_v14 = vpop.permute.xlu1 %887  ;;  %v954_v15 = vpop.permute.xlu0 %953 }
 0x334   :  { %v952_v54 = vpop.permute.xlu1 %951  ;;  %v1146_v5 = vpop.permute.xlu0 %1145 }
 0x335   :  { %v1331_v9 = vsel %vm1319_vm6, %v1314_v49, %v1146_v5  ;;  %v1248_v5 = vsel %vm396_vm1, %v1232_v24, %v888_v14 }
 0x336   :  { %v1265_v30 = vsel %vm1252_vm3, %v1248_v5, %v952_v54  ;;  %v7599_v54 = vld [vmem:[%s9231_s2 + $0x60] sm:$0xff] }
 0x338   :  { %v1001_v59 = vpop.permute.xlu1 %1000  ;;  %v1050_v28 = vpop.permute.xlu0 %1049 }
 0x339   :  { %v1281_v13 = vsel %vm83_vm0, %v1265_v30, %v1001_v59 }
 0x33a   :  { %v1298_v29 = vsel %vm1285_vm4, %v1281_v13, %v1050_v28 }
 0x33c   :  { %v1193_v57 = vpop.permute.xlu1 %1192  ;;  %v1007_v38 = vpop.permute.xlu0 %1006 }
 0x33d   :  { %v1347_v7 = vsel %vm1336_vm7, %v1330_v51, %v1193_v57  ;;  %v1266_v57 = vsel %vm1252_vm3, %v1249_v16, %v954_v15 }
 0x33e   :  { %v1363_v40 = vsel %vm9260_vm15, %v1347_v7, 0.0  ;;  %v1282_v15 = vsel %vm83_vm0, %v1266_v57, %v7536_v35  ;;  %vm9261_vm15 = vcmp.ne.f32.partialorder %v7604_v37, 0.0  ;;  %v1234_v35 = vsel %vm712_vm2, %v7301_v41, %v7513_v22 }
 0x33f   :  { %5661 = vmatprep.mubr.msk.f32.mxu1 %vm1373_vm9, %v1363_v40 }
 0x340   :  { %v1195_v62 = vpop.permute.xlu1 %1194  ;;  %v1152_v1 = vpop.permute.xlu0 %1151 }
 0x341   :  { %v1348_v53 = vsel %vm1336_vm7, %v1331_v9, %v1195_v62 }
 0x342   :  { %v1364_v50 = vsel %vm9259_vm14, %v1348_v53, 0.0  ;;  %vm9262_vm14 = vcmp.ne.f32.partialorder %v7599_v54, 0.0 }
 0x343   :  { %5662 = vmatmul.mubr.msk.f32.gmra.mrb[32].mxu1 %vm1373_vm9, %v1364_v50 }
 0x344   :  { %v1099_v6 = vpop.permute.xlu1 %1098  ;;  %v830_v11 = vpop.permute.xlu0 %829 }
 0x345   :  { %v1235_v51 = vsel %vm712_vm2, %v7381_v19, %v830_v11  ;;  %v1315_v19 = vsel %vm1302_vm5, %v1298_v29, %v1099_v6 }
 0x346   :  { %v1332_v40 = vsel %vm1319_vm6, %v1315_v19, %v7538_v31 }
 0x348   :  { %v1056_v56 = vpop.permute.xlu1 %1055  ;;  %v1052_v46 = vpop.permute.xlu0 %1051 }
 0x349   :  { %v1299_v59 = vsel %vm1285_vm4, %v1282_v15, %v1052_v46  ;;  %v7640_v46 = vld [vmem:[%s9231_s2 + $0x70] sm:$0xff] }
 0x34c   :  { %v1105_v3 = vpop.permute.xlu1 %1104  ;;  %v894_v36 = vpop.permute.xlu0 %893 }
 0x34d   :  { %v1251_v27 = vsel %vm396_vm1, %v1235_v51, %v894_v36 }
 0x350   :  { %v892_v63 = vpop.permute.xlu1 %891  ;;  %v1101_v21 = vpop.permute.xlu0 %1100 }
 0x351   :  { %v1316_v28 = vsel %vm1302_vm5, %v1299_v59, %v1101_v21 }
 0x354   :  { %v956_v48 = vpop.permute.xlu1 %955  ;;  %v958_v60 = vpop.permute.xlu0 %957 }
 0x355   :  { %v1268_v14 = vsel %vm1252_vm3, %v1251_v27, %v958_v60 }
 0x356   :  { %v1284_v39 = vsel %vm83_vm0, %v1268_v14, %v1007_v38  ;;  %v1250_v38 = vsel %vm396_vm1, %v1234_v35, %v892_v63 }
 0x357   :  { %v1301_v53 = vsel %vm1285_vm4, %v1284_v39, %v1056_v56  ;;  %v1267_v31 = vsel %vm1252_vm3, %v1250_v38, %v956_v48  ;;  %v7635_v56 = vld [vmem:[%s9231_s2 + $0x78] sm:$0xff] }
 0x358   :  { %v1005_v4 = vpop.permute.xlu1 %1004  ;;  %v1150_v45 = vpop.permute.xlu0 %1149  ;;  %v1318_v63 = vsel %vm1302_vm5, %v1301_v53, %v1105_v3 }
 0x359   :  { %v1333_v7 = vsel %vm1319_vm6, %v1316_v28, %v1150_v45  ;;  %v1283_v41 = vsel %vm83_vm0, %v1267_v31, %v1005_v4  ;;  %v1335_v20 = vsel %vm1319_vm6, %v1318_v63, %v7126_v58 }
 0x35c   :  { %v1197_v2 = vpop.permute.xlu1 %1196  ;;  %v1199_v49 = vpop.permute.xlu0 %1198 }
 0x35d   :  { %v1349_v9 = vsel %vm1336_vm7, %v1332_v40, %v1197_v2  ;;  %v1350_v62 = vsel %vm1336_vm7, %v1333_v7, %v1199_v49 }
 0x35e   :  { %v1365_v50 = vsel %vm9262_vm14, %v1349_v9, 0.0  ;;  %v1366_v6 = vsel %vm9261_vm15, %v1350_v62, 0.0  ;;  %vm56_vm15 = vcmp.ne.f32.partialorder %v7635_v56, 0.0  ;;  %vm55_vm14 = vcmp.ne.f32.partialorder %v7640_v46, 0.0 }
 0x35f   :  { %5664 = vmatprep.mubr.msk.f32.mxu1 %vm1373_vm9, %v1365_v50 }
 0x360   :  { %v1054_v22 = vpop.permute.xlu1 %1053  ;;  %v1103_v11 = vpop.permute.xlu0 %1102  ;;  %5665 = vmatmul.mubr.msk.f32.gmra.mrb[34].mxu1 %vm1373_vm9, %v1366_v6 }
 0x361   :  { %v1300_v36 = vsel %vm1285_vm4, %v1283_v41, %v1054_v22 }
 0x362   :  { %v1317_v21 = vsel %vm1302_vm5, %v1300_v36, %v1103_v11 }
 0x363   :  { %v1334_v24 = vsel %vm1319_vm6, %v1317_v21, %v1152_v1  ;;  %v7661_v1 = vld [vmem:[%s9229_s1 + $0xb0] ss:$0 sm:$0xff] }
 0x364   :  { %v1203_v5 = vpop.permute.xlu1 %1202  ;;  %v1201_v30 = vpop.permute.xlu0 %1200 }
 0x365   :  { %v1352_v48 = vsel %vm1336_vm7, %v1335_v20, %v1203_v5  ;;  %v1351_v60 = vsel %vm1336_vm7, %v1334_v24, %v1201_v30 }
 0x366   :  { %v1368_v3 = vsel %vm56_vm15, %v1352_v48, 0.0  ;;  %v1367_v16 = vsel %vm55_vm14, %v1351_v60, 0.0 }
 0x367   :  { %5667 = vmatprep.mubr.msk.f32.mxu1 %vm1373_vm9, %v1367_v16 }
 0x368   :  { %5668 = vmatmul.mubr.msk.f32.gmra.mrb[36].mxu1 %vm1373_vm9, %v1368_v3 }
 0x369   :  { %v5878_v15 = vpop.permute.xlu0 %5877 }
 0x36a   :  { %v5880_v59 = vunpack.i.h.bf16 %v5878_v15  ;;  %v5879_v28 = vunpack.i.l.bf16 %v5878_v15 }
 0x36c   :  { %v5810_v39 = vpack.c.bf16 %v5880_v59, %v5879_v28 }
 0x36e   :  { %5811 = vmatprep.subr.bf16.mxu0 %v5810_v39 }
 0x36f   :  { %5813 = vmatpush3.bf16.msra.mxu0 %v5810_v39 }
 0x371   :  { %v5883_v2 = vpop.permute.xlu1 %5882 }
 0x372   :  { %v5888_v7 = vpop.permute.xlu0 %5887  ;;  %v5885_v40 = vunpack.i.h.bf16 %v5883_v2  ;;  %v5884_v49 = vunpack.i.l.bf16 %v5883_v2 }
 0x373   :  { %v5890_v50 = vunpack.i.h.bf16 %v5888_v7  ;;  %v5889_v6 = vunpack.i.l.bf16 %v5888_v7 }
 0x374   :  { %v5814_v9 = vpack.c.bf16 %v5885_v40, %v5884_v49 }
 0x375   :  { %v5818_v36 = vpack.c.bf16 %v5890_v50, %v5889_v6 }
 0x376   :  { %v5648_v58 = vpop.f32.mrb[22].mxu1  ;;  %5815 = vmatprep.subr.bf16.mxu0 %v5814_v9  ;;  %v5893_v31 = vpop.permute.xlu0 %5892 }
 0x377   :  { %v1494_v13 = vadd.f32 %v5648_v58, %v7661_v1  ;;  %v1488_v57 = vpop.f32.mrb[23].mxu1  ;;  %5817 = vmatpush3.bf16.msra.mxu0 %v5814_v9  ;;  %v5895_v22 = vunpack.i.h.bf16 %v5893_v31  ;;  %v5894_v11 = vunpack.i.l.bf16 %v5893_v31 }
 0x378   :  { %v1489_v51 = vadd.f32 %v7661_v1, %v1488_v57  ;;  %5819 = vmatprep.subr.bf16.mxu0 %v5818_v36 }
 0x379   :  { %v5220_v27 = vmul.f32 -1.442695, %v1494_v13  ;;  %v5822_v30 = vpack.c.bf16 %v5895_v22, %v5894_v11 }
 0x37a   :  { %v5219_v29 = vmul.f32 -1.442695, %v1489_v51  ;;  %v2356_v60 = vpop.permute.xlu0 %2355 }
 0x37b   :  { %6061 = vpow2.f32 %v5220_v27  ;;  %5821 = vmatpush3.bf16.msra.mxu0 %v5818_v36 }
 0x37c   :  { %6063 = vpow2.f32 %v5219_v29  ;;  %5823 = vmatprep.subr.bf16.mxu0 %v5822_v30 }
 0x37f   :  { %5825 = vmatpush3.bf16.msra.mxu0 %v5822_v30 }
 0x380   :  { %5686 = vmatprep.subr.mxu0 %v2356_v60 }
 0x383   :  { %5687 = vmatpush3.msra.mxu0 %v2356_v60 }
 0x385   :  { %v6062_v14 = vpop.eup %6061 }
 0x386   :  { %v6064_v4 = vpop.eup %6063  ;;  %v1616_v45 = vadd.f32 1.0, %v6062_v14 }
 0x387   :  { %v1615_v19 = vadd.f32 1.0, %v6064_v4 }
 0x388   :  { %6065 = vrcp.f32 %v1616_v45 }
 0x389   :  { %6067 = vrcp.f32 %v1615_v19 }
 0x392   :  { %v6066_v35 = vpop.eup %6065 }
 0x393   :  { %v6068_v62 = vpop.eup %6067  ;;  %v1664_v38 = vmul.f32 %v6066_v35, %v1494_v13 }
 0x394   :  { %v1663_v53 = vmul.f32 %v6068_v62, %v1489_v51 }
 0x395   :  { %1680 = vst.msk [vmem:[#allocation2 + $0x18] sm:$0xff] %vm712_vm2, %v1664_v38 }
 0x396   :  { %1679 = vst.msk [vmem:[#allocation2 + $0x10] sm:$0xff] %vm712_vm2, %v1663_v53  ;;  %v5651_v41 = vpop.f32.mrb[24].mxu1 }
 0x397   :  { %v1504_v63 = vadd.f32 %v5651_v41, %v7661_v1  ;;  %v1498_v21 = vpop.f32.mrb[25].mxu1 }
 0x398   :  { %v1499_v24 = vadd.f32 %v7661_v1, %v1498_v21 }
 0x399   :  { %v5222_v5 = vmul.f32 -1.442695, %v1504_v63 }
 0x39a   :  { %v5221_v20 = vmul.f32 -1.442695, %v1499_v24 }
 0x39b   :  { %6069 = vpow2.f32 %v5222_v5 }
 0x39c   :  { %6071 = vpow2.f32 %v5221_v20  ;;  %v1713_v48 = vld [vmem:[#allocation2 + $0x18] sm:$0xff] }
 0x39d   :  { %1944 = vrot.lane.b32.xlu0 %v1713_v48, %s6595_s22  ;;  %1769 = vrot.lane.b32.xlu1 %v1713_v48, %s6594_s19  ;;  %v1712_v3 = vld [vmem:[#allocation2 + $0x10] sm:$0xff] }
 0x39e   :  { %v1727_v16 = vld [vmem:[#allocation2 + $0x9] sm:$0xff]  ;;  %v1728_v58 = vld [vmem:[#allocation2 + $0x11] sm:$0xff] }
 0x39f   :  { %v7675_v29 = vld [vmem:[#allocation2 + $0xf] sm:$0xff]  ;;  %v7680_v14 = vld [vmem:[#allocation2 + $0x17] sm:$0xff] }
 0x3a1   :  { %2089 = vrot.lane.b32.xlu1 %v1713_v48, %s6593_s0  ;;  %1767 = vrot.lane.b32.xlu0 %v1712_v3, %s6594_s19 }
 0x3a5   :  { %v6070_v13 = vpop.eup %6069  ;;  %1829 = vrot.lane.b32.xlu1 %v1727_v16, %s6596_s23  ;;  %1831 = vrot.lane.b32.xlu0 %v1728_v58, %s6596_s23 }
 0x3a6   :  { %v6072_v57 = vpop.eup %6071  ;;  %v1618_v51 = vadd.f32 1.0, %v6070_v13 }
 0x3a7   :  { %v1617_v27 = vadd.f32 1.0, %v6072_v57 }
 0x3a8   :  { %6073 = vrcp.f32 %v1618_v51 }
 0x3a9   :  { %6075 = vrcp.f32 %v1617_v27  ;;  %1942 = vrot.lane.b32.xlu0 %v1712_v3, %s6595_s22  ;;  %1893 = vrot.lane.b32.xlu1 %v7675_v29, %s6597_s24 }
 0x3ad   :  { %1895 = vrot.lane.b32.xlu1 %v7680_v14, %s6597_s24 }
 0x3b1   :  { %1991 = vrot.lane.b32.xlu1 %v1728_v58, %s6598_s25 }
 0x3b2   :  { %v6074_v4 = vpop.eup %6073 }
 0x3b3   :  { %v6076_v45 = vpop.eup %6075  ;;  %v1666_v19 = vmul.f32 %v6074_v4, %v1504_v63 }
 0x3b4   :  { %v1665_v15 = vmul.f32 %v6076_v45, %v1499_v24 }
 0x3b5   :  { %1682 = vst.msk [vmem:[#allocation2 + $0x28] sm:$0xff] %vm712_vm2, %v1666_v19  ;;  %2040 = vrot.lane.b32.xlu1 %v7680_v14, %s6599_s30 }
 0x3b6   :  { %1681 = vst.msk [vmem:[#allocation2 + $0x20] sm:$0xff] %vm712_vm2, %v1665_v15  ;;  %v5654_v59 = vpop.f32.mrb[26].mxu1 }
 0x3b7   :  { %v1514_v28 = vadd.f32 %v5654_v59, %v7661_v1  ;;  %v1508_v39 = vpop.f32.mrb[27].mxu1 }
 0x3b8   :  { %v1509_v7 = vadd.f32 %v7661_v1, %v1508_v39 }
 0x3b9   :  { %v5224_v2 = vmul.f32 -1.442695, %v1514_v28 }
 0x3ba   :  { %v5223_v40 = vmul.f32 -1.442695, %v1509_v7 }
 0x3bb   :  { %6077 = vpow2.f32 %v5224_v2 }
 0x3bc   :  { %6079 = vpow2.f32 %v5223_v40  ;;  %v1715_v49 = vld [vmem:[#allocation2 + $0x28] sm:$0xff] }
 0x3bd   :  { %1773 = vrot.lane.b32.xlu0 %v1715_v49, %s6594_s19  ;;  %1948 = vrot.lane.b32.xlu1 %v1715_v49, %s6595_s22  ;;  %v1729_v35 = vld [vmem:[#allocation2 + $0x19] sm:$0xff]  ;;  %v1730_v31 = vld [vmem:[#allocation2 + $0x21] sm:$0xff] }
 0x3be   :  { %v1714_v9 = vld [vmem:[#allocation2 + $0x20] sm:$0xff] }
 0x3bf   :  { %v7695_v62 = vld [vmem:[#allocation2 + $0x1f] sm:$0xff]  ;;  %v7707_v63 = vld [vmem:[#allocation2 + $0x27] sm:$0xff] }
 0x3c1   :  { %2093 = vrot.lane.b32.xlu0 %v1715_v49, %s6593_s0  ;;  %1833 = vrot.lane.b32.xlu1 %v1729_v35, %s6596_s23 }
 0x3c5   :  { %v6078_v38 = vpop.eup %6077  ;;  %1771 = vrot.lane.b32.xlu0 %v1714_v9, %s6594_s19  ;;  %1897 = vrot.lane.b32.xlu1 %v7695_v62, %s6597_s24 }
 0x3c6   :  { %v6080_v53 = vpop.eup %6079  ;;  %v1620_v50 = vadd.f32 1.0, %v6078_v38 }
 0x3c7   :  { %v1619_v6 = vadd.f32 1.0, %v6080_v53 }
 0x3c8   :  { %6081 = vrcp.f32 %v1620_v50 }
 0x3c9   :  { %6083 = vrcp.f32 %v1619_v6  ;;  %1993 = vrot.lane.b32.xlu0 %v1729_v35, %s6598_s25  ;;  %1946 = vrot.lane.b32.xlu1 %v1714_v9, %s6595_s22 }
 0x3cd   :  { %1835 = vrot.lane.b32.xlu0 %v1730_v31, %s6596_s23  ;;  %2138 = vrot.lane.b32.xlu1 %v1729_v35, %s6600_s26 }
 0x3d1   :  { %2042 = vrot.lane.b32.xlu0 %v7695_v62, %s6599_s30  ;;  %2140 = vrot.lane.b32.xlu1 %v1730_v31, %s6600_s26 }
 0x3d2   :  { %v6082_v41 = vpop.eup %6081 }
 0x3d3   :  { %v6084_v22 = vpop.eup %6083  ;;  %v1668_v11 = vmul.f32 %v6082_v41, %v1514_v28 }
 0x3d4   :  { %v1667_v36 = vmul.f32 %v6084_v22, %v1509_v7 }
 0x3d5   :  { %1684 = vst.msk [vmem:[#allocation2 + $0x38] sm:$0xff] %vm712_vm2, %v1668_v11  ;;  %1899 = vrot.lane.b32.xlu0 %v7707_v63, %s6597_s24  ;;  %v7753_v11 = vpop.permute.xlu1 %1765 }
 0x3d6   :  { %1683 = vst.msk [vmem:[#allocation2 + $0x30] sm:$0xff] %vm712_vm2, %v1667_v36  ;;  %v5657_v21 = vpop.f32.mrb[28].mxu1 }
 0x3d7   :  { %v1524_v24 = vadd.f32 %v5657_v21, %v7661_v1  ;;  %v1518_v5 = vpop.f32.mrb[29].mxu1 }
 0x3d8   :  { %v1519_v20 = vadd.f32 %v7661_v1, %v1518_v5 }
 0x3d9   :  { %v5226_v30 = vmul.f32 -1.442695, %v1524_v24  ;;  %2091 = vrot.lane.b32.xlu0 %v1714_v9, %s6593_s0 }
 0x3da   :  { %v5225_v48 = vmul.f32 -1.442695, %v1519_v20 }
 0x3db   :  { %6085 = vpow2.f32 %v5226_v30 }
 0x3dc   :  { %6087 = vpow2.f32 %v5225_v48  ;;  %v1717_v60 = vld [vmem:[#allocation2 + $0x38] sm:$0xff]  ;;  %v7768_v48 = vpop.permute.xlu0 %2119 }
 0x3dd   :  { %1995 = vrot.lane.b32.xlu0 %v1730_v31, %s6598_s25  ;;  %1777 = vrot.lane.b32.xlu1 %v1717_v60, %s6594_s19  ;;  %v1716_v3 = vld [vmem:[#allocation2 + $0x30] sm:$0xff] }
 0x3de   :  { %v1731_v16 = vld [vmem:[#allocation2 + $0x29] sm:$0xff]  ;;  %v1732_v27 = vld [vmem:[#allocation2 + $0x31] sm:$0xff] }
 0x3df   :  { %v7725_v4 = vld [vmem:[#allocation2 + $0x2f] sm:$0xff]  ;;  %v7730_v45 = vld [vmem:[#allocation2 + $0x37] sm:$0xff] }
 0x3e1   :  { %2044 = vrot.lane.b32.xlu0 %v7707_v63, %s6599_s30  ;;  %1775 = vrot.lane.b32.xlu1 %v1716_v3, %s6594_s19 }
 0x3e5   :  { %v6086_v58 = vpop.eup %6085  ;;  %1952 = vrot.lane.b32.xlu0 %v1717_v60, %s6595_s22  ;;  %1997 = vrot.lane.b32.xlu1 %v1731_v16, %s6598_s25 }
 0x3e6   :  { %v6088_v13 = vpop.eup %6087  ;;  %v1622_v57 = vadd.f32 1.0, %v6086_v58 }
 0x3e7   :  { %v1621_v51 = vadd.f32 1.0, %v6088_v13 }
 0x3e8   :  { %6089 = vrcp.f32 %v1622_v57 }
 0x3e9   :  { %6091 = vrcp.f32 %v1621_v51  ;;  %2097 = vrot.lane.b32.xlu0 %v1717_v60, %s6593_s0  ;;  %1839 = vrot.lane.b32.xlu1 %v1732_v27, %s6596_s23 }
 0x3ed   :  { %1837 = vrot.lane.b32.xlu0 %v1731_v16, %s6596_s23  ;;  %2046 = vrot.lane.b32.xlu1 %v7725_v4, %s6599_s30 }
 0x3f1   :  { %1901 = vrot.lane.b32.xlu0 %v7725_v4, %s6597_s24  ;;  %1903 = vrot.lane.b32.xlu1 %v7730_v45, %s6597_s24 }
 0x3f2   :  { %v6090_v19 = vpop.eup %6089 }
 0x3f3   :  { %v6092_v15 = vpop.eup %6091  ;;  %v1670_v59 = vmul.f32 %v6090_v19, %v1524_v24 }
 0x3f4   :  { %v1669_v28 = vmul.f32 %v6092_v15, %v1519_v20 }
 0x3f5   :  { %1686 = vst.msk [vmem:[#allocation2 + $0x48] sm:$0xff] %vm712_vm2, %v1670_v59  ;;  %1950 = vrot.lane.b32.xlu0 %v1716_v3, %s6595_s22  ;;  %2095 = vrot.lane.b32.xlu1 %v1716_v3, %s6593_s0 }
 0x3f6   :  { %1685 = vst.msk [vmem:[#allocation2 + $0x40] sm:$0xff] %vm712_vm2, %v1669_v28  ;;  %v5660_v39 = vpop.f32.mrb[30].mxu1 }
 0x3f7   :  { %v1534_v7 = vadd.f32 %v5660_v39, %v7661_v1  ;;  %v1528_v2 = vpop.f32.mrb[31].mxu1 }
 0x3f8   :  { %v1529_v40 = vadd.f32 %v7661_v1, %v1528_v2 }
 0x3f9   :  { %v5228_v49 = vmul.f32 -1.442695, %v1534_v7  ;;  %2142 = vrot.lane.b32.xlu0 %v1731_v16, %s6600_s26  ;;  %1999 = vrot.lane.b32.xlu1 %v1732_v27, %s6598_s25 }
 0x3fa   :  { %v5227_v35 = vmul.f32 -1.442695, %v1529_v40 }
 0x3fb   :  { %6093 = vpow2.f32 %v5228_v49 }
 0x3fc   :  { %6095 = vpow2.f32 %v5227_v35  ;;  %v1719_v9 = vld [vmem:[#allocation2 + $0x48] sm:$0xff] }
 0x3fd   :  { %2144 = vrot.lane.b32.xlu0 %v1732_v27, %s6600_s26  ;;  %1781 = vrot.lane.b32.xlu1 %v1719_v9, %s6594_s19  ;;  %v1718_v38 = vld [vmem:[#allocation2 + $0x40] sm:$0xff] }
 0x3fe   :  { %v1733_v53 = vld [vmem:[#allocation2 + $0x39] sm:$0xff]  ;;  %v1734_v22 = vld [vmem:[#allocation2 + $0x41] sm:$0xff] }
 0x3ff   :  { %v7755_v36 = vld [vmem:[#allocation2 + $0x3f] sm:$0xff]  ;;  %v7762_v24 = vld [vmem:[#allocation2 + $0x47] sm:$0xff] }
 0x401   :  { %2048 = vrot.lane.b32.xlu0 %v7730_v45, %s6599_s30  ;;  %1779 = vrot.lane.b32.xlu1 %v1718_v38, %s6594_s19 }
 0x405   :  { %v6094_v50 = vpop.eup %6093  ;;  %1956 = vrot.lane.b32.xlu0 %v1719_v9, %s6595_s22  ;;  %2001 = vrot.lane.b32.xlu1 %v1733_v53, %s6598_s25 }
 0x406   :  { %v6096_v6 = vpop.eup %6095  ;;  %v1624_v31 = vadd.f32 1.0, %v6094_v50 }
 0x407   :  { %v1623_v41 = vadd.f32 1.0, %v6096_v6 }
 0x408   :  { %6097 = vrcp.f32 %v1624_v31 }
 0x409   :  { %6099 = vrcp.f32 %v1623_v41  ;;  %2101 = vrot.lane.b32.xlu0 %v1719_v9, %s6593_s0  ;;  %1843 = vrot.lane.b32.xlu1 %v1734_v22, %s6596_s23 }
 0x40d   :  { %1841 = vrot.lane.b32.xlu0 %v1733_v53, %s6596_s23  ;;  %2050 = vrot.lane.b32.xlu1 %v7755_v36, %s6599_s30 }
 0x40f   :  { %v7760_v21 = vpop.permute.xlu1 %1769  ;;  %v7778_v27 = vpop.permute.xlu0 %1944 }
 0x411   :  { %1905 = vrot.lane.b32.xlu0 %v7755_v36, %s6597_s24  ;;  %1907 = vrot.lane.b32.xlu1 %v7762_v24, %s6597_s24 }
 0x412   :  { %v6098_v5 = vpop.eup %6097 }
 0x413   :  { %v6100_v20 = vpop.eup %6099  ;;  %v1672_v30 = vmul.f32 %v6098_v5, %v1534_v7  ;;  %v7770_v60 = vpop.permute.xlu1 %2089 }
 0x414   :  { %v1671_v3 = vmul.f32 %v6100_v20, %v1529_v40  ;;  %v7784_v39 = vpop.permute.xlu0 %1767 }
 0x415   :  { %1688 = vst.msk [vmem:[#allocation2 + $0x58] sm:$0xff] %vm712_vm2, %v1672_v30  ;;  %1954 = vrot.lane.b32.xlu0 %v1718_v38, %s6595_s22  ;;  %2099 = vrot.lane.b32.xlu1 %v1718_v38, %s6593_s0 }
 0x416   :  { %1687 = vst.msk [vmem:[#allocation2 + $0x50] sm:$0xff] %vm712_vm2, %v1671_v3  ;;  %v5663_v16 = vpop.f32.mrb[32].mxu1  ;;  %v1695_v3 = vld [vmem:[#allocation2 + $0x7] sm:$0xff] }
 0x417   :  { %v1544_v58 = vadd.f32 %v5663_v16, %v7661_v1  ;;  %v1538_v13 = vpop.f32.mrb[33].mxu1  ;;  %v1830_v57 = vpop.permute.xlu1 %1829 }
 0x418   :  { %v1539_v51 = vadd.f32 %v7661_v1, %v1538_v13  ;;  %v7791_v35 = vpop.permute.xlu0 %1831 }
 0x419   :  { %v5230_v19 = vmul.f32 -1.442695, %v1544_v58  ;;  %2146 = vrot.lane.b32.xlu0 %v1733_v53, %s6600_s26  ;;  %2003 = vrot.lane.b32.xlu1 %v1734_v22, %s6598_s25 }
 0x41a   :  { %v5229_v15 = vmul.f32 -1.442695, %v1539_v51 }
 0x41b   :  { %6101 = vpow2.f32 %v5230_v19  ;;  %v1894_v59 = vpop.permute.xlu1 %1893 }
 0x41c   :  { %6103 = vpow2.f32 %v5229_v15  ;;  %v1721_v28 = vld [vmem:[#allocation2 + $0x58] sm:$0xff]  ;;  %v1943_v31 = vpop.permute.xlu0 %1942 }
 0x41d   :  { %2148 = vrot.lane.b32.xlu0 %v1734_v22, %s6600_s26  ;;  %1785 = vrot.lane.b32.xlu1 %v1721_v28, %s6594_s19  ;;  %v1720_v2 = vld [vmem:[#allocation2 + $0x50] sm:$0xff] }
 0x41e   :  { %v1735_v40 = vld [vmem:[#allocation2 + $0x49] sm:$0xff]  ;;  %v1736_v6 = vld [vmem:[#allocation2 + $0x51] sm:$0xff] }
 0x41f   :  { %v7786_v7 = vpop.permute.xlu1 %1895  ;;  %v7797_v22 = vld [vmem:[#allocation2 + $0x4f] sm:$0xff]  ;;  %v7806_v30 = vld [vmem:[#allocation2 + $0x57] sm:$0xff] }
 0x421   :  { %2052 = vrot.lane.b32.xlu0 %v7762_v24, %s6599_s30  ;;  %1783 = vrot.lane.b32.xlu1 %v1720_v2, %s6594_s19 }
 0x423   :  { %v1992_v9 = vpop.permute.xlu1 %1991 }
 0x425   :  { %v6102_v49 = vpop.eup %6101  ;;  %1960 = vrot.lane.b32.xlu0 %v1721_v28, %s6595_s22  ;;  %2005 = vrot.lane.b32.xlu1 %v1735_v40, %s6598_s25 }
 0x426   :  { %v6104_v38 = vpop.eup %6103  ;;  %v1626_v53 = vadd.f32 1.0, %v6102_v49  ;;  %v2186_v49 = vsel %vm712_vm2, %v1695_v3, %v7753_v11 }
 0x427   :  { %v1625_v50 = vadd.f32 1.0, %v6104_v38  ;;  %v2041_v41 = vpop.permute.xlu1 %2040 }
 0x428   :  { %6105 = vrcp.f32 %v1626_v53 }
 0x429   :  { %6107 = vrcp.f32 %v1625_v50  ;;  %2105 = vrot.lane.b32.xlu0 %v1721_v28, %s6593_s0  ;;  %1847 = vrot.lane.b32.xlu1 %v1736_v6, %s6596_s23 }
 0x42d   :  { %1845 = vrot.lane.b32.xlu0 %v1735_v40, %s6596_s23  ;;  %2054 = vrot.lane.b32.xlu1 %v7797_v22, %s6599_s30 }
 0x42f   :  { %v7802_v5 = vpop.permute.xlu0 %1773  ;;  %v7804_v20 = vpop.permute.xlu1 %1948 }
 0x431   :  { %1909 = vrot.lane.b32.xlu0 %v7797_v22, %s6597_s24  ;;  %1911 = vrot.lane.b32.xlu1 %v7806_v30, %s6597_s24 }
 0x432   :  { %v6106_v16 = vpop.eup %6105 }
 0x433   :  { %v6108_v13 = vpop.eup %6107  ;;  %v1674_v19 = vmul.f32 %v6106_v16, %v1544_v58  ;;  %v5666_v15 = vpop.f32.mrb[34].mxu1  ;;  %v2202_v58 = vsel %vm396_vm1, %v2186_v49, %v1830_v57 }
 0x434   :  { %v7812_v28 = vpop.permute.xlu0 %2093  ;;  %v1673_v38 = vmul.f32 %v6108_v13, %v1539_v51  ;;  %v7817_v53 = vadd.f32 %v5666_v15, %v7661_v1  ;;  %v7819_v50 = vpop.permute.xlu1 %1833  ;;  %v2218_v16 = vsel %vm1252_vm3, %v2202_v58, %v1894_v59 }
 0x435   :  { %v1548_v52 = vpop.f32.mrb[35].mxu1  ;;  %1690 = vst.msk [vmem:[#allocation2 + $0x68] sm:$0xff] %vm712_vm2, %v1674_v19  ;;  %1958 = vrot.lane.b32.xlu0 %v1720_v2, %s6595_s22  ;;  %2103 = vrot.lane.b32.xlu1 %v1720_v2, %s6593_s0 }
 0x436   :  { %v7823_v34 = vadd.f32 %v7661_v1, %v1548_v52  ;;  %1689 = vst.msk [vmem:[#allocation2 + $0x60] sm:$0xff] %vm712_vm2, %v1673_v38  ;;  %v5232_v11 = vmul.f32 -1.442695, %v7817_v53  ;;  %v2234_v52 = vsel %vm83_vm0, %v2218_v16, %v1943_v31 }
 0x437   :  { %v2250_v57 = vsel %vm1285_vm4, %v2234_v52, %v1992_v9 }
 0x438   :  { %v5231_v51 = vmul.f32 -1.442695, %v7823_v34  ;;  %v7831_v3 = vpop.permute.xlu0 %1771  ;;  %6109 = vpow2.f32 %v5232_v11  ;;  %v7834_v13 = vpop.permute.xlu1 %1897  ;;  %v2266_v11 = vsel %vm1302_vm5, %v2250_v57, %v2041_v41 }
 0x439   :  { %2150 = vrot.lane.b32.xlu0 %v1735_v40, %s6600_s26  ;;  %2007 = vrot.lane.b32.xlu1 %v1736_v6, %s6598_s25 }
 0x43a   :  { %6111 = vpow2.f32 %v5231_v51  ;;  %v2282_v51 = vsel %vm1319_vm6, %v2266_v11, %v7770_v60  ;;  %v2187_v60 = vsel %vm712_vm2, %v7675_v29, %v7784_v39 }
 0x43b   :  { %v5669_v2 = vpop.f32.mrb[36].mxu1 }
 0x43c   :  { %v1994_v19 = vpop.permute.xlu0 %1993  ;;  %v7841_v15 = vadd.f32 %v5669_v2, %v7661_v1  ;;  %v7843_v49 = vpop.permute.xlu1 %1946  ;;  %v1723_v38 = vld [vmem:[#allocation2 + $0x68] sm:$0xff] }
 0x43d   :  { %v1558_v59 = vpop.f32.mrb[37].mxu1  ;;  %2152 = vrot.lane.b32.xlu0 %v1736_v6, %s6600_s26  ;;  %1789 = vrot.lane.b32.xlu1 %v1723_v38, %s6594_s19  ;;  %v1722_v52 = vld [vmem:[#allocation2 + $0x60] sm:$0xff] }
 0x43e   :  { %v7847_v58 = vadd.f32 %v7661_v1, %v1558_v59  ;;  %v5234_v40 = vmul.f32 -1.442695, %v7841_v15 }
 0x440   :  { %v5233_v9 = vmul.f32 -1.442695, %v7847_v58  ;;  %v7853_v31 = vpop.permute.xlu0 %1835  ;;  %6113 = vpow2.f32 %v5234_v40  ;;  %v2139_v16 = vpop.permute.xlu1 %2138 }
 0x441   :  { %v2298_v41 = vsel %vm1336_vm7, %v2282_v51, %v2139_v16  ;;  %2056 = vrot.lane.b32.xlu0 %v7806_v30, %s6599_s30  ;;  %1787 = vrot.lane.b32.xlu1 %v1722_v52, %s6594_s19  ;;  %v2203_v51 = vsel %vm396_vm1, %v2187_v60, %v7791_v35 }
 0x442   :  { %6115 = vpow2.f32 %v5233_v9  ;;  %v6110_v6 = vpop.eup %6109  ;;  %v2314_v2 = vsel %vm41_vm8, %v2298_v41, 0.0  ;;  %v1737_v9 = vld [vmem:[#allocation2 + $0x59] sm:$0xff]  ;;  %v2219_v55 = vsel %vm1252_vm3, %v2203_v51, %v7786_v7  ;;  %v1738_v41 = vld [vmem:[#allocation2 + $0x61] sm:$0xff]  ;;  %vm9282_vm8 = vcmp.ne.f32.partialorder %v7376_v0, 0.0 }
 0x443   :  { %v1628_v59 = vadd.f32 1.0, %v6110_v6  ;;  %5688 = vmatprep.mubr.msk.f32.mxu0 %vm1373_vm9, %v2314_v2  ;;  %v2235_v29 = vsel %vm83_vm0, %v2219_v55, %v7778_v27  ;;  %v7882_v51 = vld [vmem:[#allocation2 + $0x5f] sm:$0xff] }
 0x444   :  { %v6112_v57 = vpop.eup %6111  ;;  %v2043_v40 = vpop.permute.xlu0 %2042  ;;  %v2251_v35 = vsel %vm1285_vm4, %v2235_v29, %v1994_v19 }
 0x445   :  { %v1627_v11 = vadd.f32 1.0, %v6112_v57  ;;  %6117 = vrcp.f32 %v1628_v59  ;;  %1964 = vrot.lane.b32.xlu0 %v1723_v38, %s6595_s22  ;;  %2009 = vrot.lane.b32.xlu1 %v1737_v9, %s6598_s25  ;;  %v2267_v57 = vsel %vm1302_vm5, %v2251_v35, %v2043_v40  ;;  %v2141_v59 = vpop.permute.xlu1 %2140  ;;  %v7894_v35 = vld [vmem:[#allocation2 + $0x67] sm:$0xff] }
 0x447   :  { %6119 = vrcp.f32 %v1627_v11 }
 0x448   :  { %v7873_v16 = vpop.permute.xlu0 %1899 }
 0x449   :  { %2109 = vrot.lane.b32.xlu0 %v1723_v38, %s6593_s0  ;;  %1851 = vrot.lane.b32.xlu1 %v1738_v41, %s6596_s23 }
 0x44a   :  { %v6114_v39 = vpop.eup %6113 }
 0x44b   :  { %v1630_v2 = vadd.f32 1.0, %v6114_v39 }
 0x44c   :  { %v6116_v6 = vpop.eup %6115  ;;  %v2092_v7 = vpop.permute.xlu0 %2091 }
 0x44d   :  { %v1629_v60 = vadd.f32 1.0, %v6116_v6  ;;  %v2283_v11 = vsel %vm1319_vm6, %v2267_v57, %v2092_v7  ;;  %6121 = vrcp.f32 %v1630_v2  ;;  %1849 = vrot.lane.b32.xlu0 %v1737_v9, %s6596_s23  ;;  %2058 = vrot.lane.b32.xlu1 %v7882_v51, %s6599_s30 }
 0x44e   :  { %v2299_v27 = vsel %vm1336_vm7, %v2283_v11, %v2141_v59 }
 0x44f   :  { %6123 = vrcp.f32 %v1629_v60  ;;  %v2315_v19 = vsel %vm42_vm10, %v2299_v27, 0.0  ;;  %v6118_v38 = vpop.eup %6117  ;;  %v7890_v55 = vpop.permute.xlu1 %1777  ;;  %vm9283_vm10 = vcmp.ne.f32.partialorder %v7433_v26, 0.0 }
 0x450   :  { %v1996_v40 = vpop.permute.xlu0 %1995  ;;  %5689 = vmatmul.mubr.msk.f32.vlgmr.msra.gmra.mrb[10].mxu0 %vm1373_vm9, %v2315_v19  ;;  %v1676_v39 = vmul.f32 %v6118_v38, %v7817_v53 }
 0x451   :  { %v6120_v29 = vpop.eup %6119  ;;  %1913 = vrot.lane.b32.xlu0 %v7882_v51, %s6597_s24  ;;  %1915 = vrot.lane.b32.xlu1 %v7894_v35, %s6597_s24 }
 0x452   :  { %v1675_v6 = vmul.f32 %v6120_v29, %v7823_v34  ;;  %1692 = vst.msk [vmem:[#allocation2 + $0x78] sm:$0xff] %vm712_vm2, %v1676_v39 }
 0x453   :  { %v7903_v2 = vpop.permute.xlu1 %1775 }
 0x454   :  { %1691 = vst.msk [vmem:[#allocation2 + $0x70] sm:$0xff] %vm712_vm2, %v1675_v6  ;;  %v2045_v8 = vpop.permute.xlu0 %2044 }
 0x455   :  { %1962 = vrot.lane.b32.xlu0 %v1722_v52, %s6595_s22  ;;  %2107 = vrot.lane.b32.xlu1 %v1722_v52, %s6593_s0 }
 0x457   :  { %v6122_v53 = vpop.eup %6121  ;;  %v1998_v34 = vpop.permute.xlu1 %1997 }
 0x458   :  { %v7907_v57 = vpop.permute.xlu0 %1952  ;;  %v1678_v7 = vmul.f32 %v6122_v53, %v7841_v15 }
 0x459   :  { %v6124_v59 = vpop.eup %6123  ;;  %2154 = vrot.lane.b32.xlu0 %v1737_v9, %s6600_s26  ;;  %2011 = vrot.lane.b32.xlu1 %v1738_v41, %s6598_s25  ;;  %v1725_v27 = vld [vmem:[#allocation2 + $0x78] sm:$0xff]  ;;  %v2188_v9 = vsel %vm712_vm2, %v7680_v14, %v7760_v21  ;;  %v2189_v14 = vsel %vm712_vm2, %v7695_v62, %v7831_v3 }
 0x45a   :  { %v1677_v60 = vmul.f32 %v6124_v59, %v7847_v58  ;;  %1694 = vst.msk [vmem:[#allocation2 + $0x88] sm:$0xff] %vm712_vm2, %v1678_v7 }
 0x45b   :  { %v7917_v52 = vpop.permute.xlu1 %1839  ;;  %v1724_v19 = vld [vmem:[#allocation2 + $0x70] sm:$0xff] }
 0x45c   :  { %1693 = vst.msk [vmem:[#allocation2 + $0x80] sm:$0xff] %vm712_vm2, %v1677_v60  ;;  %v7915_v11 = vpop.permute.xlu0 %2097  ;;  %v1739_v39 = vld [vmem:[#allocation2 + $0x69] sm:$0xff]  ;;  %v1740_v60 = vld [vmem:[#allocation2 + $0x71] sm:$0xff] }
 0x45d   :  { %2156 = vrot.lane.b32.xlu0 %v1738_v41, %s6600_s26  ;;  %1793 = vrot.lane.b32.xlu1 %v1725_v27, %s6594_s19  ;;  %v2204_v41 = vsel %vm396_vm1, %v2188_v9, %v7819_v50  ;;  %v2205_v50 = vsel %vm396_vm1, %v2189_v14, %v7853_v31 }
 0x45e   :  { %v2220_v6 = vsel %vm1252_vm3, %v2204_v41, %v7834_v13  ;;  %v2221_v9 = vsel %vm1252_vm3, %v2205_v50, %v7873_v16  ;;  %v7957_v41 = vld [vmem:[#allocation2 + $0x6f] sm:$0xff] }
 0x45f   :  { %v2047_v58 = vpop.permute.xlu1 %2046  ;;  %v2236_v53 = vsel %vm83_vm0, %v2220_v6, %v7843_v49 }
 0x460   :  { %v7921_v15 = vpop.permute.xlu0 %1837  ;;  %v2252_v21 = vsel %vm1285_vm4, %v2236_v53, %v1996_v40  ;;  %v2237_v40 = vsel %vm83_vm0, %v2221_v9, %v7804_v20 }
 0x461   :  { %2060 = vrot.lane.b32.xlu0 %v7894_v35, %s6599_s30  ;;  %1791 = vrot.lane.b32.xlu1 %v1724_v19, %s6594_s19  ;;  %v2268_v13 = vsel %vm1302_vm5, %v2252_v21, %v2045_v8  ;;  %v2253_v8 = vsel %vm1285_vm4, %v2237_v40, %v1998_v34  ;;  %v7971_v34 = vld [vmem:[#allocation2 + $0x77] sm:$0xff]  ;;  %v1745_v40 = vld [vmem:[#allocation2 + $0x89] sm:$0xff] }
 0x462   :  { %v2284_v62 = vsel %vm1319_vm6, %v2268_v13, %v7812_v28  ;;  %v2269_v28 = vsel %vm1302_vm5, %v2253_v8, %v2047_v58  ;;  %v1744_v13 = vld [vmem:[#allocation2 + $0x88] sm:$0xff] }
 0x463   :  { %v7931_v29 = vpop.permute.xlu1 %1903 }
 0x464   :  { %v7929_v38 = vpop.permute.xlu0 %1901 }
 0x465   :  { %1968 = vrot.lane.b32.xlu0 %v1725_v27, %s6595_s22  ;;  %2013 = vrot.lane.b32.xlu1 %v1739_v39, %s6598_s25 }
 0x467   :  { %v2096_v7 = vpop.permute.xlu1 %2095 }
 0x468   :  { %v1951_v59 = vpop.permute.xlu0 %1950  ;;  %v2285_v20 = vsel %vm1319_vm6, %v2269_v28, %v2096_v7 }
 0x469   :  { %2113 = vrot.lane.b32.xlu0 %v1725_v27, %s6593_s0  ;;  %1855 = vrot.lane.b32.xlu1 %v1740_v60, %s6596_s23 }
 0x46b   :  { %v2000_v3 = vpop.permute.xlu1 %1999 }
 0x46c   :  { %v2143_v49 = vpop.permute.xlu0 %2142 }
 0x46d   :  { %v2300_v31 = vsel %vm1336_vm7, %v2284_v62, %v2143_v49  ;;  %1853 = vrot.lane.b32.xlu0 %v1739_v39, %s6596_s23  ;;  %2062 = vrot.lane.b32.xlu1 %v7957_v41, %s6599_s30 }
 0x46e   :  { %v2316_v16 = vsel %vm43_vm11, %v2300_v31, 0.0  ;;  %v1726_v31 = vld [vmem:[#allocation2 + $0x80] sm:$0xff]  ;;  %vm9284_vm11 = vcmp.ne.f32.partialorder %v7448_v25, 0.0  ;;  %v2708_v25 = vld [vmem:[%s9229_s1 + $0x38] sm:$0xff] }
 0x46f   :  { %5691 = vmatprep.mubr.msk.f32.mxu0 %vm1373_vm9, %v2316_v16  ;;  %v7968_v6 = vpop.permute.xlu1 %1781 }
 0x470   :  { %v2145_v27 = vpop.permute.xlu0 %2144 }
 0x471   :  { %v2301_v53 = vsel %vm1336_vm7, %v2285_v20, %v2145_v27  ;;  %1917 = vrot.lane.b32.xlu0 %v7957_v41, %s6597_s24  ;;  %1919 = vrot.lane.b32.xlu1 %v7971_v34, %s6597_s24 }
 0x472   :  { %v2317_v10 = vsel %vm44_vm12, %v2301_v53, 0.0  ;;  %v1741_v53 = vld [vmem:[#allocation2 + $0x79] sm:$0xff]  ;;  %vm9285_vm12 = vcmp.ne.f32.partialorder %v7501_v17, 0.0 }
 0x473   :  { %5692 = vmatmul.mubr.msk.f32.gmra.mrb[12].mxu0 %vm1373_vm9, %v2317_v10  ;;  %v7980_v14 = vpop.permute.xlu1 %1779 }
 0x474   :  { %v2049_v58 = vpop.permute.xlu0 %2048 }
 0x475   :  { %1966 = vrot.lane.b32.xlu0 %v1724_v19, %s6595_s22  ;;  %2111 = vrot.lane.b32.xlu1 %v1724_v19, %s6593_s0  ;;  %v2190_v19 = vsel %vm712_vm2, %v7707_v63, %v7802_v5  ;;  %v2191_v63 = vsel %vm712_vm2, %v7725_v4, %v7903_v2 }
 0x477   :  { %v2002_v7 = vpop.permute.xlu1 %2001 }
 0x478   :  { %v7984_v21 = vpop.permute.xlu0 %1956 }
 0x479   :  { %2158 = vrot.lane.b32.xlu0 %v1739_v39, %s6600_s26  ;;  %2015 = vrot.lane.b32.xlu1 %v1740_v60, %s6598_s25 }
 0x47b   :  { %v7990_v50 = vpop.permute.xlu1 %1843 }
 0x47c   :  { %v7988_v47 = vpop.permute.xlu0 %2101 }
 0x47d   :  { %2160 = vrot.lane.b32.xlu0 %v1740_v60, %s6600_s26  ;;  %1972 = vrot.lane.b32.xlu1 %v1744_v13, %s6595_s22  ;;  %v2206_v60 = vsel %vm396_vm1, %v2190_v19, %v7921_v15  ;;  %v2207_v15 = vsel %vm396_vm1, %v2191_v63, %v7917_v52  ;;  %v1743_v63 = vld [vmem:[#allocation2 + $0x87] sm:$0xff] }
 0x47e   :  { %v2222_v8 = vsel %vm1252_vm3, %v2206_v60, %v7929_v38  ;;  %v1746_v38 = vld [vmem:[#allocation2 + $0x8f] sm:$0xff]  ;;  %v2223_v10 = vsel %vm1252_vm3, %v2207_v15, %v7931_v29 }
 0x47f   :  { %v2051_v49 = vpop.permute.xlu1 %2050  ;;  %v2238_v16 = vsel %vm83_vm0, %v2222_v8, %v1951_v59 }
 0x480   :  { %v7994_v9 = vpop.permute.xlu0 %1841  ;;  %v2254_v5 = vsel %vm1285_vm4, %v2238_v16, %v2000_v3  ;;  %v2239_v3 = vsel %vm83_vm0, %v2223_v10, %v7907_v57  ;;  %v8040_v16 = vld [vmem:[#allocation2 + $0x7f] sm:$0xff] }
 0x481   :  { %2064 = vrot.lane.b32.xlu0 %v7971_v34, %s6599_s30  ;;  %2117 = vrot.lane.b32.xlu1 %v1744_v13, %s6593_s0  ;;  %v2270_v27 = vsel %vm1302_vm5, %v2254_v5, %v2049_v58  ;;  %v1742_v58 = vld [vmem:[#allocation2 + $0x81] sm:$0xff]  ;;  %v2255_v13 = vsel %vm1285_vm4, %v2239_v3, %v2002_v7 }
 0x482   :  { %v2286_v4 = vsel %vm1319_vm6, %v2270_v27, %v7915_v11  ;;  %v2271_v19 = vsel %vm1302_vm5, %v2255_v13, %v2051_v49  ;;  %v1748_v27 = vld [vmem:[#allocation2 + $0x91] sm:$0xff] }
 0x483   :  { %v8004_v62 = vpop.permute.xlu1 %1907 }
 0x484   :  { %v8002_v39 = vpop.permute.xlu0 %1905 }
 0x485   :  { %2021 = vrot.lane.b32.xlu0 %v1745_v40, %s6598_s25  ;;  %1795 = vrot.lane.b32.xlu1 %v1726_v31, %s6594_s19 }
 0x487   :  { %v2100_v20 = vpop.permute.xlu1 %2099 }
 0x488   :  { %v1955_v28 = vpop.permute.xlu0 %1954  ;;  %v2287_v11 = vsel %vm1319_vm6, %v2271_v19, %v2100_v20 }
 0x489   :  { %2070 = vrot.lane.b32.xlu0 %v1746_v38, %s6599_s30  ;;  %2017 = vrot.lane.b32.xlu1 %v1741_v53, %s6598_s25 }
 0x48b   :  { %v2004_v2 = vpop.permute.xlu1 %2003 }
 0x48c   :  { %v2147_v59 = vpop.permute.xlu0 %2146 }
 0x48d   :  { %v2302_v52 = vsel %vm1336_vm7, %v2286_v4, %v2147_v59  ;;  %1857 = vrot.lane.b32.xlu0 %v1741_v53, %s6596_s23  ;;  %1859 = vrot.lane.b32.xlu1 %v1742_v58, %s6596_s23 }
 0x48e   :  { %v2318_v29 = vsel %vm45_vm13, %v2302_v52, 0.0  ;;  %vm9286_vm13 = vcmp.ne.f32.partialorder %v7518_v33, 0.0 }
 0x48f   :  { %5694 = vmatprep.mubr.msk.f32.mxu0 %vm1373_vm9, %v2318_v29  ;;  %v8037_v57 = vpop.permute.xlu1 %1785 }
 0x490   :  { %v2149_v60 = vpop.permute.xlu0 %2148 }
 0x491   :  { %v2303_v8 = vsel %vm1336_vm7, %v2287_v11, %v2149_v60  ;;  %1921 = vrot.lane.b32.xlu0 %v8040_v16, %s6597_s24  ;;  %2066 = vrot.lane.b32.xlu1 %v8040_v16, %s6599_s30 }
 0x492   :  { %v2319_v43 = vsel %vm9282_vm8, %v2303_v8, 0.0  ;;  %vm9287_vm8 = vcmp.ne.f32.partialorder %v7553_v44, 0.0 }
 0x493   :  { %5695 = vmatmul.mubr.msk.f32.gmra.mrb[14].mxu0 %vm1373_vm9, %v2319_v43  ;;  %v8049_v49 = vpop.permute.xlu1 %1783 }
 0x494   :  { %v2053_v7 = vpop.permute.xlu0 %2052 }
 0x495   :  { %1970 = vrot.lane.b32.xlu0 %v1726_v31, %s6595_s22  ;;  %1923 = vrot.lane.b32.xlu1 %v1743_v63, %s6597_s24 }
 0x497   :  { %v2006_v0 = vpop.permute.xlu1 %2005 }
 0x498   :  { %v8053_v5 = vpop.permute.xlu0 %1960 }
 0x499   :  { %2162 = vrot.lane.b32.xlu0 %v1741_v53, %s6600_s26  ;;  %2115 = vrot.lane.b32.xlu1 %v1726_v31, %s6593_s0  ;;  %v2192_v53 = vsel %vm712_vm2, %v7730_v45, %v7890_v55 }
 0x49a   :  { %v2208_v4 = vsel %vm396_vm1, %v2192_v53, %v7994_v9  ;;  %v2707_v53 = vld [vmem:[%s9229_s1 + $0x30] sm:$0xff] }
 0x49b   :  { %v1848_v15 = vpop.permute.xlu1 %1847  ;;  %v2224_v3 = vsel %vm1252_vm3, %v2208_v4, %v8002_v39  ;;  %v2194_v4 = vsel %vm712_vm2, %v7762_v24, %v7968_v6 }
 0x49c   :  { %v8057_v20 = vpop.permute.xlu0 %2105  ;;  %v2240_v52 = vsel %vm83_vm0, %v2224_v3, %v1955_v28 }
 0x49d   :  { %2019 = vrot.lane.b32.xlu0 %v1742_v58, %s6598_s25  ;;  %2164 = vrot.lane.b32.xlu1 %v1742_v58, %s6600_s26  ;;  %v2193_v58 = vsel %vm712_vm2, %v7755_v36, %v7980_v14  ;;  %v2256_v13 = vsel %vm1285_vm4, %v2240_v52, %v2004_v2 }
 0x49e   :  { %v2209_v55 = vsel %vm396_vm1, %v2193_v58, %v7990_v50  ;;  %v2272_v9 = vsel %vm1302_vm5, %v2256_v13, %v2053_v7  ;;  %v5826_v58 = vpack.c.bf16 %v2708_v25, %v2707_v53 }
 0x49f   :  { %v2055_v10 = vpop.permute.xlu1 %2054  ;;  %v2225_v39 = vsel %vm1252_vm3, %v2209_v55, %v8004_v62  ;;  %v2288_v28 = vsel %vm1319_vm6, %v2272_v9, %v7988_v47  ;;  %v2195_v9 = vsel %vm712_vm2, %v7797_v22, %v8049_v49 }
 0x4a0   :  { %v1846_v38 = vpop.permute.xlu0 %1845  ;;  %v2241_v14 = vsel %vm83_vm0, %v2225_v39, %v7984_v21  ;;  %5827 = vmatprep.subr.bf16.mxu1 %v5826_v58  ;;  %v2211_v24 = vsel %vm396_vm1, %v2195_v9, %v1848_v15 }
 0x4a1   :  { %2168 = vrot.lane.b32.xlu0 %v1748_v27, %s6600_s26  ;;  %2068 = vrot.lane.b32.xlu1 %v1743_v63, %s6599_s30  ;;  %v2257_v50 = vsel %vm1285_vm4, %v2241_v14, %v2006_v0  ;;  %v2210_v13 = vsel %vm396_vm1, %v2194_v4, %v1846_v38 }
 0x4a2   :  { %v2273_v62 = vsel %vm1302_vm5, %v2257_v50, %v2055_v10  ;;  %5829 = vmatpush3.bf16.msra.mxu1 %v5826_v58 }
 0x4a3   :  { %v1912_v31 = vpop.permute.xlu1 %1911 }
 0x4a4   :  { %v1910_v59 = vpop.permute.xlu0 %1909  ;;  %v2227_v38 = vsel %vm1252_vm3, %v2211_v24, %v1912_v31 }
 0x4a5   :  { %2166 = vrot.lane.b32.xlu1 %v1745_v40, %s6600_s26 }
 0x4a7   :  { %v2104_v45 = vpop.permute.xlu1 %2103 }
 0x4a8   :  { %v1959_v29 = vpop.permute.xlu0 %1958 }
 0x4a9   :  { %2367 = vrot.lane.b32.xlu1 %v7661_v1, %s6601_s21  ;;  %v2289_v1 = vsel %vm1319_vm6, %v2273_v62, %v2104_v45  ;;  %v2226_v45 = vsel %vm1252_vm3, %v2210_v13, %v1910_v59 }
 0x4aa   :  { %v2242_v55 = vsel %vm83_vm0, %v2226_v45, %v1959_v29 }
 0x4ab   :  { %v2008_v36 = vpop.permute.xlu1 %2007 }
 0x4ac   :  { %v2151_v40 = vpop.permute.xlu0 %2150  ;;  %v2258_v39 = vsel %vm1285_vm4, %v2242_v55, %v2008_v36 }
 0x4ad   :  { %v2304_v2 = vsel %vm1336_vm7, %v2288_v28, %v2151_v40 }
 0x4ae   :  { %v2320_v19 = vsel %vm9283_vm10, %v2304_v2, 0.0  ;;  %v2243_v2 = vsel %vm83_vm0, %v2227_v38, %v8053_v5  ;;  %vm9288_vm10 = vcmp.ne.f32.partialorder %v7565_v42, 0.0 }
 0x4af   :  { %5697 = vmatprep.mubr.msk.f32.mxu0 %vm1373_vm9, %v2320_v19  ;;  %v8094_v60 = vpop.permute.xlu1 %1789 }
 0x4b0   :  { %v2153_v11 = vpop.permute.xlu0 %2152 }
 0x4b1   :  { %v2305_v47 = vsel %vm1336_vm7, %v2289_v1, %v2153_v11 }
 0x4b2   :  { %v2321_v21 = vsel %vm9284_vm11, %v2305_v47, 0.0  ;;  %vm9289_vm11 = vcmp.ne.f32.partialorder %v7599_v54, 0.0 }
 0x4b3   :  { %5698 = vmatmul.mubr.msk.f32.gmra.mrb[16].mxu0 %vm1373_vm9, %v2321_v21  ;;  %v1788_v43 = vpop.permute.xlu1 %1787 }
 0x4b4   :  { %v2057_v8 = vpop.permute.xlu0 %2056  ;;  %v2197_v13 = vsel %vm712_vm2, %v7882_v51, %v1788_v43 }
 0x4b5   :  { %v2274_v6 = vsel %vm1302_vm5, %v2258_v39, %v2057_v8 }
 0x4b6   :  { %v2290_v59 = vsel %vm1319_vm6, %v2274_v6, %v8057_v20 }
 0x4b7   :  { %v2010_v7 = vpop.permute.xlu1 %2009 }
 0x4b8   :  { %v8100_v26 = vpop.permute.xlu0 %1964  ;;  %v2259_v49 = vsel %vm1285_vm4, %v2243_v2, %v2010_v7 }
 0x4bb   :  { %v1852_v0 = vpop.permute.xlu1 %1851 }
 0x4bc   :  { %v2110_v63 = vpop.permute.xlu0 %2109  ;;  %v2213_v39 = vsel %vm396_vm1, %v2197_v13, %v1852_v0 }
 0x4bf   :  { %v2059_v10 = vpop.permute.xlu1 %2058 }
 0x4c0   :  { %v1850_v27 = vpop.permute.xlu0 %1849  ;;  %v2275_v15 = vsel %vm1302_vm5, %v2259_v49, %v2059_v10  ;;  %v2196_v10 = vsel %vm712_vm2, %v7806_v30, %v8037_v57 }
 0x4c1   :  { %v2212_v4 = vsel %vm396_vm1, %v2196_v10, %v1850_v27 }
 0x4c3   :  { %v1916_v52 = vpop.permute.xlu1 %1915 }
 0x4c4   :  { %v1914_v3 = vpop.permute.xlu0 %1913  ;;  %v2229_v30 = vsel %vm1252_vm3, %v2213_v39, %v1916_v52 }
 0x4c5   :  { %v2228_v33 = vsel %vm1252_vm3, %v2212_v4, %v1914_v3  ;;  %v2245_v3 = vsel %vm83_vm0, %v2229_v30, %v8100_v26 }
 0x4c7   :  { %v2108_v28 = vpop.permute.xlu1 %2107 }
 0x4c8   :  { %v1963_v40 = vpop.permute.xlu0 %1962  ;;  %v2291_v31 = vsel %vm1319_vm6, %v2275_v15, %v2108_v28  ;;  %v2198_v15 = vsel %vm712_vm2, %v7894_v35, %v8094_v60 }
 0x4c9   :  { %v2244_v58 = vsel %vm83_vm0, %v2228_v33, %v1963_v40 }
 0x4cb   :  { %v2012_v29 = vpop.permute.xlu1 %2011 }
 0x4cc   :  { %v2155_v14 = vpop.permute.xlu0 %2154  ;;  %v2260_v45 = vsel %vm1285_vm4, %v2244_v58, %v2012_v29 }
 0x4cd   :  { %v2306_v22 = vsel %vm1336_vm7, %v2290_v59, %v2155_v14 }
 0x4ce   :  { %v2322_v36 = vsel %vm9285_vm12, %v2306_v22, 0.0  ;;  %vm9290_vm12 = vcmp.ne.f32.partialorder %v7604_v37, 0.0 }
 0x4cf   :  { %5700 = vmatprep.mubr.msk.f32.mxu0 %vm1373_vm9, %v2322_v36  ;;  %v8132_v19 = vpop.permute.xlu1 %1793 }
 0x4d0   :  { %v2157_v50 = vpop.permute.xlu0 %2156 }
 0x4d1   :  { %v2307_v20 = vsel %vm1336_vm7, %v2291_v31, %v2157_v50 }
 0x4d2   :  { %v2323_v5 = vsel %vm9286_vm13, %v2307_v20, 0.0 }
 0x4d3   :  { %5701 = vmatmul.mubr.msk.f32.gmra.mrb[18].mxu0 %vm1373_vm9, %v2323_v5  ;;  %v1792_v1 = vpop.permute.xlu1 %1791 }
 0x4d4   :  { %v2061_v62 = vpop.permute.xlu0 %2060 }
 0x4d5   :  { %v2276_v28 = vsel %vm1302_vm5, %v2260_v45, %v2061_v62  ;;  %v2199_v62 = vsel %vm712_vm2, %v7957_v41, %v1792_v1 }
 0x4d6   :  { %v2292_v27 = vsel %vm1319_vm6, %v2276_v28, %v2110_v63 }
 0x4d7   :  { %v2014_v11 = vpop.permute.xlu1 %2013 }
 0x4d8   :  { %v1969_v17 = vpop.permute.xlu0 %1968  ;;  %v2261_v51 = vsel %vm1285_vm4, %v2245_v3, %v2014_v11 }
 0x4db   :  { %v1856_v21 = vpop.permute.xlu1 %1855 }
 0x4dc   :  { %v2114_v47 = vpop.permute.xlu0 %2113  ;;  %v2215_v4 = vsel %vm396_vm1, %v2199_v62, %v1856_v21 }
 0x4df   :  { %v2063_v7 = vpop.permute.xlu1 %2062 }
 0x4e0   :  { %v1854_v8 = vpop.permute.xlu0 %1853  ;;  %v2277_v0 = vsel %vm1302_vm5, %v2261_v51, %v2063_v7 }
 0x4e1   :  { %v2214_v20 = vsel %vm396_vm1, %v2198_v15, %v1854_v8 }
 0x4e3   :  { %v1920_v25 = vpop.permute.xlu1 %1919 }
 0x4e4   :  { %v1918_v53 = vpop.permute.xlu0 %1917  ;;  %v2231_v60 = vsel %vm1252_vm3, %v2215_v4, %v1920_v25 }
 0x4e5   :  { %v2230_v42 = vsel %vm1252_vm3, %v2214_v20, %v1918_v53  ;;  %v2247_v13 = vsel %vm83_vm0, %v2231_v60, %v1969_v17 }
 0x4e7   :  { %v2112_v9 = vpop.permute.xlu1 %2111 }
 0x4e8   :  { %v1967_v55 = vpop.permute.xlu0 %1966  ;;  %v2293_v52 = vsel %vm1319_vm6, %v2277_v0, %v2112_v9 }
 0x4e9   :  { %v2246_v5 = vsel %vm83_vm0, %v2230_v42, %v1967_v55 }
 0x4eb   :  { %v2016_v24 = vpop.permute.xlu1 %2015 }
 0x4ec   :  { %v2159_v57 = vpop.permute.xlu0 %2158  ;;  %v2262_v11 = vsel %vm1285_vm4, %v2246_v5, %v2016_v24 }
 0x4ed   :  { %v2308_v40 = vsel %vm1336_vm7, %v2292_v27, %v2159_v57 }
 0x4ee   :  { %v2324_v43 = vsel %vm9287_vm8, %v2308_v40, 0.0 }
 0x4ef   :  { %5703 = vmatprep.mubr.msk.f32.mxu0 %vm1373_vm9, %v2324_v43  ;;  %v1973_v38 = vpop.permute.xlu1 %1972 }
 0x4f0   :  { %v2161_v6 = vpop.permute.xlu0 %2160 }
 0x4f1   :  { %v2309_v63 = vsel %vm1336_vm7, %v2293_v52, %v2161_v6 }
 0x4f2   :  { %v2325_v26 = vsel %vm9288_vm10, %v2309_v63, 0.0 }
 0x4f3   :  { %5704 = vmatmul.mubr.msk.f32.gmra.mrb[20].mxu0 %vm1373_vm9, %v2325_v26  ;;  %v2118_v59 = vpop.permute.xlu1 %2117 }
 0x4f4   :  { %v2065_v14 = vpop.permute.xlu0 %2064 }
 0x4f5   :  { %v2278_v33 = vsel %vm1302_vm5, %v2262_v11, %v2065_v14 }
 0x4f6   :  { %v2294_v41 = vsel %vm1319_vm6, %v2278_v33, %v2114_v47  ;;  %v2200_v47 = vsel %vm712_vm2, %v7971_v34, %v8132_v19 }
 0x4f7   :  { %v1796_v44 = vpop.permute.xlu1 %1795 }
 0x4f8   :  { %v2022_v29 = vpop.permute.xlu0 %2021  ;;  %v2201_v35 = vsel %vm712_vm2, %v8040_v16, %v1796_v44 }
 0x4fb   :  { %v2018_v22 = vpop.permute.xlu1 %2017 }
 0x4fc   :  { %v2071_v2 = vpop.permute.xlu0 %2070  ;;  %v2263_v21 = vsel %vm1285_vm4, %v2247_v13, %v2018_v22 }
 0x4ff   :  { %v1860_v36 = vpop.permute.xlu1 %1859 }
 0x500   :  { %v1858_v49 = vpop.permute.xlu0 %1857  ;;  %v2217_v8 = vsel %vm396_vm1, %v2201_v35, %v1860_v36 }
 0x501   :  { %v2216_v28 = vsel %vm396_vm1, %v2200_v47, %v1858_v49 }
 0x503   :  { %v2067_v50 = vpop.permute.xlu1 %2066 }
 0x504   :  { %v1922_v31 = vpop.permute.xlu0 %1921  ;;  %v2279_v25 = vsel %vm1302_vm5, %v2263_v21, %v2067_v50 }
 0x505   :  { %v2232_v54 = vsel %vm1252_vm3, %v2216_v28, %v1922_v31 }
 0x507   :  { %v1924_v10 = vpop.permute.xlu1 %1923 }
 0x508   :  { %v1971_v7 = vpop.permute.xlu0 %1970  ;;  %v2233_v53 = vsel %vm1252_vm3, %v2217_v8, %v1924_v10 }
 0x509   :  { %v2249_v55 = vsel %vm83_vm0, %v2233_v53, %v1973_v38  ;;  %v2248_v24 = vsel %vm83_vm0, %v2232_v54, %v1971_v7  ;;  %vm6603_vm0 = vmmov 0  }
 0x50a   :  { %v2265_v30 = vsel %vm1285_vm4, %v2249_v55, %v2022_v29 }
 0x50b   :  { %v2116_v1 = vpop.permute.xlu1 %2115  ;;  %v2281_v19 = vsel %vm1302_vm5, %v2265_v30, %v2071_v2 }
 0x50c   :  { %v2163_v58 = vpop.permute.xlu0 %2162  ;;  %v2295_v9 = vsel %vm1319_vm6, %v2279_v25, %v2116_v1  ;;  %v2297_v43 = vsel %vm1319_vm6, %v2281_v19, %v7768_v48 }
 0x50d   :  { %v2310_v45 = vsel %vm1336_vm7, %v2294_v41, %v2163_v58 }
 0x50e   :  { %v2326_v16 = vsel %vm9289_vm11, %v2310_v45, 0.0 }
 0x50f   :  { %5706 = vmatprep.mubr.msk.f32.mxu0 %vm1373_vm9, %v2326_v16  ;;  %v2165_v39 = vpop.permute.xlu1 %2164 }
 0x510   :  { %v2020_v17 = vpop.permute.xlu0 %2019  ;;  %v2311_v57 = vsel %vm1336_vm7, %v2295_v9, %v2165_v39 }
 0x511   :  { %v2327_v27 = vsel %vm9290_vm12, %v2311_v57, 0.0  ;;  %v2264_v34 = vsel %vm1285_vm4, %v2248_v24, %v2020_v17 }
 0x512   :  { %5707 = vmatmul.mubr.msk.f32.gmra.mrb[22].mxu0 %vm1373_vm9, %v2327_v27 }
 0x513   :  { %v2069_v3 = vpop.permute.xlu1 %2068 }
 0x514   :  { %v2169_v40 = vpop.permute.xlu0 %2168  ;;  %v2280_v51 = vsel %vm1302_vm5, %v2264_v34, %v2069_v3  ;;  %v9291_v3 = vld [vmem:[#allocation3_spill] sm:$0xff] }
 0x515   :  { %v2313_v0 = vsel %vm1336_vm7, %v2297_v43, %v2169_v40  ;;  %v2296_v37 = vsel %vm1319_vm6, %v2280_v51, %v2118_v59 }
 0x516   :  { %v2329_v63 = vsel %vm56_vm15, %v2313_v0, 0.0 }
 0x517   :  { %v2167_v52 = vpop.permute.xlu1 %2166 }
 0x518   :  { %v2312_v6 = vsel %vm1336_vm7, %v2296_v37, %v2167_v52 }
 0x519   :  { %v2328_v38 = vsel %vm55_vm14, %v2312_v6, 0.0 }
 0x51a   :  { %5709 = vmatprep.mubr.msk.f32.mxu0 %vm1373_vm9, %v2328_v38 }
 0x51b   :  { %5710 = vmatmul.mubr.msk.f32.gmra.mrb[24].mxu0 %vm1373_vm9, %v2329_v63  ;;  %v8215_v26 = vpop.permute.xlu1 %2367 }
 0x523   :  { %v5690_v48 = vpop.f32.mrb[10].mxu0 }
 0x524   :  { %v2490_v14 = vadd.f32 %v5690_v48, %v8215_v26  ;;  %v2484_v29 = vpop.f32.mrb[11].mxu0 }
 0x525   :  { %v2485_v59 = vadd.f32 %v2484_v29, %v8215_v26 }
 0x526   :  { %v5252_v44 = vmul.f32 -1.442695, %v2490_v14 }
 0x527   :  { %v5251_v2 = vmul.f32 -1.442695, %v2485_v59 }
 0x528   :  { %6125 = vpow2.f32 %v5252_v44 }
 0x529   :  { %6127 = vpow2.f32 %v5251_v2 }
 0x532   :  { %v6126_v46 = vpop.eup %6125 }
 0x533   :  { %v6128_v22 = vpop.eup %6127  ;;  %v2612_v56 = vadd.f32 1.0, %v6126_v46 }
 0x534   :  { %v2611_v49 = vadd.f32 1.0, %v6128_v22  ;;  %v9292_v22 = vld [vmem:[#allocation4_spill] sm:$0xff] }
 0x535   :  { %6129 = vrcp.f32 %v2612_v56 }
 0x536   :  { %6131 = vrcp.f32 %v2611_v49  ;;  %v9293_v49 = vld [vmem:[#allocation5_spill] sm:$0xff] }
 0x53f   :  { %v6130_v36 = vpop.eup %6129 }
 0x540   :  { %v6132_v15 = vpop.eup %6131  ;;  %v2660_v31 = vmul.f32 %v6130_v36, %v2490_v14 }
 0x541   :  { %v2659_v50 = vmul.f32 %v6132_v15, %v2485_v59 }
 0x542   :  { %v2676_v20 = vadd.f32 %v2660_v31, %v6888_v61 }
 0x543   :  { %v2675_v42 = vadd.f32 %v2659_v50, %v6892_v12 }
 0x544   :  { %v2692_v11 = vsel %vm712_vm2, %v2676_v20, %v6888_v61 }
 0x545   :  { %v2691_v5 = vsel %vm712_vm2, %v2675_v42, %v6892_v12 }
 0x546   :  { %v5693_v62 = vpop.f32.mrb[12].mxu0  ;;  %5716 = vmatprep.mubr.msk.f32.mxu1 %vm396_vm1, %v2691_v5 }
 0x547   :  { %v2500_v7 = vadd.f32 %v5693_v62, %v8215_v26  ;;  %v2494_v10 = vpop.f32.mrb[13].mxu0  ;;  %5717 = vmatmul.mubr.msk.f32.vlgmr.msra.gmra.mrb[38].mxu1 %vm396_vm1, %v2692_v11 }
 0x548   :  { %v2495_v4 = vadd.f32 %v2494_v10, %v8215_v26 }
 0x549   :  { %v5254_v33 = vmul.f32 -1.442695, %v2500_v7 }
 0x54a   :  { %v5253_v35 = vmul.f32 -1.442695, %v2495_v4 }
 0x54b   :  { %6133 = vpow2.f32 %v5254_v33  ;;  %v6602_v33 = vmov 0.0|0.0  }
 0x54c   :  { %6135 = vpow2.f32 %v5253_v35  ;;  %5830 = vmatprep.subr.bf16.mxu0 %v6602_v33 }
 0x555   :  { %v6134_v60 = vpop.eup %6133 }
 0x556   :  { %v6136_v8 = vpop.eup %6135  ;;  %v2614_v12 = vadd.f32 1.0, %v6134_v60 }
 0x557   :  { %v2613_v53 = vadd.f32 1.0, %v6136_v8 }
 0x558   :  { %6137 = vrcp.f32 %v2614_v12 }
 0x559   :  { %6139 = vrcp.f32 %v2613_v53  ;;  %v9294_v53 = vld [vmem:[#allocation6_spill] sm:$0xff] }
 0x562   :  { %v6138_v58 = vpop.eup %6137 }
 0x563   :  { %v6140_v41 = vpop.eup %6139  ;;  %v2662_v61 = vmul.f32 %v6138_v58, %v2500_v7 }
 0x564   :  { %v2661_v1 = vmul.f32 %v6140_v41, %v2495_v4  ;;  %v9295_v41 = vld [vmem:[#allocation7_spill] sm:$0xff] }
 0x565   :  { %v2678_v13 = vadd.f32 %v2662_v61, %v6906_v18 }
 0x566   :  { %v2677_v45 = vadd.f32 %v2661_v1, %v6910_v23  ;;  %v5696_v21 = vpop.f32.mrb[14].mxu0 }
 0x567   :  { %v2510_v55 = vadd.f32 %v5696_v21, %v8215_v26  ;;  %v2504_v16 = vpop.f32.mrb[15].mxu0  ;;  %v2694_v17 = vsel %vm712_vm2, %v2678_v13, %v6906_v18 }
 0x568   :  { %v2505_v25 = vadd.f32 %v2504_v16, %v8215_v26  ;;  %v2693_v47 = vsel %vm712_vm2, %v2677_v45, %v6910_v23 }
 0x569   :  { %v5256_v9 = vmul.f32 -1.442695, %v2510_v55  ;;  %5719 = vmatprep.mubr.msk.f32.mxu1 %vm396_vm1, %v2693_v47 }
 0x56a   :  { %v5255_v39 = vmul.f32 -1.442695, %v2505_v25  ;;  %5720 = vmatmul.mubr.msk.f32.gmra.mrb[40].mxu1 %vm396_vm1, %v2694_v17 }
 0x56b   :  { %6141 = vpow2.f32 %v5256_v9 }
 0x56c   :  { %6143 = vpow2.f32 %v5255_v39 }
 0x575   :  { %v6142_v28 = vpop.eup %6141 }
 0x576   :  { %v6144_v30 = vpop.eup %6143  ;;  %v2616_v57 = vadd.f32 1.0, %v6142_v28 }
 0x577   :  { %v2615_v54 = vadd.f32 1.0, %v6144_v30 }
 0x578   :  { %6145 = vrcp.f32 %v2616_v57 }
 0x579   :  { %6147 = vrcp.f32 %v2615_v54 }
 0x582   :  { %v6146_v27 = vpop.eup %6145 }
 0x583   :  { %v6148_v24 = vpop.eup %6147  ;;  %v2664_v23 = vmul.f32 %v6146_v27, %v2510_v55 }
 0x584   :  { %v2663_v34 = vmul.f32 %v6148_v24, %v2505_v25  ;;  %v9296_v24 = vld [vmem:[#allocation8_spill] sm:$0xff] }
 0x585   :  { %v2680_v19 = vadd.f32 %v2664_v23, %v6918_v32 }
 0x586   :  { %v2679_v40 = vadd.f32 %v2663_v34, %v9291_v3  ;;  %v5699_v18 = vpop.f32.mrb[16].mxu0  ;;  %v9297_v34 = vld [vmem:[#allocation9_spill] sm:$0xff] }
 0x587   :  { %v2520_v51 = vadd.f32 %v5699_v18, %v8215_v26  ;;  %v2514_v43 = vpop.f32.mrb[17].mxu0  ;;  %v2696_v6 = vsel %vm712_vm2, %v2680_v19, %v6918_v32 }
 0x588   :  { %v2515_v0 = vadd.f32 %v2514_v43, %v8215_v26  ;;  %v2695_v37 = vsel %vm712_vm2, %v2679_v40, %v9291_v3 }
 0x589   :  { %v5258_v52 = vmul.f32 -1.442695, %v2520_v51  ;;  %5722 = vmatprep.mubr.msk.f32.mxu1 %vm396_vm1, %v2695_v37 }
 0x58a   :  { %v5257_v38 = vmul.f32 -1.442695, %v2515_v0  ;;  %5723 = vmatmul.mubr.msk.f32.gmra.mrb[42].mxu1 %vm396_vm1, %v2696_v6 }
 0x58b   :  { %6149 = vpow2.f32 %v5258_v52 }
 0x58c   :  { %6151 = vpow2.f32 %v5257_v38 }
 0x595   :  { %v6150_v63 = vpop.eup %6149 }
 0x596   :  { %v6152_v48 = vpop.eup %6151  ;;  %v2618_v14 = vadd.f32 1.0, %v6150_v63 }
 0x597   :  { %v2617_v29 = vadd.f32 1.0, %v6152_v48 }
 0x598   :  { %6153 = vrcp.f32 %v2618_v14 }
 0x599   :  { %6155 = vrcp.f32 %v2617_v29 }
 0x5a2   :  { %v6154_v59 = vpop.eup %6153 }
 0x5a3   :  { %v6156_v44 = vpop.eup %6155  ;;  %v2666_v2 = vmul.f32 %v6154_v59, %v2520_v51 }
 0x5a4   :  { %v2665_v46 = vmul.f32 %v6156_v44, %v2515_v0 }
 0x5a5   :  { %v2682_v56 = vadd.f32 %v2666_v2, %v9292_v22 }
 0x5a6   :  { %v2681_v36 = vadd.f32 %v2665_v46, %v9293_v49  ;;  %v5702_v32 = vpop.f32.mrb[18].mxu0 }
 0x5a7   :  { %v2530_v15 = vadd.f32 %v5702_v32, %v8215_v26  ;;  %v2524_v31 = vpop.f32.mrb[19].mxu0  ;;  %v2698_v5 = vsel %vm712_vm2, %v2682_v56, %v9292_v22 }
 0x5a8   :  { %v2525_v50 = vadd.f32 %v2524_v31, %v8215_v26  ;;  %v2697_v20 = vsel %vm712_vm2, %v2681_v36, %v9293_v49 }
 0x5a9   :  { %v5260_v42 = vmul.f32 -1.442695, %v2530_v15  ;;  %5725 = vmatprep.mubr.msk.f32.mxu1 %vm396_vm1, %v2697_v20 }
 0x5aa   :  { %v5259_v62 = vmul.f32 -1.442695, %v2525_v50  ;;  %5726 = vmatmul.mubr.msk.f32.gmra.mrb[44].mxu1 %vm396_vm1, %v2698_v5 }
 0x5ab   :  { %6157 = vpow2.f32 %v5260_v42  ;;  %v9299_v42 = vld [vmem:[#allocation11_spill] sm:$0xff] }
 0x5ac   :  { %6159 = vpow2.f32 %v5259_v62 }
 0x5b5   :  { %v6158_v11 = vpop.eup %6157 }
 0x5b6   :  { %v6160_v7 = vpop.eup %6159  ;;  %v2620_v10 = vadd.f32 1.0, %v6158_v11 }
 0x5b7   :  { %v2619_v4 = vadd.f32 1.0, %v6160_v7 }
 0x5b8   :  { %6161 = vrcp.f32 %v2620_v10 }
 0x5b9   :  { %6163 = vrcp.f32 %v2619_v4 }
 0x5c2   :  { %v6162_v35 = vpop.eup %6161 }
 0x5c3   :  { %v6164_v60 = vpop.eup %6163  ;;  %v2668_v8 = vmul.f32 %v6162_v35, %v2530_v15 }
 0x5c4   :  { %v2667_v12 = vmul.f32 %v6164_v60, %v2525_v50  ;;  %v9298_v50 = vld [vmem:[#allocation10_spill] sm:$0xff]  ;;  %v9300_v60 = vld [vmem:[#allocation12_spill] sm:$0xff] }
 0x5c5   :  { %v2684_v58 = vadd.f32 %v2668_v8, %v9294_v53 }
 0x5c6   :  { %v2683_v61 = vadd.f32 %v2667_v12, %v9295_v41  ;;  %v5705_v1 = vpop.f32.mrb[20].mxu0  ;;  %v9301_v12 = vld [vmem:[#allocation13_spill] sm:$0xff] }
 0x5c7   :  { %v2540_v13 = vadd.f32 %v5705_v1, %v8215_v26  ;;  %v2534_v45 = vpop.f32.mrb[21].mxu0  ;;  %v2700_v25 = vsel %vm712_vm2, %v2684_v58, %v9294_v53 }
 0x5c8   :  { %v2535_v21 = vadd.f32 %v2534_v45, %v8215_v26  ;;  %v2699_v55 = vsel %vm712_vm2, %v2683_v61, %v9295_v41  ;;  %v8301_v61 = vld [vmem:[%s9229_s1 + $0xa8] ss:$0 sm:$0xff] }
 0x5c9   :  { %v5262_v16 = vmul.f32 -1.442695, %v2540_v13  ;;  %5728 = vmatprep.mubr.msk.f32.mxu1 %vm396_vm1, %v2699_v55 }
 0x5ca   :  { %v5261_v47 = vmul.f32 -1.442695, %v2535_v21  ;;  %5729 = vmatmul.mubr.msk.f32.gmra.mrb[46].mxu1 %vm396_vm1, %v2700_v25 }
 0x5cb   :  { %6165 = vpow2.f32 %v5262_v16 }
 0x5cc   :  { %6167 = vpow2.f32 %v5261_v47 }
 0x5d5   :  { %v6166_v9 = vpop.eup %6165 }
 0x5d6   :  { %v6168_v17 = vpop.eup %6167  ;;  %v2622_v39 = vadd.f32 1.0, %v6166_v9 }
 0x5d7   :  { %v2621_v28 = vadd.f32 1.0, %v6168_v17 }
 0x5d8   :  { %6169 = vrcp.f32 %v2622_v39 }
 0x5d9   :  { %6171 = vrcp.f32 %v2621_v28 }
 0x5e2   :  { %v6170_v30 = vpop.eup %6169 }
 0x5e3   :  { %v6172_v57 = vpop.eup %6171  ;;  %v2670_v54 = vmul.f32 %v6170_v30, %v2540_v13 }
 0x5e4   :  { %v2669_v27 = vmul.f32 %v6172_v57, %v2535_v21 }
 0x5e5   :  { %v2686_v23 = vadd.f32 %v2670_v54, %v9296_v24  ;;  %v5708_v3 = vpop.f32.mrb[22].mxu0 }
 0x5e6   :  { %v2685_v19 = vadd.f32 %v2669_v27, %v9297_v34  ;;  %v2550_v40 = vadd.f32 %v5708_v3, %v8215_v26  ;;  %v2544_v18 = vpop.f32.mrb[23].mxu0 }
 0x5e7   :  { %v2545_v51 = vadd.f32 %v2544_v18, %v8215_v26  ;;  %v2702_v37 = vsel %vm712_vm2, %v2686_v23, %v9296_v24 }
 0x5e8   :  { %v2701_v43 = vsel %vm712_vm2, %v2685_v19, %v9297_v34  ;;  %v5264_v0 = vmul.f32 -1.442695, %v2550_v40 }
 0x5e9   :  { %5731 = vmatprep.mubr.msk.f32.mxu1 %vm396_vm1, %v2701_v43  ;;  %v5263_v52 = vmul.f32 -1.442695, %v2545_v51 }
 0x5ea   :  { %5732 = vmatmul.mubr.msk.f32.gmra.mrb[48].mxu1 %vm396_vm1, %v2702_v37  ;;  %6173 = vpow2.f32 %v5264_v0 }
 0x5eb   :  { %6175 = vpow2.f32 %v5263_v52 }
 0x5ee   :  { %v5711_v6 = vpop.f32.mrb[24].mxu0 }
 0x5ef   :  { %v2560_v38 = vadd.f32 %v5711_v6, %v8215_v26  ;;  %v2554_v63 = vpop.f32.mrb[25].mxu0 }
 0x5f0   :  { %v2555_v48 = vadd.f32 %v2554_v63, %v8215_v26 }
 0x5f1   :  { %v5266_v14 = vmul.f32 -1.442695, %v2560_v38 }
 0x5f2   :  { %v5265_v29 = vmul.f32 -1.442695, %v2555_v48 }
 0x5f3   :  { %6177 = vpow2.f32 %v5266_v14 }
 0x5f4   :  { %v6174_v59 = vpop.eup %6173  ;;  %6179 = vpow2.f32 %v5265_v29 }
 0x5f5   :  { %v6176_v44 = vpop.eup %6175  ;;  %v2624_v2 = vadd.f32 1.0, %v6174_v59 }
 0x5f6   :  { %v2623_v46 = vadd.f32 1.0, %v6176_v44 }
 0x5f7   :  { %6181 = vrcp.f32 %v2624_v2 }
 0x5f8   :  { %6183 = vrcp.f32 %v2623_v46 }
 0x5fd   :  { %v6178_v22 = vpop.eup %6177 }
 0x5fe   :  { %v6180_v56 = vpop.eup %6179  ;;  %v2626_v49 = vadd.f32 1.0, %v6178_v22 }
 0x5ff   :  { %v2625_v36 = vadd.f32 1.0, %v6180_v56 }
 0x600   :  { %6185 = vrcp.f32 %v2626_v49 }
 0x601   :  { %v6182_v32 = vpop.eup %6181  ;;  %6187 = vrcp.f32 %v2625_v36 }
 0x602   :  { %v6184_v15 = vpop.eup %6183  ;;  %v2672_v31 = vmul.f32 %v6182_v32, %v2550_v40 }
 0x603   :  { %v2671_v26 = vmul.f32 %v6184_v15, %v2545_v51 }
 0x604   :  { %v2688_v20 = vadd.f32 %v2672_v31, %v9298_v50 }
 0x605   :  { %v2687_v5 = vadd.f32 %v2671_v26, %v9299_v42 }
 0x606   :  { %v2704_v11 = vsel %vm712_vm2, %v2688_v20, %v9298_v50 }
 0x607   :  { %v2703_v62 = vsel %vm712_vm2, %v2687_v5, %v9299_v42 }
 0x608   :  { %5734 = vmatprep.mubr.msk.f32.mxu1 %vm396_vm1, %v2703_v62 }
 0x609   :  { %5735 = vmatmul.mubr.msk.f32.gmra.mrb[50].mxu1 %vm396_vm1, %v2704_v11  ;;  %v6604_v11 = vmov 0.0  }
 0x60a   :  { %v6186_v7 = vpop.eup %6185  ;;  %5772 = vmatprep.mubr.msk.f32.mxu0 %vm6603_vm0, %v6604_v11 }
 0x60b   :  { %v6188_v10 = vpop.eup %6187  ;;  %v2674_v4 = vmul.f32 %v6186_v7, %v2560_v38 }
 0x60c   :  { %v2673_v35 = vmul.f32 %v6188_v10, %v2555_v48 }
 0x60d   :  { %v2690_v8 = vadd.f32 %v2674_v4, %v9300_v60 }
 0x60e   :  { %v2689_v53 = vadd.f32 %v2673_v35, %v9301_v12 }
 0x60f   :  { %v2706_v41 = vsel %vm712_vm2, %v2690_v8, %v9300_v60 }
 0x610   :  { %v2705_v58 = vsel %vm712_vm2, %v2689_v53, %v9301_v12  ;;  %vm5130_vm2 = vcmask 1024  }
 0x611   :  { %5737 = vmatprep.mubr.msk.f32.mxu1 %vm396_vm1, %v2705_v58 }
 0x612   :  { %5738 = vmatmul.mubr.msk.f32.gmra.mrb[52].mxu1 %vm396_vm1, %v2706_v41 }
 0x61a   :  { %v5718_v1 = vpop.f32.mrb[38].mxu1 }
 0x61b   :  { %v2834_v13 = vadd.f32 %v5718_v1, %v8301_v61  ;;  %v2828_v45 = vpop.f32.mrb[39].mxu1 }
 0x61c   :  { %v2829_v21 = vadd.f32 %v8301_v61, %v2828_v45 }
 0x61d   :  { %v5285_v55 = vmul.f32 -1.442695, %v2834_v13 }
 0x61e   :  { %v5284_v16 = vmul.f32 -1.442695, %v2829_v21 }
 0x61f   :  { %6189 = vpow2.f32 %v5285_v55 }
 0x620   :  { %6191 = vpow2.f32 %v5284_v16 }
 0x629   :  { %v6190_v25 = vpop.eup %6189 }
 0x62a   :  { %v6192_v47 = vpop.eup %6191  ;;  %v2956_v9 = vadd.f32 1.0, %v6190_v25 }
 0x62b   :  { %v2955_v17 = vadd.f32 1.0, %v6192_v47 }
 0x62c   :  { %6193 = vrcp.f32 %v2956_v9 }
 0x62d   :  { %6195 = vrcp.f32 %v2955_v17 }
 0x636   :  { %v6194_v39 = vpop.eup %6193 }
 0x637   :  { %v6196_v28 = vpop.eup %6195  ;;  %v8305_v30 = vmul.f32 %v6194_v39, %v2834_v13 }
 0x638   :  { %v8307_v57 = vmul.f32 %v6196_v28, %v2829_v21 }
 0x63a   :  { %v5831_v54 = vpack.c.bf16 %v8305_v30, %v8307_v57 }
 0x63c   :  { %5832 = vmatpush3.bf16.msra.mxu0 %v5831_v54 }
 0x63d   :  { %v5721_v27 = vpop.f32.mrb[40].mxu1  ;;  %5833 = vmatprep.subr.bf16.mxu0 %v6602_v33 }
 0x63e   :  { %v2844_v24 = vadd.f32 %v5721_v27, %v8301_v61  ;;  %v2838_v23 = vpop.f32.mrb[41].mxu1 }
 0x63f   :  { %v2839_v34 = vadd.f32 %v8301_v61, %v2838_v23 }
 0x640   :  { %v5287_v19 = vmul.f32 -1.442695, %v2844_v24 }
 0x641   :  { %v5286_v3 = vmul.f32 -1.442695, %v2839_v34 }
 0x642   :  { %6197 = vpow2.f32 %v5287_v19 }
 0x643   :  { %6199 = vpow2.f32 %v5286_v3 }
 0x64c   :  { %v6198_v40 = vpop.eup %6197 }
 0x64d   :  { %v6200_v18 = vpop.eup %6199  ;;  %v2958_v51 = vadd.f32 1.0, %v6198_v40 }
 0x64e   :  { %v2957_v43 = vadd.f32 1.0, %v6200_v18 }
 0x64f   :  { %6201 = vrcp.f32 %v2958_v51 }
 0x650   :  { %6203 = vrcp.f32 %v2957_v43 }
 0x659   :  { %v6202_v0 = vpop.eup %6201 }
 0x65a   :  { %v6204_v37 = vpop.eup %6203  ;;  %v8314_v52 = vmul.f32 %v6202_v0, %v2844_v24 }
 0x65b   :  { %v8316_v6 = vmul.f32 %v6204_v37, %v2839_v34 }
 0x65d   :  { %v5834_v38 = vpack.c.bf16 %v8314_v52, %v8316_v6  ;;  %v5724_v63 = vpop.f32.mrb[42].mxu1 }
 0x65e   :  { %v2854_v48 = vadd.f32 %v5724_v63, %v8301_v61  ;;  %v2848_v14 = vpop.f32.mrb[43].mxu1 }
 0x65f   :  { %v2849_v29 = vadd.f32 %v8301_v61, %v2848_v14  ;;  %5835 = vmatpush3.bf16.msra.mxu0 %v5834_v38 }
 0x660   :  { %v5289_v59 = vmul.f32 -1.442695, %v2854_v48  ;;  %5836 = vmatprep.subr.bf16.mxu0 %v6602_v33 }
 0x661   :  { %v5288_v44 = vmul.f32 -1.442695, %v2849_v29 }
 0x662   :  { %6205 = vpow2.f32 %v5289_v59 }
 0x663   :  { %6207 = vpow2.f32 %v5288_v44 }
 0x66c   :  { %v6206_v2 = vpop.eup %6205 }
 0x66d   :  { %v6208_v46 = vpop.eup %6207  ;;  %v2960_v22 = vadd.f32 1.0, %v6206_v2 }
 0x66e   :  { %v2959_v56 = vadd.f32 1.0, %v6208_v46 }
 0x66f   :  { %6209 = vrcp.f32 %v2960_v22 }
 0x670   :  { %6211 = vrcp.f32 %v2959_v56 }
 0x679   :  { %v6210_v49 = vpop.eup %6209 }
 0x67a   :  { %v6212_v36 = vpop.eup %6211  ;;  %v8323_v32 = vmul.f32 %v6210_v49, %v2854_v48 }
 0x67b   :  { %v8325_v15 = vmul.f32 %v6212_v36, %v2849_v29 }
 0x67d   :  { %v5837_v31 = vpack.c.bf16 %v8323_v32, %v8325_v15  ;;  %v5727_v26 = vpop.f32.mrb[44].mxu1 }
 0x67e   :  { %v2864_v50 = vadd.f32 %v5727_v26, %v8301_v61  ;;  %v2858_v20 = vpop.f32.mrb[45].mxu1 }
 0x67f   :  { %v2859_v42 = vadd.f32 %v8301_v61, %v2858_v20  ;;  %5838 = vmatpush3.bf16.msra.mxu0 %v5837_v31 }
 0x680   :  { %v5291_v5 = vmul.f32 -1.442695, %v2864_v50  ;;  %5839 = vmatprep.subr.bf16.mxu0 %v6602_v33 }
 0x681   :  { %v5290_v62 = vmul.f32 -1.442695, %v2859_v42 }
 0x682   :  { %6213 = vpow2.f32 %v5291_v5 }
 0x683   :  { %6215 = vpow2.f32 %v5290_v62 }
 0x68c   :  { %v6214_v7 = vpop.eup %6213 }
 0x68d   :  { %v6216_v10 = vpop.eup %6215  ;;  %v2962_v4 = vadd.f32 1.0, %v6214_v7 }
 0x68e   :  { %v2961_v35 = vadd.f32 1.0, %v6216_v10 }
 0x68f   :  { %6217 = vrcp.f32 %v2962_v4 }
 0x690   :  { %6219 = vrcp.f32 %v2961_v35 }
 0x699   :  { %v6218_v60 = vpop.eup %6217 }
 0x69a   :  { %v6220_v8 = vpop.eup %6219  ;;  %v8334_v12 = vmul.f32 %v6218_v60, %v2864_v50 }
 0x69b   :  { %v8336_v53 = vmul.f32 %v6220_v8, %v2859_v42 }
 0x69d   :  { %v5840_v58 = vpack.c.bf16 %v8334_v12, %v8336_v53  ;;  %v5730_v41 = vpop.f32.mrb[46].mxu1 }
 0x69e   :  { %v2874_v1 = vadd.f32 %v5730_v41, %v8301_v61  ;;  %v2868_v13 = vpop.f32.mrb[47].mxu1 }
 0x69f   :  { %v2869_v45 = vadd.f32 %v8301_v61, %v2868_v13  ;;  %5841 = vmatpush3.bf16.msra.mxu0 %v5840_v58 }
 0x6a0   :  { %v5293_v21 = vmul.f32 -1.442695, %v2874_v1  ;;  %5842 = vmatprep.subr.bf16.mxu0 %v6602_v33 }
 0x6a1   :  { %v5292_v55 = vmul.f32 -1.442695, %v2869_v45 }
 0x6a2   :  { %6221 = vpow2.f32 %v5293_v21 }
 0x6a3   :  { %6223 = vpow2.f32 %v5292_v55  ;;  %v3089_v55 = vld [vmem:[%s9229_s1 + $0x40] sm:$0xff] }
 0x6ac   :  { %v6222_v16 = vpop.eup %6221 }
 0x6ad   :  { %v6224_v25 = vpop.eup %6223  ;;  %v2964_v47 = vadd.f32 1.0, %v6222_v16  ;;  %v3090_v16 = vld [vmem:[%s9229_s1 + $0x48] sm:$0xff] }
 0x6ae   :  { %v2963_v9 = vadd.f32 1.0, %v6224_v25 }
 0x6af   :  { %6225 = vrcp.f32 %v2964_v47  ;;  %v8385_v47 = vld [vmem:[%s9232_s3] sm:$0x3] }
 0x6b0   :  { %6227 = vrcp.f32 %v2963_v9  ;;  %v5855_v9 = vpack.c.bf16 %v3090_v16, %v3089_v55 }
 0x6b9   :  { %v6226_v17 = vpop.eup %6225 }
 0x6ba   :  { %v6228_v39 = vpop.eup %6227  ;;  %v8343_v28 = vmul.f32 %v6226_v17, %v2874_v1  ;;  %v6605_v17 = vmov 72  }
 0x6bb   :  { %v8345_v54 = vmul.f32 %v6228_v39, %v2869_v45  ;;  %5897 = vset.pattern.permute.xlu1 %v6605_v17  ;;  %5896 = vset.pattern.permute.xlu0 %v6605_v17  ;;  %v6577_v39 = vld [vmem:[%s9231_s2 + $0x8] sm:$0xff] }
 0x6bc   :  { %3177 = vperm.xlu1 %5897, %v6577_v39  }
 0x6bd   :  { %v5843_v27 = vpack.c.bf16 %v8343_v28, %v8345_v54  ;;  %v5733_v24 = vpop.f32.mrb[48].mxu1 }
 0x6be   :  { %v2884_v23 = vadd.f32 %v5733_v24, %v8301_v61  ;;  %v2878_v34 = vpop.f32.mrb[49].mxu1  ;;  %v6580_v24 = vld [vmem:[%s9231_s2 + $0x28] sm:$0xff] }
 0x6bf   :  { %v2879_v19 = vadd.f32 %v8301_v61, %v2878_v34  ;;  %5844 = vmatpush3.bf16.msra.mxu0 %v5843_v27  ;;  %v6606_v27 = vmov 73   ;;  %v6582_v34 = vld [vmem:[%s9231_s2 + $0x20] sm:$0xff] }
 0x6c0   :  { %v5295_v3 = vmul.f32 -1.442695, %v2884_v23  ;;  %5845 = vmatprep.subr.bf16.mxu0 %v6602_v33  ;;  %5898 = vset.pattern.permute.xlu1 %v6606_v27 }
 0x6c1   :  { %v5294_v40 = vmul.f32 -1.442695, %v2879_v19 }
 0x6c2   :  { %6229 = vpow2.f32 %v5295_v3  ;;  %v6584_v3 = vld [vmem:[%s9231_s2 + $0x30] sm:$0xff] }
 0x6c3   :  { %6231 = vpow2.f32 %v5294_v40  ;;  %v6585_v40 = vld [vmem:[%s9231_s2 + $0x48] sm:$0xff] }
 0x6cc   :  { %v6230_v18 = vpop.eup %6229 }
 0x6cd   :  { %v6232_v51 = vpop.eup %6231  ;;  %v2966_v43 = vadd.f32 1.0, %v6230_v18  ;;  %v6586_v18 = vld [vmem:[%s9231_s2 + $0x50] sm:$0xff] }
 0x6ce   :  { %v2965_v0 = vadd.f32 1.0, %v6232_v51  ;;  %v6587_v51 = vld [vmem:[%s9231_s2 + $0x38] sm:$0xff] }
 0x6cf   :  { %6233 = vrcp.f32 %v2966_v43  ;;  %v6588_v43 = vld [vmem:[%s9231_s2 + $0x60] sm:$0xff] }
 0x6d0   :  { %6235 = vrcp.f32 %v2965_v0  ;;  %v6589_v0 = vld [vmem:[%s9231_s2 + $0x68] sm:$0xff] }
 0x6d9   :  { %v6234_v37 = vpop.eup %6233 }
 0x6da   :  { %v6236_v38 = vpop.eup %6235  ;;  %v8352_v63 = vmul.f32 %v6234_v37, %v2884_v23  ;;  %v6581_v23 = vld [vmem:[%s9231_s2 + $0x18] sm:$0xff]  ;;  %v6590_v37 = vld [vmem:[%s9231_s2 + $0x70] sm:$0xff] }
 0x6db   :  { %v8354_v48 = vmul.f32 %v6236_v38, %v2879_v19  ;;  %v6583_v19 = vld [vmem:[%s9231_s2 + $0x40] sm:$0xff]  ;;  %v6591_v38 = vld [vmem:[%s9231_s2 + $0x58] sm:$0xff] }
 0x6dc   :  { %v5736_v29 = vpop.f32.mrb[50].mxu1 }
 0x6dd   :  { %v5846_v14 = vpack.c.bf16 %v8352_v63, %v8354_v48  ;;  %v2894_v59 = vadd.f32 %v5736_v29, %v8301_v61  ;;  %v2888_v44 = vpop.f32.mrb[51].mxu1 }
 0x6de   :  { %v2889_v2 = vadd.f32 %v8301_v61, %v2888_v44  ;;  %v5920_v44 = vld [vmem:[%s9233_s4 + $0x4] ss:$40 sps:$4 sm:$0xff]  }
 0x6df   :  { %5847 = vmatpush3.bf16.msra.mxu0 %v5846_v14  ;;  %v5297_v46 = vmul.f32 -1.442695, %v2894_v59  ;;  %v6592_v14 = vld [vmem:[%s9231_s2 + $0x78] sm:$0xff] }
 0x6e0   :  { %5848 = vmatprep.subr.bf16.mxu0 %v6602_v33  ;;  %v5296_v22 = vmul.f32 -1.442695, %v2889_v2 }
 0x6e1   :  { %6237 = vpow2.f32 %v5297_v46  ;;  %v6607_v46 = vmov 0  }
 0x6e2   :  { %6239 = vpow2.f32 %v5296_v22  ;;  %3732 = vmatprep.mubr.bf16.mxu1 %v6607_v46 }
 0x6e5   :  { %v5739_v56 = vpop.f32.mrb[52].mxu1 }
 0x6e6   :  { %v2904_v49 = vadd.f32 %v5739_v56, %v8301_v61  ;;  %v2898_v36 = vpop.f32.mrb[53].mxu1 }
 0x6e7   :  { %v2899_v31 = vadd.f32 %v8301_v61, %v2898_v36 }
 0x6e8   :  { %v5299_v26 = vmul.f32 -1.442695, %v2904_v49 }
 0x6e9   :  { %v5298_v50 = vmul.f32 -1.442695, %v2899_v31 }
 0x6ea   :  { %6241 = vpow2.f32 %v5299_v26 }
 0x6eb   :  { %v6238_v20 = vpop.eup %6237  ;;  %6243 = vpow2.f32 %v5298_v50 }
 0x6ec   :  { %v6240_v42 = vpop.eup %6239  ;;  %v2968_v5 = vadd.f32 1.0, %v6238_v20 }
 0x6ed   :  { %v2967_v62 = vadd.f32 1.0, %v6240_v42 }
 0x6ee   :  { %6245 = vrcp.f32 %v2968_v5 }
 0x6ef   :  { %6247 = vrcp.f32 %v2967_v62 }
 0x6f4   :  { %v6242_v7 = vpop.eup %6241 }
 0x6f5   :  { %v6244_v10 = vpop.eup %6243  ;;  %v2970_v4 = vadd.f32 1.0, %v6242_v7 }
 0x6f6   :  { %v2969_v35 = vadd.f32 1.0, %v6244_v10 }
 0x6f7   :  { %6249 = vrcp.f32 %v2970_v4 }
 0x6f8   :  { %v6246_v60 = vpop.eup %6245  ;;  %6251 = vrcp.f32 %v2969_v35 }
 0x6f9   :  { %v6248_v8 = vpop.eup %6247  ;;  %v8363_v58 = vmul.f32 %v6246_v60, %v2894_v59  ;;  %v3250_v60 = vlaneseq }
 0x6fa   :  { %v8365_v61 = vmul.f32 %v6248_v8, %v2889_v2  ;;  %v5918_v2 = vld [vmem:[%s9233_s4] ss:$40 sps:$4 sm:$0xff]  }
 0x6fb   :  { %v3251_v8 = vshrl.u32 %v3250_v60, 7 }
 0x6fc   :  { %v5849_v41 = vpack.c.bf16 %v8363_v58, %v8365_v61 }
 0x6fd   :  { %v8461_v16 = vsub.s32 1, %v3251_v8 }
 0x6fe   :  { %5850 = vmatpush3.bf16.msra.mxu0 %v5849_v41 }
 0x6ff   :  { %5851 = vmatprep.subr.bf16.mxu0 %v6602_v33 }
 0x701   :  { %v6250_v1 = vpop.eup %6249 }
 0x702   :  { %v6252_v13 = vpop.eup %6251  ;;  %v8370_v45 = vmul.f32 %v6250_v1, %v2904_v49 }
 0x703   :  { %v8372_v21 = vmul.f32 %v6252_v13, %v2899_v31  ;;  %v8459_v13 = vsub.s32 0, %v3251_v8 }
 0x705   :  { %v5852_v25 = vpack.c.bf16 %v8370_v45, %v8372_v21 }
 0x707   :  { %5853 = vmatpush3.bf16.msra.mxu0 %v5852_v25 }
 0x708   :  { %5854 = vmatprep.subr.bf16.mxu0 %v6602_v33  ;;  %v6578_v33 = vld [vmem:[%s9231_s2] sm:$0xff] }
 0x709   :  { %3172 = vperm.xlu0 %5896, %v6578_v33   ;;  %3271 = vperm.xlu1 %5898, %v6578_v33  }
 0x70a   :  { %5773 = vmatmul.mubr.f32.vlgmr.msra.gmra.mrb[26].mxu0 %v8385_v47 }
 0x70b   :  { %5856 = vmatpush3.bf16.msra.mxu0 %v5855_v9  ;;  %5779 = vmatprep.mubr.msk.f32.mxu0 %vm6603_vm0, %v6604_v11  ;;  %v6579_v11 = vld [vmem:[%s9231_s2 + $0x10] sm:$0xff] }
 0x70c   :  { %3443 = vmatprep.subr.bf16.mxu0 %v5920_v44 }
 0x70d   :  { %5899 = vset.pattern.permute.xlu0 %v6606_v27  ;;  %5900 = vset.pattern.permute.xlu1 %v6605_v17 }
 0x70e   :  { %3275 = vperm.xlu0 %5899, %v6577_v39   ;;  %3182 = vperm.xlu1 %5900, %v6579_v11  }
 0x712   :  { %3279 = vperm.xlu0 %5899, %v6579_v11   ;;  %3187 = vperm.xlu1 %5900, %v6581_v23  }
 0x716   :  { %3291 = vperm.xlu0 %5899, %v6580_v24   ;;  %5901 = vset.pattern.permute.xlu1 %v6606_v27 }
 0x717   :  { %3283 = vperm.xlu1 %5901, %v6581_v23  }
 0x71a   :  { %5904 = vset.pattern.permute.xlu0 %v6605_v17 }
 0x71b   :  { %3192 = vperm.xlu0 %5904, %v6582_v34   ;;  %5902 = vset.pattern.permute.xlu1 %v6605_v17 }
 0x71c   :  { %3197 = vperm.xlu1 %5902, %v6580_v24  }
 0x71f   :  { %3212 = vperm.xlu0 %5904, %v6583_v19  }
 0x720   :  { %5903 = vset.pattern.permute.xlu1 %v6606_v27 }
 0x721   :  { %3287 = vperm.xlu1 %5903, %v6582_v34  }
 0x723   :  { %5907 = vset.pattern.permute.xlu0 %v6606_v27 }
 0x724   :  { %3295 = vperm.xlu0 %5907, %v6584_v3  }
 0x725   :  { %5905 = vset.pattern.permute.xlu1 %v6605_v17 }
 0x726   :  { %3202 = vperm.xlu1 %5905, %v6584_v3  }
 0x728   :  { %3307 = vperm.xlu0 %5907, %v6585_v40  }
 0x72a   :  { %3207 = vperm.xlu1 %5905, %v6587_v51  }
 0x72c   :  { %3311 = vperm.xlu0 %5907, %v6586_v18  }
 0x72e   :  { %5906 = vset.pattern.permute.xlu1 %v6606_v27 }
 0x72f   :  { %3299 = vperm.xlu1 %5906, %v6587_v51  }
 0x730   :  { %5912 = vset.pattern.permute.xlu0 %v6605_v17 }
 0x731   :  { %3232 = vperm.xlu0 %5912, %v6588_v43  }
 0x733   :  { %5908 = vset.pattern.permute.xlu1 %v6605_v17 }
 0x734   :  { %3217 = vperm.xlu1 %5908, %v6585_v40  }
 0x735   :  { %5915 = vset.pattern.permute.xlu0 %v6606_v27 }
 0x736   :  { %3323 = vperm.xlu0 %5915, %v6589_v0  }
 0x738   :  { %5909 = vset.pattern.permute.xlu1 %v6606_v27 }
 0x739   :  { %3303 = vperm.xlu1 %5909, %v6583_v19  }
 0x73a   :  { %3327 = vperm.xlu0 %5915, %v6590_v37  }
 0x73b   :  { %v3178_v22 = vpop.permute.xlu1 %3177 }
 0x73d   :  { %5910 = vset.pattern.permute.xlu1 %v6605_v17 }
 0x73e   :  { %3222 = vperm.xlu1 %5910, %v6586_v18  }
 0x742   :  { %3227 = vperm.xlu1 %5910, %v6591_v38  }
 0x746   :  { %5911 = vset.pattern.permute.xlu1 %v6606_v27 }
 0x747   :  { %3315 = vperm.xlu1 %5911, %v6591_v38  }
 0x74b   :  { %5913 = vset.pattern.permute.xlu1 %v6605_v17 }
 0x74c   :  { %3237 = vperm.xlu1 %5913, %v6589_v0  }
 0x750   :  { %5914 = vset.pattern.permute.xlu1 %v6606_v27 }
 0x751   :  { %3319 = vperm.xlu1 %5914, %v6588_v43  }
 0x755   :  { %5916 = vset.pattern.permute.xlu1 %v6605_v17 }
 0x756   :  { %3242 = vperm.xlu1 %5916, %v6590_v37  }
 0x75a   :  { %3247 = vperm.xlu1 %5916, %v6592_v14  }
 0x75e   :  { %5917 = vset.pattern.permute.xlu1 %v6606_v27 }
 0x75f   :  { %3331 = vperm.xlu1 %5917, %v6592_v14  }
 0x788   :  { %v3272_v56 = vpop.permute.xlu1 %3271  ;;  %v3173_v4 = vpop.permute.xlu0 %3172 }
 0x78d   :  { %v3183_v49 = vpop.permute.xlu1 %3182  ;;  %v3276_v41 = vpop.permute.xlu0 %3275 }
 0x791   :  { %v3188_v36 = vpop.permute.xlu1 %3187  ;;  %v3280_v25 = vpop.permute.xlu0 %3279 }
 0x795   :  { %v3292_v11 = vpop.permute.xlu0 %3291 }
 0x796   :  { %v3284_v31 = vpop.permute.xlu1 %3283 }
 0x79a   :  { %v3193_v38 = vpop.permute.xlu0 %3192 }
 0x79b   :  { %v3198_v42 = vpop.permute.xlu1 %3197 }
 0x7a0   :  { %v3288_v5 = vpop.permute.xlu1 %3287 }
 0x7a5   :  { %v3203_v7 = vpop.permute.xlu1 %3202 }
 0x7a9   :  { %v3208_v35 = vpop.permute.xlu1 %3207 }
 0x7ae   :  { %v3300_v1 = vpop.permute.xlu1 %3299 }
 0x7b3   :  { %v3218_v9 = vpop.permute.xlu1 %3217 }
 0x7b8   :  { %v3304_v24 = vpop.permute.xlu1 %3303 }
 0x7bd   :  { %v3223_v14 = vpop.permute.xlu1 %3222 }
 0x7dd   :  { %v3085_v29 = vpop.f32.mrb[26].mxu0 }
 0x7de   :  { %v5774_v59 = vpop.f32.mrb[27].mxu0  ;;  %5780 = vmatmul.mubr.msk.f32.vlgmr.msra.gmra.mrb[28].mxu0 %vm396_vm1, %v3085_v29 }
 0x7df   :  { %3444 = vmatpush1.bf16.msra.mxu0 %v5918_v2  ;;  %3475 = vmatprep.mubr.bf16.mxu0 %v6607_v46 }
 0x8b1   :  { %v3160_v26 = vpop.f32.mrb[28].mxu0 }
 0x8b2   :  { %v5301_v50 = vmul.f32 -1.442695, %v3160_v26  ;;  %v5781_v20 = vpop.f32.mrb[29].mxu0 }
 0x8b4   :  { %6253 = vpow2.f32 %v5301_v50 }
 0x8be   :  { %v6254_v62 = vpop.eup %6253 }
 0x8bf   :  { %v3167_v10 = vadd.f32 1.0, %v6254_v62 }
 0x8c1   :  { %6255 = vrcp.f32 %v3167_v10 }
 0x8cb   :  { %v6256_v55 = vpop.eup %6255 }
 0x8cc   :  { %v8464_v17 = vrot.slane %v6256_v55, %v8459_v13  ;;  %v8467_v39 = vrot.slane %v6256_v55, %v8461_v16 }
 0x8ce   :  { %v3254_v33 = vmul.f32 %v8464_v17, %v3173_v4  ;;  %v3255_v27 = vmul.f32 %v8464_v17, %v3178_v22  ;;  %v3338_v23 = vmul.f32 %v8467_v39, %v3272_v56  ;;  %v3339_v34 = vmul.f32 %v8467_v39, %v3276_v41 }
 0x8cf   :  { %v3256_v3 = vmul.f32 %v8464_v17, %v3183_v49  ;;  %v3257_v18 = vmul.f32 %v8464_v17, %v3188_v36  ;;  %v3340_v51 = vmul.f32 %v8467_v39, %v3280_v25  ;;  %v3341_v43 = vmul.f32 %v8467_v39, %v3284_v31  ;;  %v3213_v36 = vpop.permute.xlu0 %3212  ;;  %v3228_v31 = vpop.permute.xlu1 %3227 }
 0x8d0   :  { %v3354_v19 = vadd.f32 %v3338_v23, %v3254_v33  ;;  %v3355_v40 = vadd.f32 %v3339_v34, %v3255_v27  ;;  %v3258_v2 = vmul.f32 %v8464_v17, %v3193_v38  ;;  %v3259_v22 = vmul.f32 %v8464_v17, %v3198_v42 }
 0x8d1   :  { %v3356_v59 = vadd.f32 %v3340_v51, %v3256_v3  ;;  %v3357_v44 = vadd.f32 %v3341_v43, %v3257_v18  ;;  %v3343_v49 = vmul.f32 %v8467_v39, %v3292_v11  ;;  %v3260_v42 = vmul.f32 %v8464_v17, %v3203_v7 }
 0x8d2   :  { %v3370_v0 = vmul.f32 %v3354_v19, %v8307_v57  ;;  %v3371_v37 = vmul.f32 %v3355_v40, %v8305_v30  ;;  %v3342_v30 = vmul.f32 %v8467_v39, %v3288_v5  ;;  %v3345_v5 = vmul.f32 %v8467_v39, %v3300_v1 }
 0x8d3   :  { %v3372_v56 = vmul.f32 %v3356_v59, %v8316_v6  ;;  %v3373_v57 = vmul.f32 %v3357_v44, %v8314_v52  ;;  %v3359_v20 = vadd.f32 %v3343_v49, %v3259_v22  ;;  %v3296_v62 = vpop.permute.xlu0 %3295  ;;  %v3261_v6 = vmul.f32 %v8464_v17, %v3208_v35  ;;  %v3316_v10 = vpop.permute.xlu1 %3315 }
 0x8d4   :  { %v8479_v29 = vpack.c.bf16 %v3371_v37, %v3370_v0  ;;  %v3358_v50 = vadd.f32 %v3342_v30, %v3258_v2  ;;  %v3344_v52 = vmul.f32 %v8467_v39, %v3296_v62  ;;  %v3262_v7 = vmul.f32 %v8464_v17, %v3213_v36 }
 0x8d5   :  { %v8490_v26 = vpack.c.bf16 %v3373_v57, %v3372_v56  ;;  %v3375_v60 = vmul.f32 %v3359_v20, %v8323_v32  ;;  %v3361_v41 = vadd.f32 %v3345_v5, %v3261_v6  ;;  %v3346_v35 = vmul.f32 %v8467_v39, %v3304_v24 }
 0x8d6   :  { %5304 = vmatmul.mubr.msk.bf16.vlgmr.msra.gmra.mrb[32].mxu0 %vm396_vm1, %v8479_v29  ;;  %v3374_v4 = vmul.f32 %v3358_v50, %v8325_v15  ;;  %v3360_v8 = vadd.f32 %v3344_v52, %v3260_v42  ;;  %v3263_v32 = vmul.f32 %v8464_v17, %v3218_v9  ;;  %v3265_v24 = vmul.f32 %v8464_v17, %v3228_v31 }
 0x8d7   :  { %3485 = vmatprep.mubr.bf16.mxu0 %v6607_v46  ;;  %v3308_v25 = vpop.permute.xlu0 %3307  ;;  %v3238_v33 = vpop.permute.xlu1 %3237  ;;  %v3377_v15 = vmul.f32 %v3361_v41, %v8334_v12  ;;  %v3362_v34 = vadd.f32 %v3346_v35, %v3262_v7  ;;  %v3349_v40 = vmul.f32 %v8467_v39, %v3316_v10  ;;  %v3264_v9 = vmul.f32 %v8464_v17, %v3223_v14 }
 0x8d8   :  { %v8501_v55 = vpack.c.bf16 %v3375_v60, %v3374_v4  ;;  %v3376_v1 = vmul.f32 %v3360_v8, %v8336_v53  ;;  %v3347_v27 = vmul.f32 %v8467_v39, %v3308_v25  ;;  %v3267_v59 = vmul.f32 %v8464_v17, %v3238_v33 }
 0x8d9   :  { %v3378_v12 = vmul.f32 %v3362_v34, %v8345_v54  ;;  %v3365_v0 = vadd.f32 %v3349_v40, %v3265_v24 }
 0x8da   :  { %v8512_v19 = vpack.c.bf16 %v3377_v15, %v3376_v1  ;;  %v3363_v3 = vadd.f32 %v3347_v27, %v3263_v32 }
 0x8db   :  { %v3312_v11 = vpop.permute.xlu0 %3311  ;;  %v3320_v23 = vpop.permute.xlu1 %3319 }
 0x8dc   :  { %v3379_v53 = vmul.f32 %v3363_v3, %v8343_v28  ;;  %v3348_v18 = vmul.f32 %v8467_v39, %v3312_v11  ;;  %v3350_v44 = vmul.f32 %v8467_v39, %v3320_v23  ;;  %v3381_v28 = vmul.f32 %v3365_v0, %v8352_v63 }
 0x8de   :  { %5305 = vmatmul.mubr.msk.bf16.gmra.mrb[36].mxu0 %vm396_vm1, %v8490_v26  ;;  %v8523_v37 = vpack.c.bf16 %v3379_v53, %v3378_v12  ;;  %v3364_v38 = vadd.f32 %v3348_v18, %v3264_v9 }
 0x8df   :  { %3495 = vmatprep.mubr.bf16.mxu0 %v6607_v46  ;;  %v3233_v51 = vpop.permute.xlu0 %3232  ;;  %v3243_v43 = vpop.permute.xlu1 %3242 }
 0x8e0   :  { %v3380_v14 = vmul.f32 %v3364_v38, %v8354_v48  ;;  %v3266_v22 = vmul.f32 %v8464_v17, %v3233_v51  ;;  %v3268_v50 = vmul.f32 %v8464_v17, %v3243_v43 }
 0x8e2   :  { %v8534_v57 = vpack.c.bf16 %v3381_v28, %v3380_v14  ;;  %v3366_v30 = vadd.f32 %v3350_v44, %v3266_v22 }
 0x8e3   :  { %v3324_v54 = vpop.permute.xlu0 %3323  ;;  %v3248_v2 = vpop.permute.xlu1 %3247 }
 0x8e4   :  { %v3351_v56 = vmul.f32 %v8467_v39, %v3324_v54  ;;  %v3269_v20 = vmul.f32 %v8464_v17, %v3248_v2  ;;  %v3382_v63 = vmul.f32 %v3366_v30, %v8365_v61 }
 0x8e6   :  { %5306 = vmatmul.mubr.msk.bf16.gmra.mrb[40].mxu0 %vm396_vm1, %v8501_v55  ;;  %v3367_v49 = vadd.f32 %v3351_v56, %v3267_v59 }
 0x8e7   :  { %3505 = vmatprep.mubr.bf16.mxu0 %v6607_v46  ;;  %v3328_v36 = vpop.permute.xlu0 %3327  ;;  %v3332_v31 = vpop.permute.xlu1 %3331 }
 0x8e8   :  { %v3383_v48 = vmul.f32 %v3367_v49, %v8363_v58  ;;  %v3352_v62 = vmul.f32 %v8467_v39, %v3328_v36  ;;  %v3353_v42 = vmul.f32 %v8467_v39, %v3332_v31  ;;  %v3397_v58 = vld [vmem:[%s9234_s5] ss:$2 sm:$0x3] }
 0x8e9   :  { %v8561_v39 = vrot.slane %v3397_v58, %v8459_v13  ;;  %v8564_v60 = vrot.slane %v3397_v58, %v8461_v16 }
 0x8ea   :  { %v8545_v6 = vpack.c.bf16 %v3383_v48, %v3382_v63  ;;  %v3368_v10 = vadd.f32 %v3352_v62, %v3268_v50  ;;  %v3369_v52 = vadd.f32 %v3353_v42, %v3269_v20 }
 0x8ec   :  { %v3384_v17 = vmul.f32 %v3368_v10, %v8372_v21  ;;  %v3385_v5 = vmul.f32 %v3369_v52, %v8370_v45 }
 0x8ee   :  { %5307 = vmatmul.mubr.msk.bf16.gmra.mrb[44].mxu0 %vm396_vm1, %v8512_v19  ;;  %v8552_v61 = vpack.c.bf16 %v3385_v5, %v3384_v17 }
 0x8ef   :  { %3515 = vmatprep.mubr.bf16.mxu0 %v6607_v46 }
 0x8f6   :  { %5308 = vmatmul.mubr.msk.bf16.gmra.mrb[48].mxu0 %vm396_vm1, %v8523_v37 }
 0x8f7   :  { %3525 = vmatprep.mubr.bf16.mxu0 %v6607_v46 }
 0x8fe   :  { %5309 = vmatmul.mubr.msk.bf16.gmra.mrb[52].mxu0 %vm396_vm1, %v8534_v57 }
 0x8ff   :  { %3535 = vmatprep.mubr.bf16.mxu0 %v6607_v46 }
 0x906   :  { %5310 = vmatmul.mubr.msk.bf16.gmra.mrb[56].mxu0 %vm396_vm1, %v8545_v6 }
 0x907   :  { %3545 = vmatprep.mubr.bf16.mxu0 %v6607_v46 }
 0x90e   :  { %5311 = vmatmul.mubr.msk.bf16.gmra.mrb[60].mxu0 %vm396_vm1, %v8552_v61 }
 0x90f   :  { %4072 = vmatprep.mubr.bf16.mxu0 %v6607_v46 }
 0x9a9   :  { %v3477_v4 = vpop.f32.mrb[32].mxu0 }
 0x9aa   :  { %v3479_v21 = vpop.f32.mrb[33].mxu0  ;;  %v3478_v8 = vadd.f32 %v3477_v4, %v8561_v39 }
 0x9ab   :  { %v3481_v45 = vpop.f32.mrb[34].mxu0  ;;  %v3480_v33 = vadd.f32 %v3479_v21, %v8564_v60 }
 0x9ac   :  { %v3482_v41 = vadd.f32 %v3481_v45, %v8561_v39  ;;  %v3483_v25 = vpop.f32.mrb[35].mxu0 }
 0x9ad   :  { %v3484_v7 = vadd.f32 %v3483_v25, %v8564_v60 }
 0x9ae   :  { %v8570_v35 = vpack.c.bf16 %v3482_v41, %v3478_v8 }
 0x9af   :  { %v8572_v1 = vpack.c.bf16 %v3484_v7, %v3480_v33 }
 0x9b0   :  { %v5312_v15 = vmul.bf16 3216621497, %v8570_v35 }
 0x9b1   :  { %v5313_v32 = vmul.bf16 3216621497, %v8572_v1  ;;  %v3487_v27 = vpop.f32.mrb[36].mxu0 }
 0x9b2   :  { %6257 = vpow.bf16 %v5312_v15  ;;  %v3489_v11 = vpop.f32.mrb[37].mxu0  ;;  %v3488_v34 = vadd.f32 %v3487_v27, %v8561_v39 }
 0x9b3   :  { %6259 = vpow.bf16 %v5313_v32  ;;  %v3491_v23 = vpop.f32.mrb[38].mxu0  ;;  %v3490_v40 = vadd.f32 %v3489_v11, %v8564_v60 }
 0x9b4   :  { %v3492_v3 = vadd.f32 %v3491_v23, %v8561_v39  ;;  %v3493_v24 = vpop.f32.mrb[39].mxu0 }
 0x9b5   :  { %v3494_v12 = vadd.f32 %v3493_v24, %v8564_v60 }
 0x9b6   :  { %v8580_v53 = vpack.c.bf16 %v3492_v3, %v3488_v34 }
 0x9b7   :  { %v8582_v9 = vpack.c.bf16 %v3494_v12, %v3490_v40 }
 0x9b8   :  { %v5314_v18 = vmul.bf16 3216621497, %v8580_v53 }
 0x9b9   :  { %v5315_v51 = vmul.bf16 3216621497, %v8582_v9  ;;  %v3497_v43 = vpop.f32.mrb[40].mxu0 }
 0x9ba   :  { %6261 = vpow.bf16 %v5314_v18  ;;  %v3499_v0 = vpop.f32.mrb[41].mxu0  ;;  %v3498_v59 = vadd.f32 %v3497_v43, %v8561_v39 }
 0x9bb   :  { %6263 = vpow.bf16 %v5315_v51  ;;  %v3501_v38 = vpop.f32.mrb[42].mxu0  ;;  %v3500_v28 = vadd.f32 %v3499_v0, %v8564_v60 }
 0x9bc   :  { %v3502_v44 = vadd.f32 %v3501_v38, %v8561_v39  ;;  %v3503_v54 = vpop.f32.mrb[43].mxu0 }
 0x9bd   :  { %v6258_v2 = vpop.eup %6257  ;;  %v3504_v14 = vadd.f32 %v3503_v54, %v8564_v60 }
 0x9be   :  { %v6260_v22 = vpop.eup %6259  ;;  %v3636_v56 = vadd.bf16 1065369472, %v6258_v2  ;;  %v8590_v30 = vpack.c.bf16 %v3502_v44, %v3498_v59 }
 0x9bf   :  { %v3637_v49 = vadd.bf16 1065369472, %v6260_v22  ;;  %v8592_v36 = vpack.c.bf16 %v3504_v14, %v3500_v28 }
 0x9c0   :  { %6265 = vrcp.bf16 %v3636_v56  ;;  %v5316_v31 = vmul.bf16 3216621497, %v8590_v30 }
 0x9c1   :  { %6267 = vrcp.bf16 %v3637_v49  ;;  %v5317_v50 = vmul.bf16 3216621497, %v8592_v36  ;;  %v3507_v20 = vpop.f32.mrb[44].mxu0 }
 0x9c2   :  { %6269 = vpow.bf16 %v5316_v31  ;;  %v3509_v63 = vpop.f32.mrb[45].mxu0  ;;  %v3508_v62 = vadd.f32 %v3507_v20, %v8561_v39 }
 0x9c3   :  { %6271 = vpow.bf16 %v5317_v50  ;;  %v3511_v48 = vpop.f32.mrb[46].mxu0  ;;  %v3510_v17 = vadd.f32 %v3509_v63, %v8564_v60 }
 0x9c4   :  { %v3512_v42 = vadd.f32 %v3511_v48, %v8561_v39  ;;  %v3513_v10 = vpop.f32.mrb[47].mxu0 }
 0x9c5   :  { %v6262_v52 = vpop.eup %6261  ;;  %v3514_v5 = vadd.f32 %v3513_v10, %v8564_v60 }
 0x9c6   :  { %v6264_v58 = vpop.eup %6263  ;;  %v3638_v4 = vadd.bf16 1065369472, %v6262_v52  ;;  %v8600_v21 = vpack.c.bf16 %v3512_v42, %v3508_v62 }
 0x9c7   :  { %v3639_v45 = vadd.bf16 1065369472, %v6264_v58  ;;  %v8602_v8 = vpack.c.bf16 %v3514_v5, %v3510_v17 }
 0x9c8   :  { %6273 = vrcp.bf16 %v3638_v4  ;;  %v5318_v41 = vmul.bf16 3216621497, %v8600_v21 }
 0x9c9   :  { %6275 = vrcp.bf16 %v3639_v45  ;;  %v5319_v25 = vmul.bf16 3216621497, %v8602_v8  ;;  %v3517_v33 = vpop.f32.mrb[48].mxu0 }
 0x9ca   :  { %6277 = vpow.bf16 %v5318_v41  ;;  %v3519_v7 = vpop.f32.mrb[49].mxu0  ;;  %v3518_v23 = vadd.f32 %v3517_v33, %v8561_v39 }
 0x9cb   :  { %v6266_v15 = vpop.eup %6265  ;;  %6279 = vpow.bf16 %v5319_v25  ;;  %v3521_v32 = vpop.f32.mrb[50].mxu0  ;;  %v3520_v40 = vadd.f32 %v3519_v7, %v8564_v60 }
 0x9cc   :  { %v6268_v27 = vpop.eup %6267  ;;  %v3653_v11 = vmul.bf16 1065369472, %v6266_v15  ;;  %v3522_v34 = vadd.f32 %v3521_v32, %v8561_v39  ;;  %v3523_v3 = vpop.f32.mrb[51].mxu0 }
 0x9cd   :  { %v6270_v24 = vpop.eup %6269  ;;  %v3524_v12 = vadd.f32 %v3523_v3, %v8564_v60  ;;  %v3655_v18 = vmul.bf16 1065369472, %v6268_v27 }
 0x9ce   :  { %v6272_v51 = vpop.eup %6271  ;;  %v3640_v43 = vadd.bf16 1065369472, %v6270_v24  ;;  %v8610_v0 = vpack.c.bf16 %v3522_v34, %v3518_v23  ;;  %v3684_v54 = vmul.bf16 %v3653_v11, %v8570_v35 }
 0x9cf   :  { %v3641_v38 = vadd.bf16 1065369472, %v6272_v51  ;;  %v8612_v59 = vpack.c.bf16 %v3524_v12, %v3520_v40  ;;  %v3685_v44 = vmul.bf16 %v3655_v18, %v8572_v1 }
 0x9d0   :  { %6281 = vrcp.bf16 %v3640_v43  ;;  %v5320_v2 = vmul.bf16 3216621497, %v8610_v0 }
 0x9d1   :  { %6283 = vrcp.bf16 %v3641_v38  ;;  %v5321_v28 = vmul.bf16 3216621497, %v8612_v59  ;;  %v3527_v14 = vpop.f32.mrb[52].mxu0  ;;  %3700 = vmatprep.subr.bf16.mxu1 %v3685_v44 }
 0x9d2   :  { %6285 = vpow.bf16 %v5320_v2  ;;  %v3529_v22 = vpop.f32.mrb[53].mxu0  ;;  %3701 = vmatpush1.bf16.msra.mxu1 %v3684_v54  ;;  %v3528_v1 = vadd.f32 %v3527_v14, %v8561_v39 }
 0x9d3   :  { %v6274_v56 = vpop.eup %6273  ;;  %6287 = vpow.bf16 %v5321_v28  ;;  %v3531_v49 = vpop.f32.mrb[54].mxu0  ;;  %v3530_v48 = vadd.f32 %v3529_v22, %v8564_v60 }
 0x9d4   :  { %v6276_v31 = vpop.eup %6275  ;;  %v3657_v50 = vmul.bf16 1065369472, %v6274_v56  ;;  %v3532_v35 = vadd.f32 %v3531_v49, %v8561_v39  ;;  %v3533_v20 = vpop.f32.mrb[55].mxu0 }
 0x9d5   :  { %v6278_v63 = vpop.eup %6277  ;;  %v3534_v62 = vadd.f32 %v3533_v20, %v8564_v60  ;;  %v3659_v42 = vmul.bf16 1065369472, %v6276_v31 }
 0x9d6   :  { %v6280_v10 = vpop.eup %6279  ;;  %v3642_v52 = vadd.bf16 1065369472, %v6278_v63  ;;  %v8622_v17 = vpack.c.bf16 %v3532_v35, %v3528_v1  ;;  %v3686_v45 = vmul.bf16 %v3657_v50, %v8580_v53 }
 0x9d7   :  { %v3643_v5 = vadd.bf16 1065369472, %v6280_v10  ;;  %v8624_v58 = vpack.c.bf16 %v3534_v62, %v3530_v48  ;;  %v3687_v4 = vmul.bf16 %v3659_v42, %v8582_v9 }
 0x9d8   :  { %6289 = vrcp.bf16 %v3642_v52  ;;  %v5322_v41 = vmul.bf16 3216621497, %v8622_v17 }
 0x9d9   :  { %6291 = vrcp.bf16 %v3643_v5  ;;  %v5323_v25 = vmul.bf16 3216621497, %v8624_v58  ;;  %v3537_v33 = vpop.f32.mrb[56].mxu0  ;;  %3702 = vmatprep.subr.bf16.mxu1 %v3687_v4 }
 0x9da   :  { %6293 = vpow.bf16 %v5322_v41  ;;  %v3539_v7 = vpop.f32.mrb[57].mxu0  ;;  %3703 = vmatpush1.bf16.msra.mxu1 %v3686_v45  ;;  %v3538_v9 = vadd.f32 %v3537_v33, %v8561_v39 }
 0x9db   :  { %v6282_v15 = vpop.eup %6281  ;;  %6295 = vpow.bf16 %v5323_v25  ;;  %v3541_v32 = vpop.f32.mrb[58].mxu0  ;;  %v3540_v3 = vadd.f32 %v3539_v7, %v8564_v60 }
 0x9dc   :  { %v6284_v27 = vpop.eup %6283  ;;  %v3661_v11 = vmul.bf16 1065369472, %v6282_v15  ;;  %v3542_v53 = vadd.f32 %v3541_v32, %v8561_v39  ;;  %v3543_v23 = vpop.f32.mrb[59].mxu0 }
 0x9dd   :  { %v6286_v34 = vpop.eup %6285  ;;  %v3544_v24 = vadd.f32 %v3543_v23, %v8564_v60  ;;  %v3663_v40 = vmul.bf16 1065369472, %v6284_v27 }
 0x9de   :  { %v6288_v12 = vpop.eup %6287  ;;  %v3644_v18 = vadd.bf16 1065369472, %v6286_v34  ;;  %v8634_v51 = vpack.c.bf16 %v3542_v53, %v3538_v9  ;;  %v3688_v54 = vmul.bf16 %v3661_v11, %v8590_v30 }
 0x9df   :  { %v3645_v43 = vadd.bf16 1065369472, %v6288_v12  ;;  %v8636_v38 = vpack.c.bf16 %v3544_v24, %v3540_v3  ;;  %v3689_v44 = vmul.bf16 %v3663_v40, %v8592_v36 }
 0x9e0   :  { %6297 = vrcp.bf16 %v3644_v18  ;;  %v5324_v2 = vmul.bf16 3216621497, %v8634_v51 }
 0x9e1   :  { %6299 = vrcp.bf16 %v3645_v43  ;;  %v5325_v28 = vmul.bf16 3216621497, %v8636_v38  ;;  %v3547_v14 = vpop.f32.mrb[60].mxu0  ;;  %3704 = vmatprep.subr.bf16.mxu1 %v3689_v44 }
 0x9e2   :  { %6301 = vpow.bf16 %v5324_v2  ;;  %v3549_v22 = vpop.f32.mrb[61].mxu0  ;;  %3705 = vmatpush1.bf16.msra.mxu1 %v3688_v54  ;;  %v3548_v36 = vadd.f32 %v3547_v14, %v8561_v39 }
 0x9e3   :  { %v6290_v56 = vpop.eup %6289  ;;  %6303 = vpow.bf16 %v5325_v28  ;;  %v3551_v49 = vpop.f32.mrb[62].mxu0  ;;  %v3550_v20 = vadd.f32 %v3549_v22, %v8564_v60 }
 0x9e4   :  { %v6292_v31 = vpop.eup %6291  ;;  %v3665_v50 = vmul.bf16 1065369472, %v6290_v56  ;;  %v3552_v30 = vadd.f32 %v3551_v49, %v8561_v39  ;;  %v3553_v1 = vpop.f32.mrb[63].mxu0 }
 0x9e5   :  { %v6294_v35 = vpop.eup %6293  ;;  %v3554_v63 = vadd.f32 %v3553_v1, %v8564_v60  ;;  %v3667_v48 = vmul.bf16 1065369472, %v6292_v31  ;;  %v5329_v1 = vld [vmem:[%s9234_s5 + $0x4] ss:$2 sm:$0x3] }
 0x9e6   :  { %v6296_v62 = vpop.eup %6295  ;;  %v3646_v42 = vadd.bf16 1065369472, %v6294_v35  ;;  %v3570_v10 = vpack.c.bf16 %v3552_v30, %v3548_v36  ;;  %v3690_v45 = vmul.bf16 %v3665_v50, %v8600_v21  ;;  %v8659_v50 = vpack.c.bf16 %v8385_v47, %v8385_v47 }
 0x9e7   :  { %v3647_v52 = vadd.bf16 1065369472, %v6296_v62  ;;  %v3571_v5 = vpack.c.bf16 %v3554_v63, %v3550_v20  ;;  %v3691_v4 = vmul.bf16 %v3667_v48, %v8602_v8  ;;  %v8698_v35 = vrot.slane %v5329_v1, %v8459_v13 }
 0x9e8   :  { %6305 = vrcp.bf16 %v3646_v42  ;;  %v5326_v41 = vmul.bf16 3216621497, %v3570_v10  ;;  %v8701_v63 = vrot.slane %v5329_v1, %v8461_v16 }
 0x9e9   :  { %6307 = vrcp.bf16 %v3647_v52  ;;  %v5327_v39 = vmul.bf16 3216621497, %v3571_v5  ;;  %3706 = vmatprep.subr.bf16.mxu1 %v3691_v4 }
 0x9ea   :  { %6309 = vpow.bf16 %v5326_v41  ;;  %3707 = vmatpush1.bf16.msra.mxu1 %v3690_v45 }
 0x9eb   :  { %v6298_v25 = vpop.eup %6297  ;;  %6311 = vpow.bf16 %v5327_v39 }
 0x9ec   :  { %v6300_v60 = vpop.eup %6299  ;;  %v3669_v33 = vmul.bf16 1065369472, %v6298_v25 }
 0x9ed   :  { %v6302_v7 = vpop.eup %6301  ;;  %v3671_v15 = vmul.bf16 1065369472, %v6300_v60 }
 0x9ee   :  { %v6304_v32 = vpop.eup %6303  ;;  %v3648_v27 = vadd.bf16 1065369472, %v6302_v7  ;;  %v3692_v21 = vmul.bf16 %v3669_v33, %v8610_v0 }
 0x9ef   :  { %v3649_v11 = vadd.bf16 1065369472, %v6304_v32  ;;  %v3693_v8 = vmul.bf16 %v3671_v15, %v8612_v59 }
 0x9f0   :  { %6313 = vrcp.bf16 %v3648_v27 }
 0x9f1   :  { %6315 = vrcp.bf16 %v3649_v11  ;;  %3708 = vmatprep.subr.bf16.mxu1 %v3693_v8 }
 0x9f2   :  { %3709 = vmatpush1.bf16.msra.mxu1 %v3692_v21 }
 0x9f3   :  { %v6306_v9 = vpop.eup %6305 }
 0x9f4   :  { %v6308_v53 = vpop.eup %6307  ;;  %v3673_v23 = vmul.bf16 1065369472, %v6306_v9 }
 0x9f5   :  { %v6310_v34 = vpop.eup %6309  ;;  %v3675_v3 = vmul.bf16 1065369472, %v6308_v53 }
 0x9f6   :  { %v6312_v24 = vpop.eup %6311  ;;  %v3650_v40 = vadd.bf16 1065369472, %v6310_v34  ;;  %v3694_v43 = vmul.bf16 %v3673_v23, %v8622_v17  ;;  %v5923_v17 = vld [vmem:[%s9233_s4 + $0xc] ss:$40 sps:$4 sm:$0xff]  }
 0x9f7   :  { %v3651_v12 = vadd.bf16 1065369472, %v6312_v24  ;;  %v3695_v18 = vmul.bf16 %v3675_v3, %v8624_v58 }
 0x9f8   :  { %6317 = vrcp.bf16 %v3650_v40 }
 0x9f9   :  { %6319 = vrcp.bf16 %v3651_v12  ;;  %3710 = vmatprep.subr.bf16.mxu1 %v3695_v18 }
 0x9fa   :  { %3711 = vmatpush1.bf16.msra.mxu1 %v3694_v43 }
 0x9fb   :  { %v6314_v0 = vpop.eup %6313 }
 0x9fc   :  { %v6316_v59 = vpop.eup %6315  ;;  %v3677_v44 = vmul.bf16 1065369472, %v6314_v0 }
 0x9fd   :  { %v3679_v54 = vmul.bf16 1065369472, %v6316_v59 }
 0x9fe   :  { %v3696_v28 = vmul.bf16 %v3677_v44, %v8634_v51  ;;  %v5921_v51 = vld [vmem:[%s9233_s4 + $0x8] ss:$40 sps:$4 sm:$0xff]  }
 0x9ff   :  { %v3697_v2 = vmul.bf16 %v3679_v54, %v8636_v38 }
 0xa01   :  { %3712 = vmatprep.subr.bf16.mxu1 %v3697_v2 }
 0xa02   :  { %3713 = vmatpush1.bf16.msra.mxu1 %v3696_v28 }
 0xa03   :  { %v6318_v14 = vpop.eup %6317 }
 0xa04   :  { %v6320_v22 = vpop.eup %6319  ;;  %v3681_v56 = vmul.bf16 1065369472, %v6318_v14 }
 0xa05   :  { %v3683_v58 = vmul.bf16 1065369472, %v6320_v22 }
 0xa06   :  { %v3698_v31 = vmul.bf16 %v3681_v56, %v3570_v10 }
 0xa07   :  { %v3699_v49 = vmul.bf16 %v3683_v58, %v3571_v5 }
 0xa09   :  { %3714 = vmatprep.subr.bf16.mxu1 %v3699_v49 }
 0xa0a   :  { %3715 = vmatpush1.bf16.msra.mxu1 %v3698_v31 }
 0xa0b   :  { %3783 = vmatprep.subr.bf16.mxu1 %v5923_v17 }
 0xa0d   :  { %3733 = vmatmul.mubr.bf16.vlgmr.msra.gmra.mrb[56].mxu1 %v8659_v50 }
 0xa0e   :  { %3784 = vmatpush1.bf16.msra.mxu1 %v5921_v51  ;;  %3815 = vmatprep.mubr.bf16.mxu1 %v6607_v46 }
 0xa15   :  { %5332 = vmatmul.mubr.msk.bf16.vlgmr.msra.gmra.mrb[60].mxu1 %vm396_vm1, %v8479_v29 }
 0xa16   :  { %3825 = vmatprep.mubr.bf16.mxu1 %v6607_v46 }
 0xa1d   :  { %5333 = vmatmul.mubr.msk.bf16.gmra.mrb[64].mxu1 %vm396_vm1, %v8490_v26 }
 0xa1e   :  { %3835 = vmatprep.mubr.bf16.mxu1 %v6607_v46 }
 0xa25   :  { %5334 = vmatmul.mubr.msk.bf16.gmra.mrb[68].mxu1 %vm396_vm1, %v8501_v55 }
 0xa26   :  { %3845 = vmatprep.mubr.bf16.mxu1 %v6607_v46 }
 0xa2d   :  { %5335 = vmatmul.mubr.msk.bf16.gmra.mrb[72].mxu1 %vm396_vm1, %v8512_v19 }
 0xa2e   :  { %3855 = vmatprep.mubr.bf16.mxu1 %v6607_v46 }
 0xa35   :  { %5336 = vmatmul.mubr.msk.bf16.gmra.mrb[76].mxu1 %vm396_vm1, %v8523_v37 }
 0xa36   :  { %3865 = vmatprep.mubr.bf16.mxu1 %v6607_v46 }
 0xa3d   :  { %5337 = vmatmul.mubr.msk.bf16.gmra.mrb[80].mxu1 %vm396_vm1, %v8534_v57 }
 0xa3e   :  { %3875 = vmatprep.mubr.bf16.mxu1 %v6607_v46 }
 0xa45   :  { %5338 = vmatmul.mubr.msk.bf16.gmra.mrb[84].mxu1 %vm396_vm1, %v8545_v6 }
 0xa46   :  { %3885 = vmatprep.mubr.bf16.mxu1 %v6607_v46 }
 0xa4d   :  { %5339 = vmatmul.mubr.msk.bf16.gmra.mrb[88].mxu1 %vm396_vm1, %v8552_v61 }
 0xa4e   :  { %4412 = vmatprep.mubr.bf16.mxu1 %v6607_v46 }
 0xae0   :  { %v8690_v47 = vpop.f32.mrb[56].mxu1 }
 0xae1   :  { %v8692_v38 = vpop.f32.mrb[57].mxu1 }
 0xae2   :  { %v3738_v36 = vpop.f32.mrb[58].mxu1 }
 0xae3   :  { %v3739_v30 = vpop.f32.mrb[59].mxu1 }
 0xae8   :  { %v3817_v20 = vpop.f32.mrb[60].mxu1 }
 0xae9   :  { %v3819_v48 = vpop.f32.mrb[61].mxu1  ;;  %v3818_v42 = vadd.f32 %v3817_v20, %v8698_v35 }
 0xaea   :  { %v3821_v62 = vpop.f32.mrb[62].mxu1  ;;  %v3820_v5 = vadd.f32 %v3819_v48, %v8701_v63 }
 0xaeb   :  { %v3822_v10 = vadd.f32 %v3821_v62, %v8698_v35  ;;  %v3823_v52 = vpop.f32.mrb[63].mxu1 }
 0xaec   :  { %v3824_v4 = vadd.f32 %v3823_v52, %v8701_v63 }
 0xaed   :  { %v8707_v45 = vpack.c.bf16 %v3822_v10, %v3818_v42 }
 0xaee   :  { %v8709_v41 = vpack.c.bf16 %v3824_v4, %v3820_v5 }
 0xaef   :  { %v5340_v39 = vmul.bf16 3216621497, %v8707_v45 }
 0xaf0   :  { %v5341_v25 = vmul.bf16 3216621497, %v8709_v41  ;;  %v3827_v60 = vpop.f32.mrb[64].mxu1 }
 0xaf1   :  { %6321 = vpow.bf16 %v5340_v39  ;;  %v3829_v33 = vpop.f32.mrb[65].mxu1  ;;  %v3828_v15 = vadd.f32 %v3827_v60, %v8698_v35 }
 0xaf2   :  { %6323 = vpow.bf16 %v5341_v25  ;;  %v3831_v7 = vpop.f32.mrb[66].mxu1  ;;  %v3830_v11 = vadd.f32 %v3829_v33, %v8701_v63 }
 0xaf3   :  { %v3832_v32 = vadd.f32 %v3831_v7, %v8698_v35  ;;  %v3833_v27 = vpop.f32.mrb[67].mxu1 }
 0xaf4   :  { %v3834_v8 = vadd.f32 %v3833_v27, %v8701_v63 }
 0xaf5   :  { %v8717_v21 = vpack.c.bf16 %v3832_v32, %v3828_v15 }
 0xaf6   :  { %v8719_v9 = vpack.c.bf16 %v3834_v8, %v3830_v11 }
 0xaf7   :  { %v5342_v53 = vmul.bf16 3216621497, %v8717_v21 }
 0xaf8   :  { %v5343_v23 = vmul.bf16 3216621497, %v8719_v9  ;;  %v3837_v34 = vpop.f32.mrb[68].mxu1 }
 0xaf9   :  { %6325 = vpow.bf16 %v5342_v53  ;;  %v3839_v3 = vpop.f32.mrb[69].mxu1  ;;  %v3838_v40 = vadd.f32 %v3837_v34, %v8698_v35 }
 0xafa   :  { %6327 = vpow.bf16 %v5343_v23  ;;  %v3841_v24 = vpop.f32.mrb[70].mxu1  ;;  %v3840_v0 = vadd.f32 %v3839_v3, %v8701_v63 }
 0xafb   :  { %v3842_v12 = vadd.f32 %v3841_v24, %v8698_v35  ;;  %v3843_v18 = vpop.f32.mrb[71].mxu1 }
 0xafc   :  { %v6322_v43 = vpop.eup %6321  ;;  %v3844_v59 = vadd.f32 %v3843_v18, %v8701_v63 }
 0xafd   :  { %v6324_v44 = vpop.eup %6323  ;;  %v3976_v54 = vadd.bf16 1065369472, %v6322_v43  ;;  %v8727_v2 = vpack.c.bf16 %v3842_v12, %v3838_v40 }
 0xafe   :  { %v3977_v28 = vadd.bf16 1065369472, %v6324_v44  ;;  %v8729_v14 = vpack.c.bf16 %v3844_v59, %v3840_v0 }
 0xaff   :  { %6329 = vrcp.bf16 %v3976_v54  ;;  %v5344_v22 = vmul.bf16 3216621497, %v8727_v2 }
 0xb00   :  { %6331 = vrcp.bf16 %v3977_v28  ;;  %v5345_v56 = vmul.bf16 3216621497, %v8729_v14  ;;  %v3847_v58 = vpop.f32.mrb[72].mxu1 }
 0xb01   :  { %6333 = vpow.bf16 %v5344_v22  ;;  %v3849_v49 = vpop.f32.mrb[73].mxu1  ;;  %v3848_v31 = vadd.f32 %v3847_v58, %v8698_v35 }
 0xb02   :  { %6335 = vpow.bf16 %v5345_v56  ;;  %v3851_v17 = vpop.f32.mrb[74].mxu1  ;;  %v3850_v1 = vadd.f32 %v3849_v49, %v8701_v63 }
 0xb03   :  { %v3852_v51 = vadd.f32 %v3851_v17, %v8698_v35  ;;  %v3853_v36 = vpop.f32.mrb[75].mxu1 }
 0xb04   :  { %v6326_v30 = vpop.eup %6325  ;;  %v3854_v20 = vadd.f32 %v3853_v36, %v8701_v63 }
 0xb05   :  { %v6328_v48 = vpop.eup %6327  ;;  %v3978_v62 = vadd.bf16 1065369472, %v6326_v30  ;;  %v8737_v42 = vpack.c.bf16 %v3852_v51, %v3848_v31 }
 0xb06   :  { %v3979_v10 = vadd.bf16 1065369472, %v6328_v48  ;;  %v8739_v52 = vpack.c.bf16 %v3854_v20, %v3850_v1 }
 0xb07   :  { %6337 = vrcp.bf16 %v3978_v62  ;;  %v5346_v5 = vmul.bf16 3216621497, %v8737_v42 }
 0xb08   :  { %6339 = vrcp.bf16 %v3979_v10  ;;  %v5347_v4 = vmul.bf16 3216621497, %v8739_v52  ;;  %v3857_v39 = vpop.f32.mrb[76].mxu1 }
 0xb09   :  { %6341 = vpow.bf16 %v5346_v5  ;;  %v3859_v25 = vpop.f32.mrb[77].mxu1  ;;  %v3858_v32 = vadd.f32 %v3857_v39, %v8698_v35 }
 0xb0a   :  { %v6330_v60 = vpop.eup %6329  ;;  %6343 = vpow.bf16 %v5347_v4  ;;  %v3861_v33 = vpop.f32.mrb[78].mxu1  ;;  %v3860_v53 = vadd.f32 %v3859_v25, %v8701_v63 }
 0xb0b   :  { %v6332_v7 = vpop.eup %6331  ;;  %v3993_v15 = vmul.bf16 1065369472, %v6330_v60  ;;  %v3862_v27 = vadd.f32 %v3861_v33, %v8698_v35  ;;  %v3863_v11 = vpop.f32.mrb[79].mxu1 }
 0xb0c   :  { %v6334_v8 = vpop.eup %6333  ;;  %v3864_v23 = vadd.f32 %v3863_v11, %v8701_v63  ;;  %v3995_v34 = vmul.bf16 1065369472, %v6332_v7 }
 0xb0d   :  { %v6336_v3 = vpop.eup %6335  ;;  %v3980_v24 = vadd.bf16 1065369472, %v6334_v8  ;;  %v8747_v40 = vpack.c.bf16 %v3862_v27, %v3858_v32  ;;  %v4024_v0 = vmul.bf16 %v3993_v15, %v8707_v45 }
 0xb0e   :  { %v3981_v12 = vadd.bf16 1065369472, %v6336_v3  ;;  %v8749_v18 = vpack.c.bf16 %v3864_v23, %v3860_v53  ;;  %v4025_v43 = vmul.bf16 %v3995_v34, %v8709_v41 }
 0xb0f   :  { %6345 = vrcp.bf16 %v3980_v24  ;;  %v5348_v59 = vmul.bf16 3216621497, %v8747_v40 }
 0xb10   :  { %6347 = vrcp.bf16 %v3981_v12  ;;  %v5349_v44 = vmul.bf16 3216621497, %v8749_v18  ;;  %v3867_v54 = vpop.f32.mrb[80].mxu1  ;;  %4040 = vmatprep.subr.bf16.mxu0 %v4025_v43 }
 0xb11   :  { %6349 = vpow.bf16 %v5348_v59  ;;  %v3869_v28 = vpop.f32.mrb[81].mxu1  ;;  %4041 = vmatpush1.bf16.msra.mxu0 %v4024_v0  ;;  %v3868_v41 = vadd.f32 %v3867_v54, %v8698_v35 }
 0xb12   :  { %v6338_v22 = vpop.eup %6337  ;;  %6351 = vpow.bf16 %v5349_v44  ;;  %v3871_v56 = vpop.f32.mrb[82].mxu1  ;;  %v3870_v51 = vadd.f32 %v3869_v28, %v8701_v63 }
 0xb13   :  { %v6340_v58 = vpop.eup %6339  ;;  %v3997_v49 = vmul.bf16 1065369472, %v6338_v22  ;;  %v3872_v45 = vadd.f32 %v3871_v56, %v8698_v35  ;;  %v3873_v17 = vpop.f32.mrb[83].mxu1 }
 0xb14   :  { %v6342_v31 = vpop.eup %6341  ;;  %v3874_v36 = vadd.f32 %v3873_v17, %v8701_v63  ;;  %v3999_v30 = vmul.bf16 1065369472, %v6340_v58 }
 0xb15   :  { %v6344_v1 = vpop.eup %6343  ;;  %v3982_v20 = vadd.bf16 1065369472, %v6342_v31  ;;  %v8759_v48 = vpack.c.bf16 %v3872_v45, %v3868_v41  ;;  %v4026_v4 = vmul.bf16 %v3997_v49, %v8717_v21 }
 0xb16   :  { %v3983_v62 = vadd.bf16 1065369472, %v6344_v1  ;;  %v8761_v10 = vpack.c.bf16 %v3874_v36, %v3870_v51  ;;  %v4027_v5 = vmul.bf16 %v3999_v30, %v8719_v9 }
 0xb17   :  { %6353 = vrcp.bf16 %v3982_v20  ;;  %v5350_v39 = vmul.bf16 3216621497, %v8759_v48 }
 0xb18   :  { %6355 = vrcp.bf16 %v3983_v62  ;;  %v5351_v25 = vmul.bf16 3216621497, %v8761_v10  ;;  %v3877_v60 = vpop.f32.mrb[84].mxu1  ;;  %4042 = vmatprep.subr.bf16.mxu0 %v4027_v5 }
 0xb19   :  { %6357 = vpow.bf16 %v5350_v39  ;;  %v3879_v33 = vpop.f32.mrb[85].mxu1  ;;  %4043 = vmatpush1.bf16.msra.mxu0 %v4026_v4  ;;  %v3878_v9 = vadd.f32 %v3877_v60, %v8698_v35 }
 0xb1a   :  { %v6346_v7 = vpop.eup %6345  ;;  %6359 = vpow.bf16 %v5351_v25  ;;  %v3881_v15 = vpop.f32.mrb[86].mxu1  ;;  %v3880_v53 = vadd.f32 %v3879_v33, %v8701_v63 }
 0xb1b   :  { %v6348_v32 = vpop.eup %6347  ;;  %v4001_v27 = vmul.bf16 1065369472, %v6346_v7  ;;  %v3882_v21 = vadd.f32 %v3881_v15, %v8698_v35  ;;  %v3883_v11 = vpop.f32.mrb[87].mxu1 }
 0xb1c   :  { %v6350_v8 = vpop.eup %6349  ;;  %v3884_v23 = vadd.f32 %v3883_v11, %v8701_v63  ;;  %v4003_v34 = vmul.bf16 1065369472, %v6348_v32 }
 0xb1d   :  { %v6352_v3 = vpop.eup %6351  ;;  %v3984_v24 = vadd.bf16 1065369472, %v6350_v8  ;;  %v8771_v12 = vpack.c.bf16 %v3882_v21, %v3878_v9  ;;  %v4028_v44 = vmul.bf16 %v4001_v27, %v8727_v2 }
 0xb1e   :  { %v3985_v43 = vadd.bf16 1065369472, %v6352_v3  ;;  %v8773_v0 = vpack.c.bf16 %v3884_v23, %v3880_v53  ;;  %v4029_v59 = vmul.bf16 %v4003_v34, %v8729_v14 }
 0xb1f   :  { %6361 = vrcp.bf16 %v3984_v24  ;;  %v5352_v54 = vmul.bf16 3216621497, %v8771_v12 }
 0xb20   :  { %6363 = vrcp.bf16 %v3985_v43  ;;  %v5353_v28 = vmul.bf16 3216621497, %v8773_v0  ;;  %v3887_v22 = vpop.f32.mrb[88].mxu1  ;;  %4044 = vmatprep.subr.bf16.mxu0 %v4029_v59 }
 0xb21   :  { %6365 = vpow.bf16 %v5352_v54  ;;  %v3889_v56 = vpop.f32.mrb[89].mxu1  ;;  %4045 = vmatpush1.bf16.msra.mxu0 %v4028_v44  ;;  %v3888_v14 = vadd.f32 %v3887_v22, %v8698_v35 }
 0xb22   :  { %v6354_v58 = vpop.eup %6353  ;;  %6367 = vpow.bf16 %v5353_v28  ;;  %v3891_v49 = vpop.f32.mrb[90].mxu1  ;;  %v3890_v51 = vadd.f32 %v3889_v56, %v8701_v63 }
 0xb23   :  { %v6356_v41 = vpop.eup %6355  ;;  %v4005_v45 = vmul.bf16 1065369472, %v6354_v58  ;;  %v3892_v2 = vadd.f32 %v3891_v49, %v8698_v35  ;;  %v3893_v17 = vpop.f32.mrb[91].mxu1 }
 0xb24   :  { %v6358_v31 = vpop.eup %6357  ;;  %v3894_v36 = vadd.f32 %v3893_v17, %v8701_v63  ;;  %v4007_v30 = vmul.bf16 1065369472, %v6356_v41 }
 0xb25   :  { %v6360_v1 = vpop.eup %6359  ;;  %v3986_v20 = vadd.bf16 1065369472, %v6358_v31  ;;  %v3910_v62 = vpack.c.bf16 %v3892_v2, %v3888_v14  ;;  %v4030_v25 = vmul.bf16 %v4005_v45, %v8737_v42  ;;  %v5356_v2 = vld [vmem:[%s9234_s5 + $0x5] ss:$2 sm:$0x3] }
 0xb26   :  { %v3987_v5 = vadd.bf16 1065369472, %v6360_v1  ;;  %v3911_v4 = vpack.c.bf16 %v3894_v36, %v3890_v51  ;;  %v4031_v39 = vmul.bf16 %v4007_v30, %v8739_v52  ;;  %v4087_v31 = vrot.slane %v5356_v2, %v8459_v13 }
 0xb27   :  { %6369 = vrcp.bf16 %v3986_v20  ;;  %v5354_v60 = vmul.bf16 3216621497, %v3910_v62  ;;  %v4091_v36 = vrot.slane %v5356_v2, %v8461_v16 }
 0xb28   :  { %6371 = vrcp.bf16 %v3987_v5  ;;  %v5355_v35 = vmul.bf16 3216621497, %v3911_v4  ;;  %4046 = vmatprep.subr.bf16.mxu0 %v4031_v39 }
 0xb29   :  { %6373 = vpow.bf16 %v5354_v60  ;;  %4047 = vmatpush1.bf16.msra.mxu0 %v4030_v25 }
 0xb2a   :  { %v6362_v33 = vpop.eup %6361  ;;  %6375 = vpow.bf16 %v5355_v35 }
 0xb2b   :  { %v6364_v63 = vpop.eup %6363  ;;  %v4009_v7 = vmul.bf16 1065369472, %v6362_v33  ;;  %v5357_v33 = vld [vmem:[%s9234_s5 + $0x8] ss:$2 sm:$0x3] }
 0xb2c   :  { %v6366_v15 = vpop.eup %6365  ;;  %v4011_v32 = vmul.bf16 1065369472, %v6364_v63  ;;  %v8843_v63 = vrot.slane %v5357_v33, %v8459_v13 }
 0xb2d   :  { %v6368_v27 = vpop.eup %6367  ;;  %v3988_v9 = vadd.bf16 1065369472, %v6366_v15  ;;  %v4032_v42 = vmul.bf16 %v4009_v7, %v8747_v40 }
 0xb2e   :  { %v3989_v21 = vadd.bf16 1065369472, %v6368_v27  ;;  %v4033_v52 = vmul.bf16 %v4011_v32, %v8749_v18 }
 0xb2f   :  { %6377 = vrcp.bf16 %v3988_v9 }
 0xb30   :  { %6379 = vrcp.bf16 %v3989_v21  ;;  %4048 = vmatprep.subr.bf16.mxu0 %v4033_v52 }
 0xb31   :  { %4049 = vmatpush1.bf16.msra.mxu0 %v4032_v42 }
 0xb32   :  { %v6370_v11 = vpop.eup %6369 }
 0xb33   :  { %v6372_v8 = vpop.eup %6371  ;;  %v4013_v53 = vmul.bf16 1065369472, %v6370_v11 }
 0xb34   :  { %v6374_v23 = vpop.eup %6373  ;;  %v4015_v34 = vmul.bf16 1065369472, %v6372_v8 }
 0xb35   :  { %v6376_v3 = vpop.eup %6375  ;;  %v3990_v24 = vadd.bf16 1065369472, %v6374_v23  ;;  %v4034_v44 = vmul.bf16 %v4013_v53, %v8759_v48  ;;  %v5926_v48 = vld [vmem:[%s9233_s4 + $0x14] ss:$40 sps:$4 sm:$0xff]  }
 0xb36   :  { %v3991_v43 = vadd.bf16 1065369472, %v6376_v3  ;;  %v4035_v59 = vmul.bf16 %v4015_v34, %v8761_v10 }
 0xb37   :  { %6381 = vrcp.bf16 %v3990_v24 }
 0xb38   :  { %6383 = vrcp.bf16 %v3991_v43  ;;  %4050 = vmatprep.subr.bf16.mxu0 %v4035_v59 }
 0xb39   :  { %4051 = vmatpush1.bf16.msra.mxu0 %v4034_v44 }
 0xb3a   :  { %v6378_v40 = vpop.eup %6377 }
 0xb3b   :  { %v6380_v18 = vpop.eup %6379  ;;  %v4017_v54 = vmul.bf16 1065369472, %v6378_v40 }
 0xb3c   :  { %v4019_v28 = vmul.bf16 1065369472, %v6380_v18 }
 0xb3d   :  { %v4036_v56 = vmul.bf16 %v4017_v54, %v8771_v12  ;;  %v5328_v12 = vld [vmem:[%s9234_s5 + $0x1] ss:$2 sm:$0x3] }
 0xb3e   :  { %v4037_v22 = vmul.bf16 %v4019_v28, %v8773_v0  ;;  %v5924_v0 = vld [vmem:[%s9233_s4 + $0x10] ss:$40 sps:$4 sm:$0xff]   ;;  %v3747_v17 = vrot.slane %v5328_v12, %v8459_v13  ;;  %v3751_v51 = vrot.slane %v5328_v12, %v8461_v16 }
 0xb40   :  { %4052 = vmatprep.subr.bf16.mxu0 %v4037_v22  ;;  %v3754_v1 = vmul.f32 %v3747_v17, %v8690_v47  ;;  %v3755_v5 = vmul.f32 %v3751_v51, %v8692_v38  ;;  %v8846_v47 = vrot.slane %v5357_v33, %v8461_v16 }
 0xb41   :  { %4053 = vmatpush1.bf16.msra.mxu0 %v4036_v56 }
 0xb42   :  { %v6382_v58 = vpop.eup %6381 }
 0xb43   :  { %v6384_v49 = vpop.eup %6383  ;;  %v4021_v41 = vmul.bf16 1065369472, %v6382_v58 }
 0xb44   :  { %v4023_v10 = vmul.bf16 1065369472, %v6384_v49 }
 0xb45   :  { %v4038_v14 = vmul.bf16 %v4021_v41, %v3910_v62 }
 0xb46   :  { %v4039_v45 = vmul.bf16 %v4023_v10, %v3911_v4 }
 0xb48   :  { %4054 = vmatprep.subr.bf16.mxu0 %v4039_v45 }
 0xb49   :  { %4055 = vmatpush1.bf16.msra.mxu0 %v4038_v14 }
 0xb4a   :  { %4123 = vmatprep.subr.bf16.mxu0 %v5926_v48 }
 0xb4c   :  { %4073 = vmatmul.mubr.bf16.vlgmr.msra.gmra.mrb[64].mxu0 %v8659_v50 }
 0xb4d   :  { %4124 = vmatpush1.bf16.msra.mxu0 %v5924_v0  ;;  %4155 = vmatprep.mubr.bf16.mxu0 %v6607_v46 }
 0xb54   :  { %5360 = vmatmul.mubr.msk.bf16.vlgmr.msra.gmra.mrb[68].mxu0 %vm396_vm1, %v8479_v29 }
 0xb55   :  { %4165 = vmatprep.mubr.bf16.mxu0 %v6607_v46 }
 0xb5c   :  { %5361 = vmatmul.mubr.msk.bf16.gmra.mrb[72].mxu0 %vm396_vm1, %v8490_v26 }
 0xb5d   :  { %4175 = vmatprep.mubr.bf16.mxu0 %v6607_v46 }
 0xb64   :  { %5362 = vmatmul.mubr.msk.bf16.gmra.mrb[76].mxu0 %vm396_vm1, %v8501_v55 }
 0xb65   :  { %4185 = vmatprep.mubr.bf16.mxu0 %v6607_v46 }
 0xb6c   :  { %5363 = vmatmul.mubr.msk.bf16.gmra.mrb[80].mxu0 %vm396_vm1, %v8512_v19 }
 0xb6d   :  { %4195 = vmatprep.mubr.bf16.mxu0 %v6607_v46 }
 0xb74   :  { %5364 = vmatmul.mubr.msk.bf16.gmra.mrb[84].mxu0 %vm396_vm1, %v8523_v37 }
 0xb75   :  { %4205 = vmatprep.mubr.bf16.mxu0 %v6607_v46 }
 0xb7c   :  { %5365 = vmatmul.mubr.msk.bf16.gmra.mrb[88].mxu0 %vm396_vm1, %v8534_v57 }
 0xb7d   :  { %4215 = vmatprep.mubr.bf16.mxu0 %v6607_v46 }
 0xb84   :  { %5366 = vmatmul.mubr.msk.bf16.gmra.mrb[92].mxu0 %vm396_vm1, %v8545_v6 }
 0xb85   :  { %4225 = vmatprep.mubr.bf16.mxu0 %v6607_v46 }
 0xb8c   :  { %5367 = vmatmul.mubr.msk.bf16.gmra.mrb[96].mxu0 %vm396_vm1, %v8552_v61 }
 0xb8d   :  { %4752 = vmatprep.mubr.bf16.mxu0 %v6607_v46 }
 0xc1f   :  { %v4074_v30 = vpop.f32.mrb[64].mxu0 }
 0xc20   :  { %v4094_v20 = vmul.f32 %v4087_v31, %v4074_v30  ;;  %v4076_v62 = vpop.f32.mrb[65].mxu0 }
 0xc21   :  { %v4095_v4 = vmul.f32 %v4091_v36, %v4076_v62  ;;  %v4078_v39 = vpop.f32.mrb[66].mxu0 }
 0xc22   :  { %v8835_v25 = vadd.f32 %v4094_v20, %v3754_v1  ;;  %v4079_v60 = vpop.f32.mrb[67].mxu0 }
 0xc23   :  { %v8837_v35 = vadd.f32 %v4095_v4, %v3755_v5 }
 0xc27   :  { %v4157_v7 = vpop.f32.mrb[68].mxu0 }
 0xc28   :  { %v4159_v15 = vpop.f32.mrb[69].mxu0  ;;  %v4158_v32 = vadd.f32 %v4157_v7, %v8843_v63 }
 0xc29   :  { %v4161_v38 = vpop.f32.mrb[70].mxu0  ;;  %v4160_v21 = vadd.f32 %v4159_v15, %v8846_v47 }
 0xc2a   :  { %v4162_v27 = vadd.f32 %v4161_v38, %v8843_v63  ;;  %v4163_v9 = vpop.f32.mrb[71].mxu0 }
 0xc2b   :  { %v4164_v52 = vadd.f32 %v4163_v9, %v8846_v47 }
 0xc2c   :  { %v8852_v42 = vpack.c.bf16 %v4162_v27, %v4158_v32 }
 0xc2d   :  { %v8854_v11 = vpack.c.bf16 %v4164_v52, %v4160_v21 }
 0xc2e   :  { %v5368_v8 = vmul.bf16 3216621497, %v8852_v42 }
 0xc2f   :  { %v5369_v53 = vmul.bf16 3216621497, %v8854_v11  ;;  %v4167_v23 = vpop.f32.mrb[72].mxu0 }
 0xc30   :  { %6385 = vpow.bf16 %v5368_v8  ;;  %v4169_v34 = vpop.f32.mrb[73].mxu0  ;;  %v4168_v24 = vadd.f32 %v4167_v23, %v8843_v63 }
 0xc31   :  { %6387 = vpow.bf16 %v5369_v53  ;;  %v4171_v3 = vpop.f32.mrb[74].mxu0  ;;  %v4170_v44 = vadd.f32 %v4169_v34, %v8846_v47 }
 0xc32   :  { %v4172_v43 = vadd.f32 %v4171_v3, %v8843_v63  ;;  %v4173_v59 = vpop.f32.mrb[75].mxu0 }
 0xc33   :  { %v4174_v40 = vadd.f32 %v4173_v59, %v8846_v47 }
 0xc34   :  { %v8862_v18 = vpack.c.bf16 %v4172_v43, %v4168_v24 }
 0xc35   :  { %v8864_v54 = vpack.c.bf16 %v4174_v40, %v4170_v44 }
 0xc36   :  { %v5370_v28 = vmul.bf16 3216621497, %v8862_v18 }
 0xc37   :  { %v5371_v22 = vmul.bf16 3216621497, %v8864_v54  ;;  %v4177_v56 = vpop.f32.mrb[76].mxu0 }
 0xc38   :  { %6389 = vpow.bf16 %v5370_v28  ;;  %v4179_v58 = vpop.f32.mrb[77].mxu0  ;;  %v4178_v41 = vadd.f32 %v4177_v56, %v8843_v63 }
 0xc39   :  { %6391 = vpow.bf16 %v5371_v22  ;;  %v4181_v49 = vpop.f32.mrb[78].mxu0  ;;  %v4180_v14 = vadd.f32 %v4179_v58, %v8846_v47 }
 0xc3a   :  { %v4182_v10 = vadd.f32 %v4181_v49, %v8843_v63  ;;  %v4183_v45 = vpop.f32.mrb[79].mxu0 }
 0xc3b   :  { %v6386_v48 = vpop.eup %6385  ;;  %v4184_v0 = vadd.f32 %v4183_v45, %v8846_v47 }
 0xc3c   :  { %v6388_v12 = vpop.eup %6387  ;;  %v4316_v2 = vadd.bf16 1065369472, %v6386_v48  ;;  %v8872_v17 = vpack.c.bf16 %v4182_v10, %v4178_v41 }
 0xc3d   :  { %v4317_v31 = vadd.bf16 1065369472, %v6388_v12  ;;  %v8874_v51 = vpack.c.bf16 %v4184_v0, %v4180_v14 }
 0xc3e   :  { %6393 = vrcp.bf16 %v4316_v2  ;;  %v5372_v36 = vmul.bf16 3216621497, %v8872_v17 }
 0xc3f   :  { %6395 = vrcp.bf16 %v4317_v31  ;;  %v5373_v30 = vmul.bf16 3216621497, %v8874_v51  ;;  %v4187_v1 = vpop.f32.mrb[80].mxu0 }
 0xc40   :  { %6397 = vpow.bf16 %v5372_v36  ;;  %v4189_v20 = vpop.f32.mrb[81].mxu0  ;;  %v4188_v5 = vadd.f32 %v4187_v1, %v8843_v63 }
 0xc41   :  { %6399 = vpow.bf16 %v5373_v30  ;;  %v4191_v62 = vpop.f32.mrb[82].mxu0  ;;  %v4190_v33 = vadd.f32 %v4189_v20, %v8846_v47 }
 0xc42   :  { %v4192_v4 = vadd.f32 %v4191_v62, %v8843_v63  ;;  %v4193_v39 = vpop.f32.mrb[83].mxu0 }
 0xc43   :  { %v6390_v60 = vpop.eup %6389  ;;  %v4194_v7 = vadd.f32 %v4193_v39, %v8846_v47 }
 0xc44   :  { %v6392_v15 = vpop.eup %6391  ;;  %v4318_v38 = vadd.bf16 1065369472, %v6390_v60  ;;  %v8882_v32 = vpack.c.bf16 %v4192_v4, %v4188_v5 }
 0xc45   :  { %v4319_v27 = vadd.bf16 1065369472, %v6392_v15  ;;  %v8884_v9 = vpack.c.bf16 %v4194_v7, %v4190_v33 }
 0xc46   :  { %6401 = vrcp.bf16 %v4318_v38  ;;  %v5374_v21 = vmul.bf16 3216621497, %v8882_v32 }
 0xc47   :  { %6403 = vrcp.bf16 %v4319_v27  ;;  %v5375_v52 = vmul.bf16 3216621497, %v8884_v9  ;;  %v4197_v8 = vpop.f32.mrb[84].mxu0 }
 0xc48   :  { %6405 = vpow.bf16 %v5374_v21  ;;  %v4199_v53 = vpop.f32.mrb[85].mxu0  ;;  %v4198_v43 = vadd.f32 %v4197_v8, %v8843_v63 }
 0xc49   :  { %v6394_v23 = vpop.eup %6393  ;;  %6407 = vpow.bf16 %v5375_v52  ;;  %v4201_v34 = vpop.f32.mrb[86].mxu0  ;;  %v4200_v28 = vadd.f32 %v4199_v53, %v8846_v47 }
 0xc4a   :  { %v6396_v3 = vpop.eup %6395  ;;  %v4333_v24 = vmul.bf16 1065369472, %v6394_v23  ;;  %v4202_v59 = vadd.f32 %v4201_v34, %v8843_v63  ;;  %v4203_v44 = vpop.f32.mrb[87].mxu0 }
 0xc4b   :  { %v6398_v40 = vpop.eup %6397  ;;  %v4204_v22 = vadd.f32 %v4203_v44, %v8846_v47  ;;  %v4335_v56 = vmul.bf16 1065369472, %v6396_v3 }
 0xc4c   :  { %v6400_v58 = vpop.eup %6399  ;;  %v4320_v49 = vadd.bf16 1065369472, %v6398_v40  ;;  %v8892_v41 = vpack.c.bf16 %v4202_v59, %v4198_v43  ;;  %v4364_v14 = vmul.bf16 %v4333_v24, %v8852_v42 }
 0xc4d   :  { %v4321_v10 = vadd.bf16 1065369472, %v6400_v58  ;;  %v8894_v45 = vpack.c.bf16 %v4204_v22, %v4200_v28  ;;  %v4365_v48 = vmul.bf16 %v4335_v56, %v8854_v11 }
 0xc4e   :  { %6409 = vrcp.bf16 %v4320_v49  ;;  %v5376_v0 = vmul.bf16 3216621497, %v8892_v41 }
 0xc4f   :  { %6411 = vrcp.bf16 %v4321_v10  ;;  %v5377_v12 = vmul.bf16 3216621497, %v8894_v45  ;;  %v4207_v2 = vpop.f32.mrb[88].mxu0  ;;  %4380 = vmatprep.subr.bf16.mxu1 %v4365_v48 }
 0xc50   :  { %6413 = vpow.bf16 %v5376_v0  ;;  %v4209_v31 = vpop.f32.mrb[89].mxu0  ;;  %4381 = vmatpush1.bf16.msra.mxu1 %v4364_v14  ;;  %v4208_v11 = vadd.f32 %v4207_v2, %v8843_v63 }
 0xc51   :  { %v6402_v36 = vpop.eup %6401  ;;  %6415 = vpow.bf16 %v5377_v12  ;;  %v4211_v30 = vpop.f32.mrb[90].mxu0  ;;  %v4210_v4 = vadd.f32 %v4209_v31, %v8846_v47 }
 0xc52   :  { %v6404_v1 = vpop.eup %6403  ;;  %v4337_v20 = vmul.bf16 1065369472, %v6402_v36  ;;  %v4212_v42 = vadd.f32 %v4211_v30, %v8843_v63  ;;  %v4213_v62 = vpop.f32.mrb[91].mxu0 }
 0xc53   :  { %v6406_v5 = vpop.eup %6405  ;;  %v4214_v39 = vadd.f32 %v4213_v62, %v8846_v47  ;;  %v4339_v60 = vmul.bf16 1065369472, %v6404_v1 }
 0xc54   :  { %v6408_v33 = vpop.eup %6407  ;;  %v4322_v7 = vadd.bf16 1065369472, %v6406_v5  ;;  %v8904_v15 = vpack.c.bf16 %v4212_v42, %v4208_v11  ;;  %v4366_v52 = vmul.bf16 %v4337_v20, %v8862_v18 }
 0xc55   :  { %v4323_v38 = vadd.bf16 1065369472, %v6408_v33  ;;  %v8906_v27 = vpack.c.bf16 %v4214_v39, %v4210_v4  ;;  %v4367_v21 = vmul.bf16 %v4339_v60, %v8864_v54 }
 0xc56   :  { %6417 = vrcp.bf16 %v4322_v7  ;;  %v5378_v8 = vmul.bf16 3216621497, %v8904_v15 }
 0xc57   :  { %6419 = vrcp.bf16 %v4323_v38  ;;  %v5379_v53 = vmul.bf16 3216621497, %v8906_v27  ;;  %v4217_v23 = vpop.f32.mrb[92].mxu0  ;;  %4382 = vmatprep.subr.bf16.mxu1 %v4367_v21 }
 0xc58   :  { %6421 = vpow.bf16 %v5378_v8  ;;  %v4219_v34 = vpop.f32.mrb[93].mxu0  ;;  %4383 = vmatpush1.bf16.msra.mxu1 %v4366_v52  ;;  %v4218_v54 = vadd.f32 %v4217_v23, %v8843_v63 }
 0xc59   :  { %v6410_v3 = vpop.eup %6409  ;;  %6423 = vpow.bf16 %v5379_v53  ;;  %v4221_v24 = vpop.f32.mrb[94].mxu0  ;;  %v4220_v28 = vadd.f32 %v4219_v34, %v8846_v47 }
 0xc5a   :  { %v6412_v43 = vpop.eup %6411  ;;  %v4341_v59 = vmul.bf16 1065369472, %v6410_v3  ;;  %v4222_v18 = vadd.f32 %v4221_v24, %v8843_v63  ;;  %v4223_v44 = vpop.f32.mrb[95].mxu0 }
 0xc5b   :  { %v6414_v40 = vpop.eup %6413  ;;  %v4224_v22 = vadd.f32 %v4223_v44, %v8846_v47  ;;  %v4343_v56 = vmul.bf16 1065369472, %v6412_v43 }
 0xc5c   :  { %v6416_v58 = vpop.eup %6415  ;;  %v4324_v49 = vadd.bf16 1065369472, %v6414_v40  ;;  %v8916_v10 = vpack.c.bf16 %v4222_v18, %v4218_v54  ;;  %v4368_v12 = vmul.bf16 %v4341_v59, %v8872_v17 }
 0xc5d   :  { %v4325_v48 = vadd.bf16 1065369472, %v6416_v58  ;;  %v8918_v14 = vpack.c.bf16 %v4224_v22, %v4220_v28  ;;  %v4369_v0 = vmul.bf16 %v4343_v56, %v8874_v51 }
 0xc5e   :  { %6425 = vrcp.bf16 %v4324_v49  ;;  %v5380_v2 = vmul.bf16 3216621497, %v8916_v10 }
 0xc5f   :  { %6427 = vrcp.bf16 %v4325_v48  ;;  %v5381_v31 = vmul.bf16 3216621497, %v8918_v14  ;;  %v4227_v36 = vpop.f32.mrb[96].mxu0  ;;  %4384 = vmatprep.subr.bf16.mxu1 %v4369_v0 }
 0xc60   :  { %6429 = vpow.bf16 %v5380_v2  ;;  %v4229_v30 = vpop.f32.mrb[97].mxu0  ;;  %4385 = vmatpush1.bf16.msra.mxu1 %v4368_v12  ;;  %v4228_v51 = vadd.f32 %v4227_v36, %v8843_v63 }
 0xc61   :  { %v6418_v1 = vpop.eup %6417  ;;  %6431 = vpow.bf16 %v5381_v31  ;;  %v4231_v20 = vpop.f32.mrb[98].mxu0  ;;  %v4230_v4 = vadd.f32 %v4229_v30, %v8846_v47 }
 0xc62   :  { %v6420_v11 = vpop.eup %6419  ;;  %v4345_v42 = vmul.bf16 1065369472, %v6418_v1  ;;  %v4232_v17 = vadd.f32 %v4231_v20, %v8843_v63  ;;  %v4233_v62 = vpop.f32.mrb[99].mxu0 }
 0xc63   :  { %v6422_v5 = vpop.eup %6421  ;;  %v4234_v39 = vadd.f32 %v4233_v62, %v8846_v47  ;;  %v4347_v60 = vmul.bf16 1065369472, %v6420_v11 }
 0xc64   :  { %v6424_v33 = vpop.eup %6423  ;;  %v4326_v7 = vadd.bf16 1065369472, %v6422_v5  ;;  %v4250_v38 = vpack.c.bf16 %v4232_v17, %v4228_v51  ;;  %v4370_v53 = vmul.bf16 %v4345_v42, %v8882_v32 }
 0xc65   :  { %v4327_v21 = vadd.bf16 1065369472, %v6424_v33  ;;  %v4251_v52 = vpack.c.bf16 %v4234_v39, %v4230_v4  ;;  %v4371_v8 = vmul.bf16 %v4347_v60, %v8884_v9 }
 0xc66   :  { %6433 = vrcp.bf16 %v4326_v7  ;;  %v5382_v23 = vmul.bf16 3216621497, %v4250_v38 }
 0xc67   :  { %6435 = vrcp.bf16 %v4327_v21  ;;  %v5383_v63 = vmul.bf16 3216621497, %v4251_v52  ;;  %4386 = vmatprep.subr.bf16.mxu1 %v4371_v8 }
 0xc68   :  { %6437 = vpow.bf16 %v5382_v23  ;;  %4387 = vmatpush1.bf16.msra.mxu1 %v4370_v53 }
 0xc69   :  { %v6426_v34 = vpop.eup %6425  ;;  %6439 = vpow.bf16 %v5383_v63 }
 0xc6a   :  { %v6428_v47 = vpop.eup %6427  ;;  %v4349_v3 = vmul.bf16 1065369472, %v6426_v34 }
 0xc6b   :  { %v6430_v24 = vpop.eup %6429  ;;  %v4351_v43 = vmul.bf16 1065369472, %v6428_v47 }
 0xc6c   :  { %v6432_v59 = vpop.eup %6431  ;;  %v4328_v54 = vadd.bf16 1065369472, %v6430_v24  ;;  %v4372_v32 = vmul.bf16 %v4349_v3, %v8892_v41 }
 0xc6d   :  { %v4329_v18 = vadd.bf16 1065369472, %v6432_v59  ;;  %v4373_v9 = vmul.bf16 %v4351_v43, %v8894_v45 }
 0xc6e   :  { %6441 = vrcp.bf16 %v4328_v54 }
 0xc6f   :  { %6443 = vrcp.bf16 %v4329_v18  ;;  %4388 = vmatprep.subr.bf16.mxu1 %v4373_v9 }
 0xc70   :  { %4389 = vmatpush1.bf16.msra.mxu1 %v4372_v32 }
 0xc71   :  { %v6434_v44 = vpop.eup %6433 }
 0xc72   :  { %v6436_v40 = vpop.eup %6435  ;;  %v4353_v28 = vmul.bf16 1065369472, %v6434_v44 }
 0xc73   :  { %v6438_v22 = vpop.eup %6437  ;;  %v4355_v56 = vmul.bf16 1065369472, %v6436_v40 }
 0xc74   :  { %v6440_v58 = vpop.eup %6439  ;;  %v4330_v49 = vadd.bf16 1065369472, %v6438_v22  ;;  %v4374_v12 = vmul.bf16 %v4353_v28, %v8904_v15  ;;  %v5929_v15 = vld [vmem:[%s9233_s4 + $0x1c] ss:$40 sps:$4 sm:$0xff]  }
 0xc75   :  { %v4331_v48 = vadd.bf16 1065369472, %v6440_v58  ;;  %v4375_v0 = vmul.bf16 %v4355_v56, %v8906_v27 }
 0xc76   :  { %6445 = vrcp.bf16 %v4330_v49 }
 0xc77   :  { %6447 = vrcp.bf16 %v4331_v48  ;;  %4390 = vmatprep.subr.bf16.mxu1 %v4375_v0 }
 0xc78   :  { %4391 = vmatpush1.bf16.msra.mxu1 %v4374_v12 }
 0xc79   :  { %v6442_v41 = vpop.eup %6441 }
 0xc7a   :  { %v6444_v45 = vpop.eup %6443  ;;  %v4357_v2 = vmul.bf16 1065369472, %v6442_v41 }
 0xc7b   :  { %v4359_v31 = vmul.bf16 1065369472, %v6444_v45 }
 0xc7c   :  { %v4376_v30 = vmul.bf16 %v4357_v2, %v8916_v10  ;;  %v5384_v10 = vld [vmem:[%s9234_s5 + $0x9] ss:$2 sm:$0x3] }
 0xc7d   :  { %v4377_v36 = vmul.bf16 %v4359_v31, %v8918_v14  ;;  %v5927_v14 = vld [vmem:[%s9233_s4 + $0x18] ss:$40 sps:$4 sm:$0xff]   ;;  %v4427_v17 = vrot.slane %v5384_v10, %v8459_v13  ;;  %v4431_v62 = vrot.slane %v5384_v10, %v8461_v16 }
 0xc7f   :  { %4392 = vmatprep.subr.bf16.mxu1 %v4377_v36 }
 0xc80   :  { %4393 = vmatpush1.bf16.msra.mxu1 %v4376_v30 }
 0xc81   :  { %v6446_v1 = vpop.eup %6445 }
 0xc82   :  { %v6448_v20 = vpop.eup %6447  ;;  %v4361_v11 = vmul.bf16 1065369472, %v6446_v1 }
 0xc83   :  { %v4363_v27 = vmul.bf16 1065369472, %v6448_v20 }
 0xc84   :  { %v4378_v51 = vmul.bf16 %v4361_v11, %v4250_v38 }
 0xc85   :  { %v4379_v42 = vmul.bf16 %v4363_v27, %v4251_v52  ;;  %v5385_v52 = vld [vmem:[%s9234_s5 + $0xc] ss:$2 sm:$0x3] }
 0xc86   :  { %v8983_v8 = vrot.slane %v5385_v52, %v8459_v13  ;;  %v8986_v23 = vrot.slane %v5385_v52, %v8461_v16 }
 0xc87   :  { %4394 = vmatprep.subr.bf16.mxu1 %v4379_v42 }
 0xc88   :  { %4395 = vmatpush1.bf16.msra.mxu1 %v4378_v51 }
 0xc89   :  { %4463 = vmatprep.subr.bf16.mxu1 %v5929_v15 }
 0xc8b   :  { %4413 = vmatmul.mubr.bf16.vlgmr.msra.gmra.mrb[92].mxu1 %v8659_v50 }
 0xc8c   :  { %4464 = vmatpush1.bf16.msra.mxu1 %v5927_v14  ;;  %4495 = vmatprep.mubr.bf16.mxu1 %v6607_v46 }
 0xc93   :  { %5388 = vmatmul.mubr.msk.bf16.vlgmr.msra.gmra.mrb[96].mxu1 %vm396_vm1, %v8479_v29 }
 0xc94   :  { %4505 = vmatprep.mubr.bf16.mxu1 %v6607_v46 }
 0xc9b   :  { %5389 = vmatmul.mubr.msk.bf16.gmra.mrb[100].mxu1 %vm396_vm1, %v8490_v26 }
 0xc9c   :  { %4515 = vmatprep.mubr.bf16.mxu1 %v6607_v46 }
 0xca3   :  { %5390 = vmatmul.mubr.msk.bf16.gmra.mrb[104].mxu1 %vm396_vm1, %v8501_v55 }
 0xca4   :  { %4525 = vmatprep.mubr.bf16.mxu1 %v6607_v46 }
 0xcab   :  { %5391 = vmatmul.mubr.msk.bf16.gmra.mrb[108].mxu1 %vm396_vm1, %v8512_v19 }
 0xcac   :  { %4535 = vmatprep.mubr.bf16.mxu1 %v6607_v46 }
 0xcb3   :  { %5392 = vmatmul.mubr.msk.bf16.gmra.mrb[112].mxu1 %vm396_vm1, %v8523_v37 }
 0xcb4   :  { %4545 = vmatprep.mubr.bf16.mxu1 %v6607_v46 }
 0xcbb   :  { %5393 = vmatmul.mubr.msk.bf16.gmra.mrb[116].mxu1 %vm396_vm1, %v8534_v57 }
 0xcbc   :  { %4555 = vmatprep.mubr.bf16.mxu1 %v6607_v46 }
 0xcc3   :  { %5394 = vmatmul.mubr.msk.bf16.gmra.mrb[120].mxu1 %vm396_vm1, %v8545_v6 }
 0xcc4   :  { %4565 = vmatprep.mubr.bf16.mxu1 %v6607_v46 }
 0xccb   :  { %5395 = vmatmul.mubr.msk.bf16.gmra.mrb[124].mxu1 %vm396_vm1, %v8552_v61 }
 0xccc   :  { %5092 = vmatprep.mubr.bf16.mxu1 %v6607_v46 }
 0xd5e   :  { %v4414_v5 = vpop.f32.mrb[92].mxu1 }
 0xd5f   :  { %v4434_v4 = vmul.f32 %v4427_v17, %v4414_v5  ;;  %v4416_v39 = vpop.f32.mrb[93].mxu1 }
 0xd60   :  { %v4435_v60 = vmul.f32 %v4431_v62, %v4416_v39  ;;  %v4418_v33 = vpop.f32.mrb[94].mxu1 }
 0xd61   :  { %v8974_v7 = vadd.f32 %v4434_v4, %v8835_v25  ;;  %v4419_v38 = vpop.f32.mrb[95].mxu1 }
 0xd62   :  { %v8977_v21 = vadd.f32 %v4435_v60, %v8837_v35 }
 0xd66   :  { %v4497_v53 = vpop.f32.mrb[96].mxu1 }
 0xd67   :  { %v4499_v63 = vpop.f32.mrb[97].mxu1  ;;  %v4498_v25 = vadd.f32 %v4497_v53, %v8983_v8 }
 0xd68   :  { %v4501_v34 = vpop.f32.mrb[98].mxu1  ;;  %v4500_v35 = vadd.f32 %v4499_v63, %v8986_v23 }
 0xd69   :  { %v4502_v47 = vadd.f32 %v4501_v34, %v8983_v8  ;;  %v4503_v3 = vpop.f32.mrb[99].mxu1 }
 0xd6a   :  { %v4504_v24 = vadd.f32 %v4503_v3, %v8986_v23 }
 0xd6b   :  { %v8992_v43 = vpack.c.bf16 %v4502_v47, %v4498_v25 }
 0xd6c   :  { %v8994_v59 = vpack.c.bf16 %v4504_v24, %v4500_v35 }
 0xd6d   :  { %v5396_v54 = vmul.bf16 3216621497, %v8992_v43 }
 0xd6e   :  { %v5397_v18 = vmul.bf16 3216621497, %v8994_v59  ;;  %v4507_v9 = vpop.f32.mrb[100].mxu1 }
 0xd6f   :  { %6449 = vpow.bf16 %v5396_v54  ;;  %v4509_v32 = vpop.f32.mrb[101].mxu1  ;;  %v4508_v40 = vadd.f32 %v4507_v9, %v8983_v8 }
 0xd70   :  { %6451 = vpow.bf16 %v5397_v18  ;;  %v4511_v44 = vpop.f32.mrb[102].mxu1  ;;  %v4510_v56 = vadd.f32 %v4509_v32, %v8986_v23 }
 0xd71   :  { %v4512_v28 = vadd.f32 %v4511_v44, %v8983_v8  ;;  %v4513_v22 = vpop.f32.mrb[103].mxu1 }
 0xd72   :  { %v4514_v58 = vadd.f32 %v4513_v22, %v8986_v23 }
 0xd73   :  { %v9002_v49 = vpack.c.bf16 %v4512_v28, %v4508_v40 }
 0xd74   :  { %v9004_v48 = vpack.c.bf16 %v4514_v58, %v4510_v56 }
 0xd75   :  { %v5398_v0 = vmul.bf16 3216621497, %v9002_v49 }
 0xd76   :  { %v5399_v12 = vmul.bf16 3216621497, %v9004_v48  ;;  %v4517_v41 = vpop.f32.mrb[104].mxu1 }
 0xd77   :  { %6453 = vpow.bf16 %v5398_v0  ;;  %v4519_v45 = vpop.f32.mrb[105].mxu1  ;;  %v4518_v31 = vadd.f32 %v4517_v41, %v8983_v8 }
 0xd78   :  { %6455 = vpow.bf16 %v5399_v12  ;;  %v4521_v2 = vpop.f32.mrb[106].mxu1  ;;  %v4520_v20 = vadd.f32 %v4519_v45, %v8986_v23 }
 0xd79   :  { %v4522_v36 = vadd.f32 %v4521_v2, %v8983_v8  ;;  %v4523_v30 = vpop.f32.mrb[107].mxu1 }
 0xd7a   :  { %v6450_v1 = vpop.eup %6449  ;;  %v4524_v11 = vadd.f32 %v4523_v30, %v8986_v23 }
 0xd7b   :  { %v6452_v27 = vpop.eup %6451  ;;  %v4656_v42 = vadd.bf16 1065369472, %v6450_v1  ;;  %v9012_v15 = vpack.c.bf16 %v4522_v36, %v4518_v31 }
 0xd7c   :  { %v4657_v51 = vadd.bf16 1065369472, %v6452_v27  ;;  %v9014_v14 = vpack.c.bf16 %v4524_v11, %v4520_v20 }
 0xd7d   :  { %6457 = vrcp.bf16 %v4656_v42  ;;  %v5400_v10 = vmul.bf16 3216621497, %v9012_v15 }
 0xd7e   :  { %6459 = vrcp.bf16 %v4657_v51  ;;  %v5401_v17 = vmul.bf16 3216621497, %v9014_v14  ;;  %v4527_v62 = vpop.f32.mrb[108].mxu1 }
 0xd7f   :  { %6461 = vpow.bf16 %v5400_v10  ;;  %v4529_v5 = vpop.f32.mrb[109].mxu1  ;;  %v4528_v39 = vadd.f32 %v4527_v62, %v8983_v8 }
 0xd80   :  { %6463 = vpow.bf16 %v5401_v17  ;;  %v4531_v4 = vpop.f32.mrb[110].mxu1  ;;  %v4530_v52 = vadd.f32 %v4529_v5, %v8986_v23 }
 0xd81   :  { %v4532_v60 = vadd.f32 %v4531_v4, %v8983_v8  ;;  %v4533_v33 = vpop.f32.mrb[111].mxu1 }
 0xd82   :  { %v6454_v38 = vpop.eup %6453  ;;  %v4534_v53 = vadd.f32 %v4533_v33, %v8986_v23 }
 0xd83   :  { %v6456_v63 = vpop.eup %6455  ;;  %v4658_v34 = vadd.bf16 1065369472, %v6454_v38  ;;  %v9022_v25 = vpack.c.bf16 %v4532_v60, %v4528_v39 }
 0xd84   :  { %v4659_v47 = vadd.bf16 1065369472, %v6456_v63  ;;  %v9024_v3 = vpack.c.bf16 %v4534_v53, %v4530_v52 }
 0xd85   :  { %6465 = vrcp.bf16 %v4658_v34  ;;  %v5402_v35 = vmul.bf16 3216621497, %v9022_v25 }
 0xd86   :  { %6467 = vrcp.bf16 %v4659_v47  ;;  %v5403_v24 = vmul.bf16 3216621497, %v9024_v3  ;;  %v4537_v54 = vpop.f32.mrb[112].mxu1 }
 0xd87   :  { %6469 = vpow.bf16 %v5402_v35  ;;  %v4539_v18 = vpop.f32.mrb[113].mxu1  ;;  %v4538_v28 = vadd.f32 %v4537_v54, %v8983_v8 }
 0xd88   :  { %v6458_v9 = vpop.eup %6457  ;;  %6471 = vpow.bf16 %v5403_v24  ;;  %v4541_v32 = vpop.f32.mrb[114].mxu1  ;;  %v4540_v0 = vadd.f32 %v4539_v18, %v8986_v23 }
 0xd89   :  { %v6460_v44 = vpop.eup %6459  ;;  %v4673_v40 = vmul.bf16 1065369472, %v6458_v9  ;;  %v4542_v22 = vadd.f32 %v4541_v32, %v8983_v8  ;;  %v4543_v56 = vpop.f32.mrb[115].mxu1 }
 0xd8a   :  { %v6462_v58 = vpop.eup %6461  ;;  %v4544_v12 = vadd.f32 %v4543_v56, %v8986_v23  ;;  %v4675_v41 = vmul.bf16 1065369472, %v6460_v44 }
 0xd8b   :  { %v6464_v45 = vpop.eup %6463  ;;  %v4660_v2 = vadd.bf16 1065369472, %v6462_v58  ;;  %v9032_v31 = vpack.c.bf16 %v4542_v22, %v4538_v28  ;;  %v4704_v20 = vmul.bf16 %v4673_v40, %v8992_v43 }
 0xd8c   :  { %v4661_v36 = vadd.bf16 1065369472, %v6464_v45  ;;  %v9034_v30 = vpack.c.bf16 %v4544_v12, %v4540_v0  ;;  %v4705_v1 = vmul.bf16 %v4675_v41, %v8994_v59 }
 0xd8d   :  { %6473 = vrcp.bf16 %v4660_v2  ;;  %v5404_v11 = vmul.bf16 3216621497, %v9032_v31 }
 0xd8e   :  { %6475 = vrcp.bf16 %v4661_v36  ;;  %v5405_v27 = vmul.bf16 3216621497, %v9034_v30  ;;  %v4547_v42 = vpop.f32.mrb[116].mxu1  ;;  %4720 = vmatprep.subr.bf16.mxu0 %v4705_v1 }
 0xd8f   :  { %6477 = vpow.bf16 %v5404_v11  ;;  %v4549_v51 = vpop.f32.mrb[117].mxu1  ;;  %4721 = vmatpush1.bf16.msra.mxu0 %v4704_v20  ;;  %v4548_v59 = vadd.f32 %v4547_v42, %v8983_v8 }
 0xd90   :  { %v6466_v10 = vpop.eup %6465  ;;  %6479 = vpow.bf16 %v5405_v27  ;;  %v4551_v17 = vpop.f32.mrb[118].mxu1  ;;  %v4550_v60 = vadd.f32 %v4549_v51, %v8986_v23 }
 0xd91   :  { %v6468_v62 = vpop.eup %6467  ;;  %v4677_v5 = vmul.bf16 1065369472, %v6466_v10  ;;  %v4552_v43 = vadd.f32 %v4551_v17, %v8983_v8  ;;  %v4553_v4 = vpop.f32.mrb[119].mxu1 }
 0xd92   :  { %v6470_v39 = vpop.eup %6469  ;;  %v4554_v33 = vadd.f32 %v4553_v4, %v8986_v23  ;;  %v4679_v38 = vmul.bf16 1065369472, %v6468_v62 }
 0xd93   :  { %v6472_v52 = vpop.eup %6471  ;;  %v4662_v53 = vadd.bf16 1065369472, %v6470_v39  ;;  %v9044_v63 = vpack.c.bf16 %v4552_v43, %v4548_v59  ;;  %v4706_v24 = vmul.bf16 %v4677_v5, %v9002_v49 }
 0xd94   :  { %v4663_v34 = vadd.bf16 1065369472, %v6472_v52  ;;  %v9046_v47 = vpack.c.bf16 %v4554_v33, %v4550_v60  ;;  %v4707_v35 = vmul.bf16 %v4679_v38, %v9004_v48 }
 0xd95   :  { %6481 = vrcp.bf16 %v4662_v53  ;;  %v5406_v54 = vmul.bf16 3216621497, %v9044_v63 }
 0xd96   :  { %6483 = vrcp.bf16 %v4663_v34  ;;  %v5407_v18 = vmul.bf16 3216621497, %v9046_v47  ;;  %v4557_v9 = vpop.f32.mrb[120].mxu1  ;;  %4722 = vmatprep.subr.bf16.mxu0 %v4707_v35 }
 0xd97   :  { %6485 = vpow.bf16 %v5406_v54  ;;  %v4559_v32 = vpop.f32.mrb[121].mxu1  ;;  %4723 = vmatpush1.bf16.msra.mxu0 %v4706_v24  ;;  %v4558_v48 = vadd.f32 %v4557_v9, %v8983_v8 }
 0xd98   :  { %v6474_v44 = vpop.eup %6473  ;;  %6487 = vpow.bf16 %v5407_v18  ;;  %v4561_v40 = vpop.f32.mrb[122].mxu1  ;;  %v4560_v0 = vadd.f32 %v4559_v32, %v8986_v23 }
 0xd99   :  { %v6476_v28 = vpop.eup %6475  ;;  %v4681_v22 = vmul.bf16 1065369472, %v6474_v44  ;;  %v4562_v49 = vadd.f32 %v4561_v40, %v8983_v8  ;;  %v4563_v56 = vpop.f32.mrb[123].mxu1 }
 0xd9a   :  { %v6478_v58 = vpop.eup %6477  ;;  %v4564_v12 = vadd.f32 %v4563_v56, %v8986_v23  ;;  %v4683_v41 = vmul.bf16 1065369472, %v6476_v28 }
 0xd9b   :  { %v6480_v45 = vpop.eup %6479  ;;  %v4664_v2 = vadd.bf16 1065369472, %v6478_v58  ;;  %v9056_v36 = vpack.c.bf16 %v4562_v49, %v4558_v48  ;;  %v4708_v27 = vmul.bf16 %v4681_v22, %v9012_v15 }
 0xd9c   :  { %v4665_v1 = vadd.bf16 1065369472, %v6480_v45  ;;  %v9058_v20 = vpack.c.bf16 %v4564_v12, %v4560_v0  ;;  %v4709_v11 = vmul.bf16 %v4683_v41, %v9014_v14 }
 0xd9d   :  { %6489 = vrcp.bf16 %v4664_v2  ;;  %v5408_v42 = vmul.bf16 3216621497, %v9056_v36 }
 0xd9e   :  { %6491 = vrcp.bf16 %v4665_v1  ;;  %v5409_v51 = vmul.bf16 3216621497, %v9058_v20  ;;  %v4567_v10 = vpop.f32.mrb[124].mxu1  ;;  %4724 = vmatprep.subr.bf16.mxu0 %v4709_v11 }
 0xd9f   :  { %6493 = vpow.bf16 %v5408_v42  ;;  %v4569_v17 = vpop.f32.mrb[125].mxu1  ;;  %4725 = vmatpush1.bf16.msra.mxu0 %v4708_v27  ;;  %v4568_v14 = vadd.f32 %v4567_v10, %v8983_v8 }
 0xda0   :  { %v6482_v62 = vpop.eup %6481  ;;  %6495 = vpow.bf16 %v5409_v51  ;;  %v4571_v5 = vpop.f32.mrb[126].mxu1  ;;  %v4570_v60 = vadd.f32 %v4569_v17, %v8986_v23 }
 0xda1   :  { %v6484_v59 = vpop.eup %6483  ;;  %v4685_v43 = vmul.bf16 1065369472, %v6482_v62  ;;  %v4572_v15 = vadd.f32 %v4571_v5, %v8983_v8  ;;  %v4573_v4 = vpop.f32.mrb[127].mxu1 }
 0xda2   :  { %v6486_v39 = vpop.eup %6485  ;;  %v4574_v33 = vadd.f32 %v4573_v4, %v8986_v23  ;;  %v4687_v38 = vmul.bf16 1065369472, %v6484_v59 }
 0xda3   :  { %v6488_v52 = vpop.eup %6487  ;;  %v4666_v53 = vadd.bf16 1065369472, %v6486_v39  ;;  %v4590_v34 = vpack.c.bf16 %v4572_v15, %v4568_v14  ;;  %v4710_v18 = vmul.bf16 %v4685_v43, %v9022_v25 }
 0xda4   :  { %v4667_v35 = vadd.bf16 1065369472, %v6488_v52  ;;  %v4591_v24 = vpack.c.bf16 %v4574_v33, %v4570_v60  ;;  %v4711_v54 = vmul.bf16 %v4687_v38, %v9024_v3 }
 0xda5   :  { %6497 = vrcp.bf16 %v4666_v53  ;;  %v5410_v9 = vmul.bf16 3216621497, %v4590_v34 }
 0xda6   :  { %6499 = vrcp.bf16 %v4667_v35  ;;  %v5411_v8 = vmul.bf16 3216621497, %v4591_v24  ;;  %4726 = vmatprep.subr.bf16.mxu0 %v4711_v54 }
 0xda7   :  { %6501 = vpow.bf16 %v5410_v9  ;;  %4727 = vmatpush1.bf16.msra.mxu0 %v4710_v18 }
 0xda8   :  { %v6490_v32 = vpop.eup %6489  ;;  %6503 = vpow.bf16 %v5411_v8 }
 0xda9   :  { %v6492_v23 = vpop.eup %6491  ;;  %v4689_v44 = vmul.bf16 1065369472, %v6490_v32 }
 0xdaa   :  { %v6494_v40 = vpop.eup %6493  ;;  %v4691_v28 = vmul.bf16 1065369472, %v6492_v23 }
 0xdab   :  { %v6496_v22 = vpop.eup %6495  ;;  %v4668_v48 = vadd.bf16 1065369472, %v6494_v40  ;;  %v4712_v25 = vmul.bf16 %v4689_v44, %v9032_v31 }
 0xdac   :  { %v4669_v49 = vadd.bf16 1065369472, %v6496_v22  ;;  %v4713_v3 = vmul.bf16 %v4691_v28, %v9034_v30 }
 0xdad   :  { %6505 = vrcp.bf16 %v4668_v48 }
 0xdae   :  { %6507 = vrcp.bf16 %v4669_v49  ;;  %4728 = vmatprep.subr.bf16.mxu0 %v4713_v3 }
 0xdaf   :  { %4729 = vmatpush1.bf16.msra.mxu0 %v4712_v25 }
 0xdb0   :  { %v6498_v56 = vpop.eup %6497 }
 0xdb1   :  { %v6500_v58 = vpop.eup %6499  ;;  %v4693_v0 = vmul.bf16 1065369472, %v6498_v56 }
 0xdb2   :  { %v6502_v12 = vpop.eup %6501  ;;  %v4695_v41 = vmul.bf16 1065369472, %v6500_v58 }
 0xdb3   :  { %v6504_v45 = vpop.eup %6503  ;;  %v4670_v2 = vadd.bf16 1065369472, %v6502_v12  ;;  %v4714_v27 = vmul.bf16 %v4693_v0, %v9044_v63  ;;  %v5932_v63 = vld [vmem:[%s9233_s4 + $0x24] ss:$40 sps:$4 sm:$0xff]  }
 0xdb4   :  { %v4671_v1 = vadd.bf16 1065369472, %v6504_v45  ;;  %v4715_v11 = vmul.bf16 %v4695_v41, %v9046_v47 }
 0xdb5   :  { %6509 = vrcp.bf16 %v4670_v2 }
 0xdb6   :  { %6511 = vrcp.bf16 %v4671_v1  ;;  %4730 = vmatprep.subr.bf16.mxu0 %v4715_v11 }
 0xdb7   :  { %4731 = vmatpush1.bf16.msra.mxu0 %v4714_v27 }
 0xdb8   :  { %v6506_v31 = vpop.eup %6505 }
 0xdb9   :  { %v6508_v30 = vpop.eup %6507  ;;  %v4697_v42 = vmul.bf16 1065369472, %v6506_v31 }
 0xdba   :  { %v4699_v51 = vmul.bf16 1065369472, %v6508_v30 }
 0xdbb   :  { %v4716_v17 = vmul.bf16 %v4697_v42, %v9056_v36 }
 0xdbc   :  { %v4717_v10 = vmul.bf16 %v4699_v51, %v9058_v20  ;;  %v5930_v20 = vld [vmem:[%s9233_s4 + $0x20] ss:$40 sps:$4 sm:$0xff]  }
 0xdbe   :  { %4732 = vmatprep.subr.bf16.mxu0 %v4717_v10 }
 0xdbf   :  { %4733 = vmatpush1.bf16.msra.mxu0 %v4716_v17 }
 0xdc0   :  { %v6510_v62 = vpop.eup %6509 }
 0xdc1   :  { %v6512_v5 = vpop.eup %6511  ;;  %v4701_v59 = vmul.bf16 1065369472, %v6510_v62 }
 0xdc2   :  { %v4703_v47 = vmul.bf16 1065369472, %v6512_v5 }
 0xdc3   :  { %v4718_v14 = vmul.bf16 %v4701_v59, %v4590_v34 }
 0xdc4   :  { %v4719_v43 = vmul.bf16 %v4703_v47, %v4591_v24 }
 0xdc6   :  { %4734 = vmatprep.subr.bf16.mxu0 %v4719_v43 }
 0xdc7   :  { %4735 = vmatpush1.bf16.msra.mxu0 %v4718_v14 }
 0xdc8   :  { %4803 = vmatprep.subr.bf16.mxu0 %v5932_v63 }
 0xdca   :  { %4753 = vmatmul.mubr.bf16.vlgmr.msra.gmra.mrb[100].mxu0 %v8659_v50 }
 0xdcb   :  { %4804 = vmatpush1.bf16.msra.mxu0 %v5930_v20  ;;  %4835 = vmatprep.mubr.bf16.mxu0 %v6607_v46 }
 0xdd2   :  { %5416 = vmatmul.mubr.msk.bf16.vlgmr.msra.gmra.mrb[104].mxu0 %vm396_vm1, %v8479_v29  ;;  %v5412_v29 = vld [vmem:[%s9234_s5 + $0xd] ss:$2 sm:$0x3] }
 0xdd3   :  { %4845 = vmatprep.mubr.bf16.mxu0 %v6607_v46 }
 0xdda   :  { %5417 = vmatmul.mubr.msk.bf16.gmra.mrb[108].mxu0 %vm396_vm1, %v8490_v26  ;;  %v4767_v26 = vrot.slane %v5412_v29, %v8459_v13 }
 0xddb   :  { %4855 = vmatprep.mubr.bf16.mxu0 %v6607_v46 }
 0xde2   :  { %5418 = vmatmul.mubr.msk.bf16.gmra.mrb[112].mxu0 %vm396_vm1, %v8501_v55  ;;  %v4771_v55 = vrot.slane %v5412_v29, %v8461_v16 }
 0xde3   :  { %4865 = vmatprep.mubr.bf16.mxu0 %v6607_v46 }
 0xdea   :  { %5419 = vmatmul.mubr.msk.bf16.gmra.mrb[116].mxu0 %vm396_vm1, %v8512_v19 }
 0xdeb   :  { %4875 = vmatprep.mubr.bf16.mxu0 %v6607_v46 }
 0xdf2   :  { %5420 = vmatmul.mubr.msk.bf16.gmra.mrb[120].mxu0 %vm396_vm1, %v8523_v37 }
 0xdf3   :  { %4885 = vmatprep.mubr.bf16.mxu0 %v6607_v46 }
 0xdfa   :  { %5421 = vmatmul.mubr.msk.bf16.gmra.mrb[124].mxu0 %vm396_vm1, %v8534_v57 }
 0xdfb   :  { %4895 = vmatprep.mubr.bf16.mxu0 %v6607_v46 }
 0xe02   :  { %5422 = vmatmul.mubr.msk.bf16.gmra.mrb[128].mxu0 %vm396_vm1, %v8545_v6 }
 0xe03   :  { %4905 = vmatprep.mubr.bf16.mxu0 %v6607_v46 }
 0xe0a   :  { %5423 = vmatmul.mubr.msk.bf16.gmra.mrb[132].mxu0 %vm396_vm1, %v8552_v61  ;;  %v5413_v61 = vld [vmem:[%s9234_s5 + $0x10] ss:$2 sm:$0x3]  ;;  %vm5119_vm1 = vcmask 1041408  }
 0xe0b   :  { %v9122_v39 = vrot.slane %v5413_v61, %v8459_v13  ;;  %v9125_v33 = vrot.slane %v5413_v61, %v8461_v16 }
 0xe9d   :  { %v4754_v19 = vpop.f32.mrb[100].mxu0 }
 0xe9e   :  { %v4774_v37 = vmul.f32 %v4767_v26, %v4754_v19  ;;  %v4756_v57 = vpop.f32.mrb[101].mxu0 }
 0xe9f   :  { %v4775_v36 = vmul.f32 %v4771_v55, %v4756_v57  ;;  %v4758_v15 = vpop.f32.mrb[102].mxu0 }
 0xea0   :  { %v9113_v6 = vadd.f32 %v4774_v37, %v8974_v7  ;;  %v4759_v46 = vpop.f32.mrb[103].mxu0 }
 0xea1   :  { %v9116_v4 = vadd.f32 %v4775_v36, %v8977_v21 }
 0xea5   :  { %v4837_v60 = vpop.f32.mrb[104].mxu0 }
 0xea6   :  { %v4839_v38 = vpop.f32.mrb[105].mxu0  ;;  %v4838_v7 = vadd.f32 %v4837_v60, %v9122_v39 }
 0xea7   :  { %v4841_v52 = vpop.f32.mrb[106].mxu0  ;;  %v4840_v21 = vadd.f32 %v4839_v38, %v9125_v33 }
 0xea8   :  { %v4842_v53 = vadd.f32 %v4841_v52, %v9122_v39  ;;  %v4843_v34 = vpop.f32.mrb[107].mxu0 }
 0xea9   :  { %v4844_v35 = vadd.f32 %v4843_v34, %v9125_v33 }
 0xeaa   :  { %v9131_v24 = vpack.c.bf16 %v4842_v53, %v4838_v7 }
 0xeab   :  { %v9133_v54 = vpack.c.bf16 %v4844_v35, %v4840_v21 }
 0xeac   :  { %v5424_v18 = vmul.bf16 3216621497, %v9131_v24 }
 0xead   :  { %v5425_v9 = vmul.bf16 3216621497, %v9133_v54  ;;  %v4847_v8 = vpop.f32.mrb[108].mxu0 }
 0xeae   :  { %6513 = vpow.bf16 %v5424_v18  ;;  %v4849_v32 = vpop.f32.mrb[109].mxu0  ;;  %v4848_v44 = vadd.f32 %v4847_v8, %v9122_v39 }
 0xeaf   :  { %6515 = vpow.bf16 %v5425_v9  ;;  %v4851_v23 = vpop.f32.mrb[110].mxu0  ;;  %v4850_v22 = vadd.f32 %v4849_v32, %v9125_v33 }
 0xeb0   :  { %v4852_v40 = vadd.f32 %v4851_v23, %v9122_v39  ;;  %v4853_v28 = vpop.f32.mrb[111].mxu0 }
 0xeb1   :  { %v4854_v48 = vadd.f32 %v4853_v28, %v9125_v33 }
 0xeb2   :  { %v9141_v49 = vpack.c.bf16 %v4852_v40, %v4848_v44 }
 0xeb3   :  { %v9143_v3 = vpack.c.bf16 %v4854_v48, %v4850_v22 }
 0xeb4   :  { %v5426_v25 = vmul.bf16 3216621497, %v9141_v49 }
 0xeb5   :  { %v5427_v56 = vmul.bf16 3216621497, %v9143_v3  ;;  %v4857_v58 = vpop.f32.mrb[112].mxu0 }
 0xeb6   :  { %6517 = vpow.bf16 %v5426_v25  ;;  %v4859_v0 = vpop.f32.mrb[113].mxu0  ;;  %v4858_v41 = vadd.f32 %v4857_v58, %v9122_v39 }
 0xeb7   :  { %6519 = vpow.bf16 %v5427_v56  ;;  %v4861_v12 = vpop.f32.mrb[114].mxu0  ;;  %v4860_v11 = vadd.f32 %v4859_v0, %v9125_v33 }
 0xeb8   :  { %v4862_v45 = vadd.f32 %v4861_v12, %v9122_v39  ;;  %v4863_v2 = vpop.f32.mrb[115].mxu0 }
 0xeb9   :  { %v6514_v1 = vpop.eup %6513  ;;  %v4864_v27 = vadd.f32 %v4863_v2, %v9125_v33 }
 0xeba   :  { %v6516_v31 = vpop.eup %6515  ;;  %v4996_v30 = vadd.bf16 1065369472, %v6514_v1  ;;  %v9151_v42 = vpack.c.bf16 %v4862_v45, %v4858_v41 }
 0xebb   :  { %v4997_v51 = vadd.bf16 1065369472, %v6516_v31  ;;  %v9153_v10 = vpack.c.bf16 %v4864_v27, %v4860_v11 }
 0xebc   :  { %6521 = vrcp.bf16 %v4996_v30  ;;  %v5428_v17 = vmul.bf16 3216621497, %v9151_v42 }
 0xebd   :  { %6523 = vrcp.bf16 %v4997_v51  ;;  %v5429_v62 = vmul.bf16 3216621497, %v9153_v10  ;;  %v4867_v5 = vpop.f32.mrb[116].mxu0 }
 0xebe   :  { %6525 = vpow.bf16 %v5428_v17  ;;  %v4869_v59 = vpop.f32.mrb[117].mxu0  ;;  %v4868_v43 = vadd.f32 %v4867_v5, %v9122_v39 }
 0xebf   :  { %6527 = vpow.bf16 %v5429_v62  ;;  %v4871_v47 = vpop.f32.mrb[118].mxu0  ;;  %v4870_v29 = vadd.f32 %v4869_v59, %v9125_v33 }
 0xec0   :  { %v4872_v63 = vadd.f32 %v4871_v47, %v9122_v39  ;;  %v4873_v14 = vpop.f32.mrb[119].mxu0 }
 0xec1   :  { %v6518_v20 = vpop.eup %6517  ;;  %v4874_v26 = vadd.f32 %v4873_v14, %v9125_v33 }
 0xec2   :  { %v6520_v55 = vpop.eup %6519  ;;  %v4998_v19 = vadd.bf16 1065369472, %v6518_v20  ;;  %v9161_v37 = vpack.c.bf16 %v4872_v63, %v4868_v43 }
 0xec3   :  { %v4999_v57 = vadd.bf16 1065369472, %v6520_v55  ;;  %v9163_v36 = vpack.c.bf16 %v4874_v26, %v4870_v29 }
 0xec4   :  { %6529 = vrcp.bf16 %v4998_v19  ;;  %v5430_v15 = vmul.bf16 3216621497, %v9161_v37 }
 0xec5   :  { %6531 = vrcp.bf16 %v4999_v57  ;;  %v5431_v46 = vmul.bf16 3216621497, %v9163_v36  ;;  %v4877_v61 = vpop.f32.mrb[120].mxu0 }
 0xec6   :  { %6533 = vpow.bf16 %v5430_v15  ;;  %v4879_v60 = vpop.f32.mrb[121].mxu0  ;;  %v4878_v34 = vadd.f32 %v4877_v61, %v9122_v39 }
 0xec7   :  { %v6522_v38 = vpop.eup %6521  ;;  %6535 = vpow.bf16 %v5431_v46  ;;  %v4881_v52 = vpop.f32.mrb[122].mxu0  ;;  %v4880_v9 = vadd.f32 %v4879_v60, %v9125_v33 }
 0xec8   :  { %v6524_v7 = vpop.eup %6523  ;;  %v5013_v53 = vmul.bf16 1065369472, %v6522_v38  ;;  %v4882_v21 = vadd.f32 %v4881_v52, %v9122_v39  ;;  %v4883_v35 = vpop.f32.mrb[123].mxu0 }
 0xec9   :  { %v6526_v18 = vpop.eup %6525  ;;  %v4884_v8 = vadd.f32 %v4883_v35, %v9125_v33  ;;  %v5015_v32 = vmul.bf16 1065369472, %v6524_v7 }
 0xeca   :  { %v6528_v23 = vpop.eup %6527  ;;  %v5000_v44 = vadd.bf16 1065369472, %v6526_v18  ;;  %v9171_v40 = vpack.c.bf16 %v4882_v21, %v4878_v34  ;;  %v5044_v25 = vmul.bf16 %v5013_v53, %v9131_v24 }
 0xecb   :  { %v5001_v28 = vadd.bf16 1065369472, %v6528_v23  ;;  %v9173_v22 = vpack.c.bf16 %v4884_v8, %v4880_v9  ;;  %v5045_v48 = vmul.bf16 %v5015_v32, %v9133_v54 }
 0xecc   :  { %6537 = vrcp.bf16 %v5000_v44  ;;  %v5432_v56 = vmul.bf16 3216621497, %v9171_v40 }
 0xecd   :  { %6539 = vrcp.bf16 %v5001_v28  ;;  %v5433_v58 = vmul.bf16 3216621497, %v9173_v22  ;;  %v4887_v0 = vpop.f32.mrb[124].mxu0  ;;  %5060 = vmatprep.subr.bf16.mxu1 %v5045_v48 }
 0xece   :  { %6541 = vpow.bf16 %v5432_v56  ;;  %v4889_v12 = vpop.f32.mrb[125].mxu0  ;;  %5061 = vmatpush1.bf16.msra.mxu1 %v5044_v25  ;;  %v4888_v54 = vadd.f32 %v4887_v0, %v9122_v39 }
 0xecf   :  { %v6530_v41 = vpop.eup %6529  ;;  %6543 = vpow.bf16 %v5433_v58  ;;  %v4891_v45 = vpop.f32.mrb[126].mxu0  ;;  %v4890_v31 = vadd.f32 %v4889_v12, %v9125_v33 }
 0xed0   :  { %v6532_v2 = vpop.eup %6531  ;;  %v5017_v1 = vmul.bf16 1065369472, %v6530_v41  ;;  %v4892_v24 = vadd.f32 %v4891_v45, %v9122_v39  ;;  %v4893_v11 = vpop.f32.mrb[127].mxu0 }
 0xed1   :  { %v6534_v27 = vpop.eup %6533  ;;  %v4894_v30 = vadd.f32 %v4893_v11, %v9125_v33  ;;  %v5019_v51 = vmul.bf16 1065369472, %v6532_v2 }
 0xed2   :  { %v6536_v17 = vpop.eup %6535  ;;  %v5002_v62 = vadd.bf16 1065369472, %v6534_v27  ;;  %v9183_v5 = vpack.c.bf16 %v4892_v24, %v4888_v54  ;;  %v5046_v63 = vmul.bf16 %v5017_v1, %v9141_v49 }
 0xed3   :  { %v5003_v59 = vadd.bf16 1065369472, %v6536_v17  ;;  %v9185_v47 = vpack.c.bf16 %v4894_v30, %v4890_v31  ;;  %v5047_v43 = vmul.bf16 %v5019_v51, %v9143_v3 }
 0xed4   :  { %6545 = vrcp.bf16 %v5002_v62  ;;  %v5434_v14 = vmul.bf16 3216621497, %v9183_v5 }
 0xed5   :  { %6547 = vrcp.bf16 %v5003_v59  ;;  %v5435_v20 = vmul.bf16 3216621497, %v9185_v47  ;;  %v4897_v29 = vpop.f32.mrb[128].mxu0  ;;  %5062 = vmatprep.subr.bf16.mxu1 %v5047_v43 }
 0xed6   :  { %6549 = vpow.bf16 %v5434_v14  ;;  %v4899_v26 = vpop.f32.mrb[129].mxu0  ;;  %5063 = vmatpush1.bf16.msra.mxu1 %v5046_v63  ;;  %v4898_v3 = vadd.f32 %v4897_v29, %v9122_v39 }
 0xed7   :  { %v6538_v55 = vpop.eup %6537  ;;  %6551 = vpow.bf16 %v5435_v20  ;;  %v4901_v19 = vpop.f32.mrb[130].mxu0  ;;  %v4900_v60 = vadd.f32 %v4899_v26, %v9125_v33 }
 0xed8   :  { %v6540_v57 = vpop.eup %6539  ;;  %v5021_v15 = vmul.bf16 1065369472, %v6538_v55  ;;  %v4902_v49 = vadd.f32 %v4901_v19, %v9122_v39  ;;  %v4903_v46 = vpop.f32.mrb[131].mxu0 }
 0xed9   :  { %v6542_v61 = vpop.eup %6541  ;;  %v4904_v38 = vadd.f32 %v4903_v46, %v9125_v33  ;;  %v5023_v52 = vmul.bf16 1065369472, %v6540_v57 }
 0xeda   :  { %v6544_v7 = vpop.eup %6543  ;;  %v5004_v53 = vadd.bf16 1065369472, %v6542_v61  ;;  %v9195_v34 = vpack.c.bf16 %v4902_v49, %v4898_v3  ;;  %v5048_v9 = vmul.bf16 %v5021_v15, %v9151_v42 }
 0xedb   :  { %v5005_v21 = vadd.bf16 1065369472, %v6544_v7  ;;  %v9197_v35 = vpack.c.bf16 %v4904_v38, %v4900_v60  ;;  %v5049_v18 = vmul.bf16 %v5023_v52, %v9153_v10 }
 0xedc   :  { %6553 = vrcp.bf16 %v5004_v53  ;;  %v5436_v8 = vmul.bf16 3216621497, %v9195_v34 }
 0xedd   :  { %6555 = vrcp.bf16 %v5005_v21  ;;  %v5437_v32 = vmul.bf16 3216621497, %v9197_v35  ;;  %v4907_v23 = vpop.f32.mrb[132].mxu0  ;;  %5064 = vmatprep.subr.bf16.mxu1 %v5049_v18 }
 0xede   :  { %6557 = vpow.bf16 %v5436_v8  ;;  %v4909_v44 = vpop.f32.mrb[133].mxu0  ;;  %5065 = vmatpush1.bf16.msra.mxu1 %v5048_v9  ;;  %v4908_v10 = vadd.f32 %v4907_v23, %v9122_v39  ;;  %v5440_v9 = vld [vmem:[%s9234_s5 + $0x11] ss:$2 sm:$0x3] }
 0xedf   :  { %v6546_v28 = vpop.eup %6545  ;;  %6559 = vpow.bf16 %v5437_v32  ;;  %v4911_v48 = vpop.f32.mrb[134].mxu0  ;;  %v4910_v12 = vadd.f32 %v4909_v44, %v9125_v33 }
 0xee0   :  { %v6548_v25 = vpop.eup %6547  ;;  %v5025_v56 = vmul.bf16 1065369472, %v6546_v28  ;;  %v4912_v42 = vadd.f32 %v4911_v48, %v9122_v39  ;;  %v4913_v58 = vpop.f32.mrb[135].mxu0 }
 0xee1   :  { %v6550_v0 = vpop.eup %6549  ;;  %v4914_v41 = vadd.f32 %v4913_v58, %v9125_v33  ;;  %v5027_v45 = vmul.bf16 1065369472, %v6548_v25 }
 0xee2   :  { %v6552_v2 = vpop.eup %6551  ;;  %v5006_v1 = vadd.bf16 1065369472, %v6550_v0  ;;  %v4930_v54 = vpack.c.bf16 %v4912_v42, %v4908_v10  ;;  %v5050_v31 = vmul.bf16 %v5025_v56, %v9161_v37 }
 0xee3   :  { %v5007_v24 = vadd.bf16 1065369472, %v6552_v2  ;;  %v4931_v11 = vpack.c.bf16 %v4914_v41, %v4910_v12  ;;  %v5051_v27 = vmul.bf16 %v5027_v45, %v9163_v36 }
 0xee4   :  { %6561 = vrcp.bf16 %v5006_v1  ;;  %v5438_v30 = vmul.bf16 3216621497, %v4930_v54 }
 0xee5   :  { %6563 = vrcp.bf16 %v5007_v24  ;;  %v5439_v39 = vmul.bf16 3216621497, %v4931_v11  ;;  %5066 = vmatprep.subr.bf16.mxu1 %v5051_v27 }
 0xee6   :  { %6565 = vpow.bf16 %v5438_v30  ;;  %5067 = vmatpush1.bf16.msra.mxu1 %v5050_v31 }
 0xee7   :  { %v6554_v51 = vpop.eup %6553  ;;  %6567 = vpow.bf16 %v5439_v39 }
 0xee8   :  { %v6556_v33 = vpop.eup %6555  ;;  %v5029_v17 = vmul.bf16 1065369472, %v6554_v51 }
 0xee9   :  { %v6558_v62 = vpop.eup %6557  ;;  %v5031_v59 = vmul.bf16 1065369472, %v6556_v33 }
 0xeea   :  { %v6560_v43 = vpop.eup %6559  ;;  %v5008_v63 = vadd.bf16 1065369472, %v6558_v62  ;;  %v5052_v37 = vmul.bf16 %v5029_v17, %v9171_v40 }
 0xeeb   :  { %v5009_v14 = vadd.bf16 1065369472, %v6560_v43  ;;  %v5053_v36 = vmul.bf16 %v5031_v59, %v9173_v22 }
 0xeec   :  { %6569 = vrcp.bf16 %v5008_v63 }
 0xeed   :  { %6571 = vrcp.bf16 %v5009_v14  ;;  %5068 = vmatprep.subr.bf16.mxu1 %v5053_v36 }
 0xeee   :  { %5069 = vmatpush1.bf16.msra.mxu1 %v5052_v37 }
 0xeef   :  { %v6562_v20 = vpop.eup %6561 }
 0xef0   :  { %v6564_v29 = vpop.eup %6563  ;;  %v5033_v26 = vmul.bf16 1065369472, %v6562_v20 }
 0xef1   :  { %v6566_v55 = vpop.eup %6565  ;;  %v5035_v19 = vmul.bf16 1065369472, %v6564_v29 }
 0xef2   :  { %v6568_v57 = vpop.eup %6567  ;;  %v5010_v15 = vadd.bf16 1065369472, %v6566_v55  ;;  %v5054_v46 = vmul.bf16 %v5033_v26, %v9183_v5 }
 0xef3   :  { %v5011_v3 = vadd.bf16 1065369472, %v6568_v57  ;;  %v5055_v49 = vmul.bf16 %v5035_v19, %v9185_v47 }
 0xef4   :  { %6573 = vrcp.bf16 %v5010_v15 }
 0xef5   :  { %6575 = vrcp.bf16 %v5011_v3  ;;  %5070 = vmatprep.subr.bf16.mxu1 %v5055_v49 }
 0xef6   :  { %5071 = vmatpush1.bf16.msra.mxu1 %v5054_v46 }
 0xef7   :  { %v6570_v40 = vpop.eup %6569 }
 0xef8   :  { %v6572_v22 = vpop.eup %6571  ;;  %v5037_v61 = vmul.bf16 1065369472, %v6570_v40 }
 0xef9   :  { %v5039_v60 = vmul.bf16 1065369472, %v6572_v22 }
 0xefa   :  { %v5056_v52 = vmul.bf16 %v5037_v61, %v9195_v34  ;;  %v5111_v34 = vrot.slane %v5440_v9, %v8461_v16 }
 0xefb   :  { %v5057_v38 = vmul.bf16 %v5039_v60, %v9197_v35  ;;  %v5107_v35 = vrot.slane %v5440_v9, %v8459_v13  ;;  %v5441_v13 = vld [vmem:[%s9229_s1 + $0xb8] ss:$0 sm:$0xff] }
 0xefd   :  { %5072 = vmatprep.subr.bf16.mxu1 %v5057_v38 }
 0xefe   :  { %5073 = vmatpush1.bf16.msra.mxu1 %v5056_v52 }
 0xeff   :  { %v6574_v7 = vpop.eup %6573 }
 0xf00   :  { %v6576_v53 = vpop.eup %6575  ;;  %v5041_v21 = vmul.bf16 1065369472, %v6574_v7 }
 0xf01   :  { %v5043_v47 = vmul.bf16 1065369472, %v6576_v53 }
 0xf02   :  { %v5058_v5 = vmul.bf16 %v5041_v21, %v4930_v54 }
 0xf03   :  { %v5059_v18 = vmul.bf16 %v5043_v47, %v4931_v11 }
 0xf05   :  { %5074 = vmatprep.subr.bf16.mxu1 %v5059_v18 }
 0xf06   :  { %5075 = vmatpush1.bf16.msra.mxu1 %v5058_v5 }
 0xf09   :  { %5093 = vmatmul.mubr.bf16.vlgmr.msra.gmra.mrb[128].mxu1 %v8659_v50 }
 0xfdc   :  { %v5094_v8 = vpop.f32.mrb[128].mxu1 }
 0xfdd   :  { %v5114_v32 = vmul.f32 %v5107_v35, %v5094_v8  ;;  %v5096_v23 = vpop.f32.mrb[129].mxu1 }
 0xfde   :  { %v5115_v44 = vmul.f32 %v5111_v34, %v5096_v23  ;;  %v5098_v28 = vpop.f32.mrb[130].mxu1 }
 0xfdf   :  { %v5116_v48 = vadd.f32 %v5114_v32, %v9113_v6  ;;  %v5099_v25 = vpop.f32.mrb[131].mxu1 }
 0xfe0   :  { %v5117_v56 = vadd.f32 %v5115_v44, %v9116_v4 }
 0xfe1   :  { %v5120_v50 = vsel %vm5119_vm1, %v5116_v48, 0.0 }
 0xfe2   :  { %v5121_v10 = vsel %vm5119_vm1, %v5117_v56, 0.0 }
 0xfe3   :  { %v5122_v42 = vadd.f32 %v5121_v10, %v5120_v50 }
 0xfe5   :  { %5123 = vadd.xlane.f32.xlu0 %v5122_v42 }
0x1072   :  { %v5124_v16 = vpop.xlane.xlu0 %5123 }
0x1073   :  { %v5129_v58 = vadd.f32 %v5441_v13, %v5124_v16 }
0x1075   :  { %5131 = vst.msk [vmem:[%s9235_s6] sm:$0x3] %vm5130_vm2, %v5129_v58 }

</bundles_post_ra>
